<compile_context>
chip_gen: v6e
topology: v6e:2x2x1
jax: 0.10.0
libtpu: 0.0.40
codegen_flags: <defaults>
</compile_context>

<pallas_src>
import numpy as np
import jax
import jax.numpy as jnp
from jax import lax
from jax.experimental import pallas as pl
from jax.experimental.pallas import tpu as pltpu

# Flip to True on v6e/v7x to feed the MXU bf16 operands (halves weight DMA
# bytes).  Accumulation / bias / PReLU stay in f32 either way.
USE_BF16 = False


# ------------------ parameters (mirror base_model(...)[0]) -----------------

def build_encoder_params(key, kernel_size=11, kernel_decay=2, n_layers=1,
                         start_channels=4, max_channels=32, n_blocks=6,
                         prelu_init=0.25):
    """list of (w[OC,IC,K,K], b[OC], alpha, k, stride) matching the PyTorch
    Encoder's encoder_cnn (PyTorch-style uniform init)."""
    params = []
    oc = None

    def add_conv(key, ic, oc, k, stride):
        key, kw_, kb_ = jax.random.split(key, 3)
        bound = 1.0 / (ic * k * k) ** 0.5
        w = jax.random.uniform(kw_, (oc, ic, k, k), jnp.float32, -bound, bound)
        b = jax.random.uniform(kb_, (oc,), jnp.float32, -bound, bound)
        params.append((w, b, jnp.float32(prelu_init), k, stride))
        return key

    for i in range(n_blocks):
        k = int(max(3, kernel_size - kernel_decay * i))
        if i == 0:
            ic, oc = 1, start_channels
        else:
            ic, oc = oc, min(oc * 2, max_channels)
        for _ in range(n_layers - 1):
            key = add_conv(key, ic, ic, k, 1)      # stride-1 same-channel convs
        key = add_conv(key, ic, oc, k, 2)          # strided conv ic -> oc
    return params


# ------------------------- host-side preprocessing -------------------------

def _out_dim(n, k, stride, pad):
    return (n + 2 * pad - k) // stride + 1


def _precompute_layer(w, b, k, stride, H, W):
    """Structured matrices for one conv layer of the fused kernel.

    S[kh]  (OH, H)        0/1 row selection: input row = stride*oh + kh - pad
    B[kh]  (W*IC, OW*OC)  banded weight matrix (W-stride/pad + ic contraction)
    bias   (1, OW*OC)     bias tiled along ow (column order = (ow, oc))
    """
    OC, IC = int(w.shape[0]), int(w.shape[1])
    pad = k // 2
    OH = _out_dim(H, k, stride, pad)
    OW = _out_dim(W, k, stride, pad)

    S = np.zeros((k, OH, H), np.float32)
    oh = np.arange(OH)
    for kh in range(k):
        hh = stride * oh + kh - pad
        ok = (hh >= 0) & (hh < H)
        S[kh, oh[ok], hh[ok]] = 1.0

    wn = np.asarray(w, dtype=np.float32)           # (OC, IC, k, k)
    B = np.zeros((k, W * IC, OW * OC), np.float32)
    for kh in range(k):
        for ow in range(OW):
            for kw in range(k):
                wi = stride * ow + kw - pad
                if 0 <= wi < W:
                    B[kh, wi * IC:(wi + 1) * IC, ow * OC:(ow + 1) * OC] = \
                        wn[:, :, kh, kw].T
    bias = np.tile(np.asarray(b, dtype=np.float32), OW).reshape(1, OW * OC)
    meta = dict(k=k, OH=OH, OW=OW, OC=OC, H=H, W=W, IC=IC)
    return S, B, bias, meta


# ------------------------------ Pallas kernel ------------------------------

def _make_kernel(metas, compute_dtype):
    n_layers = len(metas)

    def kernel(*refs):
        alphas_ref = refs[0]          # (n_layers,) f32, SMEM
        x_ref = refs[1]               # (1, H0, W0*C0), VMEM
        out_ref = refs[-1]            # (1, OHf, OWf*OCf), VMEM
        lrefs = refs[2:-1]            # [S0, B0, bias0, S1, B1, bias1, ...]

        a = x_ref[0]                                  # (H, W*C) activation slab
        for l in range(n_layers):
            m = metas[l]
            S_ref, B_ref, bias_ref = lrefs[3 * l:3 * l + 3]
            a_c = a.astype(compute_dtype)
            acc = jnp.zeros((m['OH'], m['OW'] * m['OC']), jnp.float32)
            for kh in range(m['k']):
                rows = jnp.dot(S_ref[kh], a_c,        # (OH, W*C) row pick (MXU)
                               preferred_element_type=jnp.float32)
                acc = acc + jnp.dot(rows.astype(compute_dtype), B_ref[kh],
                                    preferred_element_type=jnp.float32)
            y = acc + bias_ref[...]
            a = jnp.where(y > 0.0, y, alphas_ref[l] * y)   # PReLU (1 shared α)
        out_ref[0] = a

    return kernel


# ------------------------------ public wrapper ------------------------------

def make_encoder_forward(params, input_shape, use_bf16=USE_BF16):
    H, W, C = int(input_shape[0]), int(input_shape[1]), 1
    cdtype = jnp.bfloat16 if use_bf16 else jnp.float32

    metas, flat = [], []
    for (w, b, _alpha, k, stride) in params:
        assert int(w.shape[1]) == C, "channel bookkeeping mismatch"
        S, B, bias, m = _precompute_layer(w, b, k, stride, H, W)
        metas.append(m)
        flat += [jnp.asarray(S, cdtype), jnp.asarray(B, cdtype),
                 jnp.asarray(bias, jnp.float32)]
        H, W, C = m['OH'], m['OW'], m['OC']
    alphas = jnp.asarray(np.array([float(a) for (_, _, a, _, _) in params],
                                  np.float32))
    m0, mf = metas[0], metas[-1]
    kernel = _make_kernel(metas, cdtype)

    # whole-array (un-tiled) specs for the structured weight matrices
    const_specs = [pl.BlockSpec(arr.shape, lambda n, z=(0,) * arr.ndim: z)
                   for arr in flat]

    def run_pallas(x_img):
        N = x_img.shape[0]
        return pl.pallas_call(
            kernel,
            out_shape=jax.ShapeDtypeStruct(
                (N, mf['OH'], mf['OW'] * mf['OC']), jnp.float32),
            grid=(N,),
            in_specs=([pl.BlockSpec(memory_space=pltpu.MemorySpace.SMEM)]
                      + [pl.BlockSpec((1, m0['H'], m0['W'] * m0['IC']),
                                      lambda n: (n, 0, 0))]
                      + const_specs),
            out_specs=pl.BlockSpec((1, mf['OH'], mf['OW'] * mf['OC']),
                                   lambda n: (n, 0, 0)),
            compiler_params=pltpu.CompilerParams(
                dimension_semantics=("parallel",)),
        )(alphas, x_img, *flat)

    @jax.jit
    def forward(x_nchw):
        if tuple(x_nchw.shape[-2:]) != tuple(input_shape):
            raise ValueError(
                f"Input shape {x_nchw.shape[-2:]} does not match expected "
                f"shape {tuple(input_shape)}")
        N = x_nchw.shape[0]
        # (N, 1, H, W) -> (N, H, W*1): the kernel's 2-D activation slab.
        x_img = x_nchw[:, 0, :, :].astype(jnp.float32)
        out = run_pallas(x_img)                        # (N, OHf, OWf*OCf)
        out = out.reshape(N, mf['OH'], mf['OW'], mf['OC'])
        return jnp.transpose(out, (0, 3, 1, 2))        # NHWC -> NCHW

    return forward


# --------------------------- pure-JAX reference ----------------------------

def reference_forward(x_nchw, params):
    h = x_nchw
    for (w, b, alpha, k, stride) in params:
        h = lax.conv_general_dilated(
            h, w, (stride, stride), [(k // 2, k // 2)] * 2,
            dimension_numbers=("NCHW", "OIHW", "NCHW"))
        h = h + b.reshape(1, -1, 1, 1)
        h = jnp.where(h > 0, h, alpha * h)
    return h


# ----------------------------------- main -----------------------------------

if __name__ == "__main__":
    key = jax.random.PRNGKey(0)
    key, kx = jax.random.split(key)

    INPUT_SHAPE = (64, 64)      # Encoder default is (256, 256); shrunk for test
    BATCH = 2

    params = build_encoder_params(
        key, kernel_size=11, kernel_decay=2, n_layers=1,
        start_channels=4, max_channels=32, n_blocks=6)

    x = jax.random.normal(kx, (BATCH, 1, *INPUT_SHAPE), jnp.float32)

    forward = make_encoder_forward(params, INPUT_SHAPE, use_bf16=USE_BF16)
    y = jax.block_until_ready(forward(x))

    y_ref = jax.block_until_ready(reference_forward(x, params))
    assert y.shape == y_ref.shape, (y.shape, y_ref.shape)
    tol = 5e-2 if USE_BF16 else 1e-3
    max_err = float(jnp.max(jnp.abs(y - y_ref)))
    assert jnp.allclose(y, y_ref, rtol=tol, atol=tol), max_err

    print("KERNEL_OK")
</pallas_src>

<mosaic_0001>
module attributes {stable_mosaic.version = 11 : i64} {
  func.func @kernel(%arg0: i32, %arg1: memref<6xf32, #tpu.memory_space<smem>>, %arg2: memref<1x64x64xf32, #tpu.memory_space<vmem>>, %arg3: memref<11x32x64xf32, #tpu.memory_space<vmem>>, %arg4: memref<11x64x128xf32, #tpu.memory_space<vmem>>, %arg5: memref<1x128xf32, #tpu.memory_space<vmem>>, %arg6: memref<9x16x32xf32, #tpu.memory_space<vmem>>, %arg7: memref<9x128x128xf32, #tpu.memory_space<vmem>>, %arg8: memref<1x128xf32, #tpu.memory_space<vmem>>, %arg9: memref<7x8x16xf32, #tpu.memory_space<vmem>>, %arg10: memref<7x128x128xf32, #tpu.memory_space<vmem>>, %arg11: memref<1x128xf32, #tpu.memory_space<vmem>>, %arg12: memref<5x4x8xf32, #tpu.memory_space<vmem>>, %arg13: memref<5x128x128xf32, #tpu.memory_space<vmem>>, %arg14: memref<1x128xf32, #tpu.memory_space<vmem>>, %arg15: memref<3x2x4xf32, #tpu.memory_space<vmem>>, %arg16: memref<3x128x64xf32, #tpu.memory_space<vmem>>, %arg17: memref<1x64xf32, #tpu.memory_space<vmem>>, %arg18: memref<3x1x2xf32, #tpu.memory_space<vmem>>, %arg19: memref<3x64x32xf32, #tpu.memory_space<vmem>>, %arg20: memref<1x32xf32, #tpu.memory_space<vmem>>, %arg21: memref<1x1x32xf32, #tpu.memory_space<vmem>>) attributes {dimension_semantics = [#tpu.dimension_semantics<parallel>], iteration_bounds = array<i64: 2>, scalar_prefetch = 0 : i64, scratch_operands = 0 : i64, tpu.core_type = #tpu.core_type<tc>, window_params = [{transform_indices = @transform_0, window_bounds = array<i64: 6>}, {transform_indices = @transform_1, window_bounds = array<i64: 1, 64, 64>}, {pipeline_mode = #tpu.pipeline_mode<synchronous>, transform_indices = @transform_2, window_bounds = array<i64: 11, 32, 64>}, {pipeline_mode = #tpu.pipeline_mode<synchronous>, transform_indices = @transform_3, window_bounds = array<i64: 11, 64, 128>}, {pipeline_mode = #tpu.pipeline_mode<synchronous>, transform_indices = @transform_4, window_bounds = array<i64: 1, 128>}, {pipeline_mode = #tpu.pipeline_mode<synchronous>, transform_indices = @transform_5, window_bounds = array<i64: 9, 16, 32>}, {pipeline_mode = #tpu.pipeline_mode<synchronous>, transform_indices = @transform_6, window_bounds = array<i64: 9, 128, 128>}, {pipeline_mode = #tpu.pipeline_mode<synchronous>, transform_indices = @transform_7, window_bounds = array<i64: 1, 128>}, {pipeline_mode = #tpu.pipeline_mode<synchronous>, transform_indices = @transform_8, window_bounds = array<i64: 7, 8, 16>}, {pipeline_mode = #tpu.pipeline_mode<synchronous>, transform_indices = @transform_9, window_bounds = array<i64: 7, 128, 128>}, {pipeline_mode = #tpu.pipeline_mode<synchronous>, transform_indices = @transform_10, window_bounds = array<i64: 1, 128>}, {pipeline_mode = #tpu.pipeline_mode<synchronous>, transform_indices = @transform_11, window_bounds = array<i64: 5, 4, 8>}, {pipeline_mode = #tpu.pipeline_mode<synchronous>, transform_indices = @transform_12, window_bounds = array<i64: 5, 128, 128>}, {pipeline_mode = #tpu.pipeline_mode<synchronous>, transform_indices = @transform_13, window_bounds = array<i64: 1, 128>}, {pipeline_mode = #tpu.pipeline_mode<synchronous>, transform_indices = @transform_14, window_bounds = array<i64: 3, 2, 4>}, {pipeline_mode = #tpu.pipeline_mode<synchronous>, transform_indices = @transform_15, window_bounds = array<i64: 3, 128, 64>}, {pipeline_mode = #tpu.pipeline_mode<synchronous>, transform_indices = @transform_16, window_bounds = array<i64: 1, 64>}, {pipeline_mode = #tpu.pipeline_mode<synchronous>, transform_indices = @transform_17, window_bounds = array<i64: 3, 1, 2>}, {pipeline_mode = #tpu.pipeline_mode<synchronous>, transform_indices = @transform_18, window_bounds = array<i64: 3, 64, 32>}, {pipeline_mode = #tpu.pipeline_mode<synchronous>, transform_indices = @transform_19, window_bounds = array<i64: 1, 32>}, {transform_indices = @transform_20, window_bounds = array<i64: 1, 1, 32>}]} {
    %c0 = arith.constant 0 : index
    %c0_0 = arith.constant 0 : index
    %c0_1 = arith.constant 0 : index
    %0 = vector.load %arg2[%c0, %c0_0, %c0_1] : memref<1x64x64xf32, #tpu.memory_space<vmem>>, vector<1x64x64xf32>
    %1 = vector.shape_cast %0 : vector<1x64x64xf32> to vector<64x64xf32>
    %cst = arith.constant 0.000000e+00 : f32
    %2 = vector.broadcast %cst : f32 to vector<32x128xf32>
    %c0_2 = arith.constant 0 : index
    %c0_3 = arith.constant 0 : index
    %c0_4 = arith.constant 0 : index
    %3 = vector.load %arg3[%c0_2, %c0_3, %c0_4] : memref<11x32x64xf32, #tpu.memory_space<vmem>>, vector<1x32x64xf32>
    %4 = vector.shape_cast %3 : vector<1x32x64xf32> to vector<32x64xf32>
    %cst_5 = arith.constant dense<0.000000e+00> : vector<32x64xf32>
    %5 = tpu.matmul %4, %1, %cst_5 {dimension_numbers = #tpu.dot_dimension_numbers<[1], [0], [0], [1], [0, 0, 1, 1], [], []>} : vector<32x64xf32>, vector<64x64xf32>, vector<32x64xf32> -> vector<32x64xf32>
    %c0_6 = arith.constant 0 : index
    %c0_7 = arith.constant 0 : index
    %c0_8 = arith.constant 0 : index
    %6 = vector.load %arg4[%c0_6, %c0_7, %c0_8] : memref<11x64x128xf32, #tpu.memory_space<vmem>>, vector<1x64x128xf32>
    %7 = vector.shape_cast %6 : vector<1x64x128xf32> to vector<64x128xf32>
    %cst_9 = arith.constant dense<0.000000e+00> : vector<32x128xf32>
    %8 = tpu.matmul %5, %7, %cst_9 {dimension_numbers = #tpu.dot_dimension_numbers<[1], [0], [0], [1], [0, 0, 1, 1], [], []>} : vector<32x64xf32>, vector<64x128xf32>, vector<32x128xf32> -> vector<32x128xf32>
    %9 = arith.addf %2, %8 : vector<32x128xf32>
    %c1 = arith.constant 1 : index
    %c0_10 = arith.constant 0 : index
    %c0_11 = arith.constant 0 : index
    %10 = vector.load %arg3[%c1, %c0_10, %c0_11] : memref<11x32x64xf32, #tpu.memory_space<vmem>>, vector<1x32x64xf32>
    %11 = vector.shape_cast %10 : vector<1x32x64xf32> to vector<32x64xf32>
    %cst_12 = arith.constant dense<0.000000e+00> : vector<32x64xf32>
    %12 = tpu.matmul %11, %1, %cst_12 {dimension_numbers = #tpu.dot_dimension_numbers<[1], [0], [0], [1], [0, 0, 1, 1], [], []>} : vector<32x64xf32>, vector<64x64xf32>, vector<32x64xf32> -> vector<32x64xf32>
    %c1_13 = arith.constant 1 : index
    %c0_14 = arith.constant 0 : index
    %c0_15 = arith.constant 0 : index
    %13 = vector.load %arg4[%c1_13, %c0_14, %c0_15] : memref<11x64x128xf32, #tpu.memory_space<vmem>>, vector<1x64x128xf32>
    %14 = vector.shape_cast %13 : vector<1x64x128xf32> to vector<64x128xf32>
    %cst_16 = arith.constant dense<0.000000e+00> : vector<32x128xf32>
    %15 = tpu.matmul %12, %14, %cst_16 {dimension_numbers = #tpu.dot_dimension_numbers<[1], [0], [0], [1], [0, 0, 1, 1], [], []>} : vector<32x64xf32>, vector<64x128xf32>, vector<32x128xf32> -> vector<32x128xf32>
    %16 = arith.addf %9, %15 : vector<32x128xf32>
    %c2 = arith.constant 2 : index
    %c0_17 = arith.constant 0 : index
    %c0_18 = arith.constant 0 : index
    %17 = vector.load %arg3[%c2, %c0_17, %c0_18] : memref<11x32x64xf32, #tpu.memory_space<vmem>>, vector<1x32x64xf32>
    %18 = vector.shape_cast %17 : vector<1x32x64xf32> to vector<32x64xf32>
    %cst_19 = arith.constant dense<0.000000e+00> : vector<32x64xf32>
    %19 = tpu.matmul %18, %1, %cst_19 {dimension_numbers = #tpu.dot_dimension_numbers<[1], [0], [0], [1], [0, 0, 1, 1], [], []>} : vector<32x64xf32>, vector<64x64xf32>, vector<32x64xf32> -> vector<32x64xf32>
    %c2_20 = arith.constant 2 : index
    %c0_21 = arith.constant 0 : index
    %c0_22 = arith.constant 0 : index
    %20 = vector.load %arg4[%c2_20, %c0_21, %c0_22] : memref<11x64x128xf32, #tpu.memory_space<vmem>>, vector<1x64x128xf32>
    %21 = vector.shape_cast %20 : vector<1x64x128xf32> to vector<64x128xf32>
    %cst_23 = arith.constant dense<0.000000e+00> : vector<32x128xf32>
    %22 = tpu.matmul %19, %21, %cst_23 {dimension_numbers = #tpu.dot_dimension_numbers<[1], [0], [0], [1], [0, 0, 1, 1], [], []>} : vector<32x64xf32>, vector<64x128xf32>, vector<32x128xf32> -> vector<32x128xf32>
    %23 = arith.addf %16, %22 : vector<32x128xf32>
    %c3 = arith.constant 3 : index
    %c0_24 = arith.constant 0 : index
    %c0_25 = arith.constant 0 : index
    %24 = vector.load %arg3[%c3, %c0_24, %c0_25] : memref<11x32x64xf32, #tpu.memory_space<vmem>>, vector<1x32x64xf32>
    %25 = vector.shape_cast %24 : vector<1x32x64xf32> to vector<32x64xf32>
    %cst_26 = arith.constant dense<0.000000e+00> : vector<32x64xf32>
    %26 = tpu.matmul %25, %1, %cst_26 {dimension_numbers = #tpu.dot_dimension_numbers<[1], [0], [0], [1], [0, 0, 1, 1], [], []>} : vector<32x64xf32>, vector<64x64xf32>, vector<32x64xf32> -> vector<32x64xf32>
    %c3_27 = arith.constant 3 : index
    %c0_28 = arith.constant 0 : index
    %c0_29 = arith.constant 0 : index
    %27 = vector.load %arg4[%c3_27, %c0_28, %c0_29] : memref<11x64x128xf32, #tpu.memory_space<vmem>>, vector<1x64x128xf32>
    %28 = vector.shape_cast %27 : vector<1x64x128xf32> to vector<64x128xf32>
    %cst_30 = arith.constant dense<0.000000e+00> : vector<32x128xf32>
    %29 = tpu.matmul %26, %28, %cst_30 {dimension_numbers = #tpu.dot_dimension_numbers<[1], [0], [0], [1], [0, 0, 1, 1], [], []>} : vector<32x64xf32>, vector<64x128xf32>, vector<32x128xf32> -> vector<32x128xf32>
    %30 = arith.addf %23, %29 : vector<32x128xf32>
    %c4 = arith.constant 4 : index
    %c0_31 = arith.constant 0 : index
    %c0_32 = arith.constant 0 : index
    %31 = vector.load %arg3[%c4, %c0_31, %c0_32] : memref<11x32x64xf32, #tpu.memory_space<vmem>>, vector<1x32x64xf32>
    %32 = vector.shape_cast %31 : vector<1x32x64xf32> to vector<32x64xf32>
    %cst_33 = arith.constant dense<0.000000e+00> : vector<32x64xf32>
    %33 = tpu.matmul %32, %1, %cst_33 {dimension_numbers = #tpu.dot_dimension_numbers<[1], [0], [0], [1], [0, 0, 1, 1], [], []>} : vector<32x64xf32>, vector<64x64xf32>, vector<32x64xf32> -> vector<32x64xf32>
    %c4_34 = arith.constant 4 : index
    %c0_35 = arith.constant 0 : index
    %c0_36 = arith.constant 0 : index
    %34 = vector.load %arg4[%c4_34, %c0_35, %c0_36] : memref<11x64x128xf32, #tpu.memory_space<vmem>>, vector<1x64x128xf32>
    %35 = vector.shape_cast %34 : vector<1x64x128xf32> to vector<64x128xf32>
    %cst_37 = arith.constant dense<0.000000e+00> : vector<32x128xf32>
    %36 = tpu.matmul %33, %35, %cst_37 {dimension_numbers = #tpu.dot_dimension_numbers<[1], [0], [0], [1], [0, 0, 1, 1], [], []>} : vector<32x64xf32>, vector<64x128xf32>, vector<32x128xf32> -> vector<32x128xf32>
    %37 = arith.addf %30, %36 : vector<32x128xf32>
    %c5 = arith.constant 5 : index
    %c0_38 = arith.constant 0 : index
    %c0_39 = arith.constant 0 : index
    %38 = vector.load %arg3[%c5, %c0_38, %c0_39] : memref<11x32x64xf32, #tpu.memory_space<vmem>>, vector<1x32x64xf32>
    %39 = vector.shape_cast %38 : vector<1x32x64xf32> to vector<32x64xf32>
    %cst_40 = arith.constant dense<0.000000e+00> : vector<32x64xf32>
    %40 = tpu.matmul %39, %1, %cst_40 {dimension_numbers = #tpu.dot_dimension_numbers<[1], [0], [0], [1], [0, 0, 1, 1], [], []>} : vector<32x64xf32>, vector<64x64xf32>, vector<32x64xf32> -> vector<32x64xf32>
    %c5_41 = arith.constant 5 : index
    %c0_42 = arith.constant 0 : index
    %c0_43 = arith.constant 0 : index
    %41 = vector.load %arg4[%c5_41, %c0_42, %c0_43] : memref<11x64x128xf32, #tpu.memory_space<vmem>>, vector<1x64x128xf32>
    %42 = vector.shape_cast %41 : vector<1x64x128xf32> to vector<64x128xf32>
    %cst_44 = arith.constant dense<0.000000e+00> : vector<32x128xf32>
    %43 = tpu.matmul %40, %42, %cst_44 {dimension_numbers = #tpu.dot_dimension_numbers<[1], [0], [0], [1], [0, 0, 1, 1], [], []>} : vector<32x64xf32>, vector<64x128xf32>, vector<32x128xf32> -> vector<32x128xf32>
    %44 = arith.addf %37, %43 : vector<32x128xf32>
    %c6 = arith.constant 6 : index
    %c0_45 = arith.constant 0 : index
    %c0_46 = arith.constant 0 : index
    %45 = vector.load %arg3[%c6, %c0_45, %c0_46] : memref<11x32x64xf32, #tpu.memory_space<vmem>>, vector<1x32x64xf32>
    %46 = vector.shape_cast %45 : vector<1x32x64xf32> to vector<32x64xf32>
    %cst_47 = arith.constant dense<0.000000e+00> : vector<32x64xf32>
    %47 = tpu.matmul %46, %1, %cst_47 {dimension_numbers = #tpu.dot_dimension_numbers<[1], [0], [0], [1], [0, 0, 1, 1], [], []>} : vector<32x64xf32>, vector<64x64xf32>, vector<32x64xf32> -> vector<32x64xf32>
    %c6_48 = arith.constant 6 : index
    %c0_49 = arith.constant 0 : index
    %c0_50 = arith.constant 0 : index
    %48 = vector.load %arg4[%c6_48, %c0_49, %c0_50] : memref<11x64x128xf32, #tpu.memory_space<vmem>>, vector<1x64x128xf32>
    %49 = vector.shape_cast %48 : vector<1x64x128xf32> to vector<64x128xf32>
    %cst_51 = arith.constant dense<0.000000e+00> : vector<32x128xf32>
    %50 = tpu.matmul %47, %49, %cst_51 {dimension_numbers = #tpu.dot_dimension_numbers<[1], [0], [0], [1], [0, 0, 1, 1], [], []>} : vector<32x64xf32>, vector<64x128xf32>, vector<32x128xf32> -> vector<32x128xf32>
    %51 = arith.addf %44, %50 : vector<32x128xf32>
    %c7 = arith.constant 7 : index
    %c0_52 = arith.constant 0 : index
    %c0_53 = arith.constant 0 : index
    %52 = vector.load %arg3[%c7, %c0_52, %c0_53] : memref<11x32x64xf32, #tpu.memory_space<vmem>>, vector<1x32x64xf32>
    %53 = vector.shape_cast %52 : vector<1x32x64xf32> to vector<32x64xf32>
    %cst_54 = arith.constant dense<0.000000e+00> : vector<32x64xf32>
    %54 = tpu.matmul %53, %1, %cst_54 {dimension_numbers = #tpu.dot_dimension_numbers<[1], [0], [0], [1], [0, 0, 1, 1], [], []>} : vector<32x64xf32>, vector<64x64xf32>, vector<32x64xf32> -> vector<32x64xf32>
    %c7_55 = arith.constant 7 : index
    %c0_56 = arith.constant 0 : index
    %c0_57 = arith.constant 0 : index
    %55 = vector.load %arg4[%c7_55, %c0_56, %c0_57] : memref<11x64x128xf32, #tpu.memory_space<vmem>>, vector<1x64x128xf32>
    %56 = vector.shape_cast %55 : vector<1x64x128xf32> to vector<64x128xf32>
    %cst_58 = arith.constant dense<0.000000e+00> : vector<32x128xf32>
    %57 = tpu.matmul %54, %56, %cst_58 {dimension_numbers = #tpu.dot_dimension_numbers<[1], [0], [0], [1], [0, 0, 1, 1], [], []>} : vector<32x64xf32>, vector<64x128xf32>, vector<32x128xf32> -> vector<32x128xf32>
    %58 = arith.addf %51, %57 : vector<32x128xf32>
    %c8 = arith.constant 8 : index
    %c0_59 = arith.constant 0 : index
    %c0_60 = arith.constant 0 : index
    %59 = vector.load %arg3[%c8, %c0_59, %c0_60] : memref<11x32x64xf32, #tpu.memory_space<vmem>>, vector<1x32x64xf32>
    %60 = vector.shape_cast %59 : vector<1x32x64xf32> to vector<32x64xf32>
    %cst_61 = arith.constant dense<0.000000e+00> : vector<32x64xf32>
    %61 = tpu.matmul %60, %1, %cst_61 {dimension_numbers = #tpu.dot_dimension_numbers<[1], [0], [0], [1], [0, 0, 1, 1], [], []>} : vector<32x64xf32>, vector<64x64xf32>, vector<32x64xf32> -> vector<32x64xf32>
    %c8_62 = arith.constant 8 : index
    %c0_63 = arith.constant 0 : index
    %c0_64 = arith.constant 0 : index
    %62 = vector.load %arg4[%c8_62, %c0_63, %c0_64] : memref<11x64x128xf32, #tpu.memory_space<vmem>>, vector<1x64x128xf32>
    %63 = vector.shape_cast %62 : vector<1x64x128xf32> to vector<64x128xf32>
    %cst_65 = arith.constant dense<0.000000e+00> : vector<32x128xf32>
    %64 = tpu.matmul %61, %63, %cst_65 {dimension_numbers = #tpu.dot_dimension_numbers<[1], [0], [0], [1], [0, 0, 1, 1], [], []>} : vector<32x64xf32>, vector<64x128xf32>, vector<32x128xf32> -> vector<32x128xf32>
    %65 = arith.addf %58, %64 : vector<32x128xf32>
    %c9 = arith.constant 9 : index
    %c0_66 = arith.constant 0 : index
    %c0_67 = arith.constant 0 : index
    %66 = vector.load %arg3[%c9, %c0_66, %c0_67] : memref<11x32x64xf32, #tpu.memory_space<vmem>>, vector<1x32x64xf32>
    %67 = vector.shape_cast %66 : vector<1x32x64xf32> to vector<32x64xf32>
    %cst_68 = arith.constant dense<0.000000e+00> : vector<32x64xf32>
    %68 = tpu.matmul %67, %1, %cst_68 {dimension_numbers = #tpu.dot_dimension_numbers<[1], [0], [0], [1], [0, 0, 1, 1], [], []>} : vector<32x64xf32>, vector<64x64xf32>, vector<32x64xf32> -> vector<32x64xf32>
    %c9_69 = arith.constant 9 : index
    %c0_70 = arith.constant 0 : index
    %c0_71 = arith.constant 0 : index
    %69 = vector.load %arg4[%c9_69, %c0_70, %c0_71] : memref<11x64x128xf32, #tpu.memory_space<vmem>>, vector<1x64x128xf32>
    %70 = vector.shape_cast %69 : vector<1x64x128xf32> to vector<64x128xf32>
    %cst_72 = arith.constant dense<0.000000e+00> : vector<32x128xf32>
    %71 = tpu.matmul %68, %70, %cst_72 {dimension_numbers = #tpu.dot_dimension_numbers<[1], [0], [0], [1], [0, 0, 1, 1], [], []>} : vector<32x64xf32>, vector<64x128xf32>, vector<32x128xf32> -> vector<32x128xf32>
    %72 = arith.addf %65, %71 : vector<32x128xf32>
    %c10 = arith.constant 10 : index
    %c0_73 = arith.constant 0 : index
    %c0_74 = arith.constant 0 : index
    %73 = vector.load %arg3[%c10, %c0_73, %c0_74] : memref<11x32x64xf32, #tpu.memory_space<vmem>>, vector<1x32x64xf32>
    %74 = vector.shape_cast %73 : vector<1x32x64xf32> to vector<32x64xf32>
    %cst_75 = arith.constant dense<0.000000e+00> : vector<32x64xf32>
    %75 = tpu.matmul %74, %1, %cst_75 {dimension_numbers = #tpu.dot_dimension_numbers<[1], [0], [0], [1], [0, 0, 1, 1], [], []>} : vector<32x64xf32>, vector<64x64xf32>, vector<32x64xf32> -> vector<32x64xf32>
    %c10_76 = arith.constant 10 : index
    %c0_77 = arith.constant 0 : index
    %c0_78 = arith.constant 0 : index
    %76 = vector.load %arg4[%c10_76, %c0_77, %c0_78] : memref<11x64x128xf32, #tpu.memory_space<vmem>>, vector<1x64x128xf32>
    %77 = vector.shape_cast %76 : vector<1x64x128xf32> to vector<64x128xf32>
    %cst_79 = arith.constant dense<0.000000e+00> : vector<32x128xf32>
    %78 = tpu.matmul %75, %77, %cst_79 {dimension_numbers = #tpu.dot_dimension_numbers<[1], [0], [0], [1], [0, 0, 1, 1], [], []>} : vector<32x64xf32>, vector<64x128xf32>, vector<32x128xf32> -> vector<32x128xf32>
    %79 = arith.addf %72, %78 : vector<32x128xf32>
    %c0_80 = arith.constant 0 : index
    %c0_81 = arith.constant 0 : index
    %80 = vector.load %arg5[%c0_80, %c0_81] : memref<1x128xf32, #tpu.memory_space<vmem>>, vector<1x128xf32>
    %81 = vector.broadcast %80 : vector<1x128xf32> to vector<32x128xf32>
    %82 = arith.addf %79, %81 : vector<32x128xf32>
    %cst_82 = arith.constant 0.000000e+00 : f32
    %83 = vector.broadcast %cst_82 : f32 to vector<32x128xf32>
    %84 = arith.cmpf ogt, %82, %83 : vector<32x128xf32>
    %c0_83 = arith.constant 0 : index
    %85 = memref.load %arg1[%c0_83] : memref<6xf32, #tpu.memory_space<smem>>
    %86 = vector.broadcast %85 : f32 to vector<32x128xf32>
    %87 = arith.mulf %86, %82 : vector<32x128xf32>
    %88 = arith.select %84, %82, %87 : vector<32x128xi1>, vector<32x128xf32>
    %cst_84 = arith.constant 0.000000e+00 : f32
    %89 = vector.broadcast %cst_84 : f32 to vector<16x128xf32>
    %c0_85 = arith.constant 0 : index
    %c0_86 = arith.constant 0 : index
    %c0_87 = arith.constant 0 : index
    %90 = vector.load %arg6[%c0_85, %c0_86, %c0_87] : memref<9x16x32xf32, #tpu.memory_space<vmem>>, vector<1x16x32xf32>
    %91 = vector.shape_cast %90 : vector<1x16x32xf32> to vector<16x32xf32>
    %cst_88 = arith.constant dense<0.000000e+00> : vector<16x128xf32>
    %92 = tpu.matmul %91, %88, %cst_88 {dimension_numbers = #tpu.dot_dimension_numbers<[1], [0], [0], [1], [0, 0, 1, 1], [], []>} : vector<16x32xf32>, vector<32x128xf32>, vector<16x128xf32> -> vector<16x128xf32>
    %c0_89 = arith.constant 0 : index
    %c0_90 = arith.constant 0 : index
    %c0_91 = arith.constant 0 : index
    %93 = vector.load %arg7[%c0_89, %c0_90, %c0_91] : memref<9x128x128xf32, #tpu.memory_space<vmem>>, vector<1x128x128xf32>
    %94 = vector.shape_cast %93 : vector<1x128x128xf32> to vector<128x128xf32>
    %cst_92 = arith.constant dense<0.000000e+00> : vector<16x128xf32>
    %95 = tpu.matmul %92, %94, %cst_92 {dimension_numbers = #tpu.dot_dimension_numbers<[1], [0], [0], [1], [0, 0, 1, 1], [], []>} : vector<16x128xf32>, vector<128x128xf32>, vector<16x128xf32> -> vector<16x128xf32>
    %96 = arith.addf %89, %95 : vector<16x128xf32>
    %c1_93 = arith.constant 1 : index
    %c0_94 = arith.constant 0 : index
    %c0_95 = arith.constant 0 : index
    %97 = vector.load %arg6[%c1_93, %c0_94, %c0_95] : memref<9x16x32xf32, #tpu.memory_space<vmem>>, vector<1x16x32xf32>
    %98 = vector.shape_cast %97 : vector<1x16x32xf32> to vector<16x32xf32>
    %cst_96 = arith.constant dense<0.000000e+00> : vector<16x128xf32>
    %99 = tpu.matmul %98, %88, %cst_96 {dimension_numbers = #tpu.dot_dimension_numbers<[1], [0], [0], [1], [0, 0, 1, 1], [], []>} : vector<16x32xf32>, vector<32x128xf32>, vector<16x128xf32> -> vector<16x128xf32>
    %c1_97 = arith.constant 1 : index
    %c0_98 = arith.constant 0 : index
    %c0_99 = arith.constant 0 : index
    %100 = vector.load %arg7[%c1_97, %c0_98, %c0_99] : memref<9x128x128xf32, #tpu.memory_space<vmem>>, vector<1x128x128xf32>
    %101 = vector.shape_cast %100 : vector<1x128x128xf32> to vector<128x128xf32>
    %cst_100 = arith.constant dense<0.000000e+00> : vector<16x128xf32>
    %102 = tpu.matmul %99, %101, %cst_100 {dimension_numbers = #tpu.dot_dimension_numbers<[1], [0], [0], [1], [0, 0, 1, 1], [], []>} : vector<16x128xf32>, vector<128x128xf32>, vector<16x128xf32> -> vector<16x128xf32>
    %103 = arith.addf %96, %102 : vector<16x128xf32>
    %c2_101 = arith.constant 2 : index
    %c0_102 = arith.constant 0 : index
    %c0_103 = arith.constant 0 : index
    %104 = vector.load %arg6[%c2_101, %c0_102, %c0_103] : memref<9x16x32xf32, #tpu.memory_space<vmem>>, vector<1x16x32xf32>
    %105 = vector.shape_cast %104 : vector<1x16x32xf32> to vector<16x32xf32>
    %cst_104 = arith.constant dense<0.000000e+00> : vector<16x128xf32>
    %106 = tpu.matmul %105, %88, %cst_104 {dimension_numbers = #tpu.dot_dimension_numbers<[1], [0], [0], [1], [0, 0, 1, 1], [], []>} : vector<16x32xf32>, vector<32x128xf32>, vector<16x128xf32> -> vector<16x128xf32>
    %c2_105 = arith.constant 2 : index
    %c0_106 = arith.constant 0 : index
    %c0_107 = arith.constant 0 : index
    %107 = vector.load %arg7[%c2_105, %c0_106, %c0_107] : memref<9x128x128xf32, #tpu.memory_space<vmem>>, vector<1x128x128xf32>
    %108 = vector.shape_cast %107 : vector<1x128x128xf32> to vector<128x128xf32>
    %cst_108 = arith.constant dense<0.000000e+00> : vector<16x128xf32>
    %109 = tpu.matmul %106, %108, %cst_108 {dimension_numbers = #tpu.dot_dimension_numbers<[1], [0], [0], [1], [0, 0, 1, 1], [], []>} : vector<16x128xf32>, vector<128x128xf32>, vector<16x128xf32> -> vector<16x128xf32>
    %110 = arith.addf %103, %109 : vector<16x128xf32>
    %c3_109 = arith.constant 3 : index
    %c0_110 = arith.constant 0 : index
    %c0_111 = arith.constant 0 : index
    %111 = vector.load %arg6[%c3_109, %c0_110, %c0_111] : memref<9x16x32xf32, #tpu.memory_space<vmem>>, vector<1x16x32xf32>
    %112 = vector.shape_cast %111 : vector<1x16x32xf32> to vector<16x32xf32>
    %cst_112 = arith.constant dense<0.000000e+00> : vector<16x128xf32>
    %113 = tpu.matmul %112, %88, %cst_112 {dimension_numbers = #tpu.dot_dimension_numbers<[1], [0], [0], [1], [0, 0, 1, 1], [], []>} : vector<16x32xf32>, vector<32x128xf32>, vector<16x128xf32> -> vector<16x128xf32>
    %c3_113 = arith.constant 3 : index
    %c0_114 = arith.constant 0 : index
    %c0_115 = arith.constant 0 : index
    %114 = vector.load %arg7[%c3_113, %c0_114, %c0_115] : memref<9x128x128xf32, #tpu.memory_space<vmem>>, vector<1x128x128xf32>
    %115 = vector.shape_cast %114 : vector<1x128x128xf32> to vector<128x128xf32>
    %cst_116 = arith.constant dense<0.000000e+00> : vector<16x128xf32>
    %116 = tpu.matmul %113, %115, %cst_116 {dimension_numbers = #tpu.dot_dimension_numbers<[1], [0], [0], [1], [0, 0, 1, 1], [], []>} : vector<16x128xf32>, vector<128x128xf32>, vector<16x128xf32> -> vector<16x128xf32>
    %117 = arith.addf %110, %116 : vector<16x128xf32>
    %c4_117 = arith.constant 4 : index
    %c0_118 = arith.constant 0 : index
    %c0_119 = arith.constant 0 : index
    %118 = vector.load %arg6[%c4_117, %c0_118, %c0_119] : memref<9x16x32xf32, #tpu.memory_space<vmem>>, vector<1x16x32xf32>
    %119 = vector.shape_cast %118 : vector<1x16x32xf32> to vector<16x32xf32>
    %cst_120 = arith.constant dense<0.000000e+00> : vector<16x128xf32>
    %120 = tpu.matmul %119, %88, %cst_120 {dimension_numbers = #tpu.dot_dimension_numbers<[1], [0], [0], [1], [0, 0, 1, 1], [], []>} : vector<16x32xf32>, vector<32x128xf32>, vector<16x128xf32> -> vector<16x128xf32>
    %c4_121 = arith.constant 4 : index
    %c0_122 = arith.constant 0 : index
    %c0_123 = arith.constant 0 : index
    %121 = vector.load %arg7[%c4_121, %c0_122, %c0_123] : memref<9x128x128xf32, #tpu.memory_space<vmem>>, vector<1x128x128xf32>
    %122 = vector.shape_cast %121 : vector<1x128x128xf32> to vector<128x128xf32>
    %cst_124 = arith.constant dense<0.000000e+00> : vector<16x128xf32>
    %123 = tpu.matmul %120, %122, %cst_124 {dimension_numbers = #tpu.dot_dimension_numbers<[1], [0], [0], [1], [0, 0, 1, 1], [], []>} : vector<16x128xf32>, vector<128x128xf32>, vector<16x128xf32> -> vector<16x128xf32>
    %124 = arith.addf %117, %123 : vector<16x128xf32>
    %c5_125 = arith.constant 5 : index
    %c0_126 = arith.constant 0 : index
    %c0_127 = arith.constant 0 : index
    %125 = vector.load %arg6[%c5_125, %c0_126, %c0_127] : memref<9x16x32xf32, #tpu.memory_space<vmem>>, vector<1x16x32xf32>
    %126 = vector.shape_cast %125 : vector<1x16x32xf32> to vector<16x32xf32>
    %cst_128 = arith.constant dense<0.000000e+00> : vector<16x128xf32>
    %127 = tpu.matmul %126, %88, %cst_128 {dimension_numbers = #tpu.dot_dimension_numbers<[1], [0], [0], [1], [0, 0, 1, 1], [], []>} : vector<16x32xf32>, vector<32x128xf32>, vector<16x128xf32> -> vector<16x128xf32>
    %c5_129 = arith.constant 5 : index
    %c0_130 = arith.constant 0 : index
    %c0_131 = arith.constant 0 : index
    %128 = vector.load %arg7[%c5_129, %c0_130, %c0_131] : memref<9x128x128xf32, #tpu.memory_space<vmem>>, vector<1x128x128xf32>
    %129 = vector.shape_cast %128 : vector<1x128x128xf32> to vector<128x128xf32>
    %cst_132 = arith.constant dense<0.000000e+00> : vector<16x128xf32>
    %130 = tpu.matmul %127, %129, %cst_132 {dimension_numbers = #tpu.dot_dimension_numbers<[1], [0], [0], [1], [0, 0, 1, 1], [], []>} : vector<16x128xf32>, vector<128x128xf32>, vector<16x128xf32> -> vector<16x128xf32>
    %131 = arith.addf %124, %130 : vector<16x128xf32>
    %c6_133 = arith.constant 6 : index
    %c0_134 = arith.constant 0 : index
    %c0_135 = arith.constant 0 : index
    %132 = vector.load %arg6[%c6_133, %c0_134, %c0_135] : memref<9x16x32xf32, #tpu.memory_space<vmem>>, vector<1x16x32xf32>
    %133 = vector.shape_cast %132 : vector<1x16x32xf32> to vector<16x32xf32>
    %cst_136 = arith.constant dense<0.000000e+00> : vector<16x128xf32>
    %134 = tpu.matmul %133, %88, %cst_136 {dimension_numbers = #tpu.dot_dimension_numbers<[1], [0], [0], [1], [0, 0, 1, 1], [], []>} : vector<16x32xf32>, vector<32x128xf32>, vector<16x128xf32> -> vector<16x128xf32>
    %c6_137 = arith.constant 6 : index
    %c0_138 = arith.constant 0 : index
    %c0_139 = arith.constant 0 : index
    %135 = vector.load %arg7[%c6_137, %c0_138, %c0_139] : memref<9x128x128xf32, #tpu.memory_space<vmem>>, vector<1x128x128xf32>
    %136 = vector.shape_cast %135 : vector<1x128x128xf32> to vector<128x128xf32>
    %cst_140 = arith.constant dense<0.000000e+00> : vector<16x128xf32>
    %137 = tpu.matmul %134, %136, %cst_140 {dimension_numbers = #tpu.dot_dimension_numbers<[1], [0], [0], [1], [0, 0, 1, 1], [], []>} : vector<16x128xf32>, vector<128x128xf32>, vector<16x128xf32> -> vector<16x128xf32>
    %138 = arith.addf %131, %137 : vector<16x128xf32>
    %c7_141 = arith.constant 7 : index
    %c0_142 = arith.constant 0 : index
    %c0_143 = arith.constant 0 : index
    %139 = vector.load %arg6[%c7_141, %c0_142, %c0_143] : memref<9x16x32xf32, #tpu.memory_space<vmem>>, vector<1x16x32xf32>
    %140 = vector.shape_cast %139 : vector<1x16x32xf32> to vector<16x32xf32>
    %cst_144 = arith.constant dense<0.000000e+00> : vector<16x128xf32>
    %141 = tpu.matmul %140, %88, %cst_144 {dimension_numbers = #tpu.dot_dimension_numbers<[1], [0], [0], [1], [0, 0, 1, 1], [], []>} : vector<16x32xf32>, vector<32x128xf32>, vector<16x128xf32> -> vector<16x128xf32>
    %c7_145 = arith.constant 7 : index
    %c0_146 = arith.constant 0 : index
    %c0_147 = arith.constant 0 : index
    %142 = vector.load %arg7[%c7_145, %c0_146, %c0_147] : memref<9x128x128xf32, #tpu.memory_space<vmem>>, vector<1x128x128xf32>
    %143 = vector.shape_cast %142 : vector<1x128x128xf32> to vector<128x128xf32>
    %cst_148 = arith.constant dense<0.000000e+00> : vector<16x128xf32>
    %144 = tpu.matmul %141, %143, %cst_148 {dimension_numbers = #tpu.dot_dimension_numbers<[1], [0], [0], [1], [0, 0, 1, 1], [], []>} : vector<16x128xf32>, vector<128x128xf32>, vector<16x128xf32> -> vector<16x128xf32>
    %145 = arith.addf %138, %144 : vector<16x128xf32>
    %c8_149 = arith.constant 8 : index
    %c0_150 = arith.constant 0 : index
    %c0_151 = arith.constant 0 : index
    %146 = vector.load %arg6[%c8_149, %c0_150, %c0_151] : memref<9x16x32xf32, #tpu.memory_space<vmem>>, vector<1x16x32xf32>
    %147 = vector.shape_cast %146 : vector<1x16x32xf32> to vector<16x32xf32>
    %cst_152 = arith.constant dense<0.000000e+00> : vector<16x128xf32>
    %148 = tpu.matmul %147, %88, %cst_152 {dimension_numbers = #tpu.dot_dimension_numbers<[1], [0], [0], [1], [0, 0, 1, 1], [], []>} : vector<16x32xf32>, vector<32x128xf32>, vector<16x128xf32> -> vector<16x128xf32>
    %c8_153 = arith.constant 8 : index
    %c0_154 = arith.constant 0 : index
    %c0_155 = arith.constant 0 : index
    %149 = vector.load %arg7[%c8_153, %c0_154, %c0_155] : memref<9x128x128xf32, #tpu.memory_space<vmem>>, vector<1x128x128xf32>
    %150 = vector.shape_cast %149 : vector<1x128x128xf32> to vector<128x128xf32>
    %cst_156 = arith.constant dense<0.000000e+00> : vector<16x128xf32>
    %151 = tpu.matmul %148, %150, %cst_156 {dimension_numbers = #tpu.dot_dimension_numbers<[1], [0], [0], [1], [0, 0, 1, 1], [], []>} : vector<16x128xf32>, vector<128x128xf32>, vector<16x128xf32> -> vector<16x128xf32>
    %152 = arith.addf %145, %151 : vector<16x128xf32>
    %c0_157 = arith.constant 0 : index
    %c0_158 = arith.constant 0 : index
    %153 = vector.load %arg8[%c0_157, %c0_158] : memref<1x128xf32, #tpu.memory_space<vmem>>, vector<1x128xf32>
    %154 = vector.broadcast %153 : vector<1x128xf32> to vector<16x128xf32>
    %155 = arith.addf %152, %154 : vector<16x128xf32>
    %cst_159 = arith.constant 0.000000e+00 : f32
    %156 = vector.broadcast %cst_159 : f32 to vector<16x128xf32>
    %157 = arith.cmpf ogt, %155, %156 : vector<16x128xf32>
    %c1_160 = arith.constant 1 : index
    %158 = memref.load %arg1[%c1_160] : memref<6xf32, #tpu.memory_space<smem>>
    %159 = vector.broadcast %158 : f32 to vector<16x128xf32>
    %160 = arith.mulf %159, %155 : vector<16x128xf32>
    %161 = arith.select %157, %155, %160 : vector<16x128xi1>, vector<16x128xf32>
    %cst_161 = arith.constant 0.000000e+00 : f32
    %162 = vector.broadcast %cst_161 : f32 to vector<8x128xf32>
    %c0_162 = arith.constant 0 : index
    %c0_163 = arith.constant 0 : index
    %c0_164 = arith.constant 0 : index
    %163 = vector.load %arg9[%c0_162, %c0_163, %c0_164] : memref<7x8x16xf32, #tpu.memory_space<vmem>>, vector<1x8x16xf32>
    %164 = vector.shape_cast %163 : vector<1x8x16xf32> to vector<8x16xf32>
    %cst_165 = arith.constant dense<0.000000e+00> : vector<8x128xf32>
    %165 = tpu.matmul %164, %161, %cst_165 {dimension_numbers = #tpu.dot_dimension_numbers<[1], [0], [0], [1], [0, 0, 1, 1], [], []>} : vector<8x16xf32>, vector<16x128xf32>, vector<8x128xf32> -> vector<8x128xf32>
    %c0_166 = arith.constant 0 : index
    %c0_167 = arith.constant 0 : index
    %c0_168 = arith.constant 0 : index
    %166 = vector.load %arg10[%c0_166, %c0_167, %c0_168] : memref<7x128x128xf32, #tpu.memory_space<vmem>>, vector<1x128x128xf32>
    %167 = vector.shape_cast %166 : vector<1x128x128xf32> to vector<128x128xf32>
    %cst_169 = arith.constant dense<0.000000e+00> : vector<8x128xf32>
    %168 = tpu.matmul %165, %167, %cst_169 {dimension_numbers = #tpu.dot_dimension_numbers<[1], [0], [0], [1], [0, 0, 1, 1], [], []>} : vector<8x128xf32>, vector<128x128xf32>, vector<8x128xf32> -> vector<8x128xf32>
    %169 = arith.addf %162, %168 : vector<8x128xf32>
    %c1_170 = arith.constant 1 : index
    %c0_171 = arith.constant 0 : index
    %c0_172 = arith.constant 0 : index
    %170 = vector.load %arg9[%c1_170, %c0_171, %c0_172] : memref<7x8x16xf32, #tpu.memory_space<vmem>>, vector<1x8x16xf32>
    %171 = vector.shape_cast %170 : vector<1x8x16xf32> to vector<8x16xf32>
    %cst_173 = arith.constant dense<0.000000e+00> : vector<8x128xf32>
    %172 = tpu.matmul %171, %161, %cst_173 {dimension_numbers = #tpu.dot_dimension_numbers<[1], [0], [0], [1], [0, 0, 1, 1], [], []>} : vector<8x16xf32>, vector<16x128xf32>, vector<8x128xf32> -> vector<8x128xf32>
    %c1_174 = arith.constant 1 : index
    %c0_175 = arith.constant 0 : index
    %c0_176 = arith.constant 0 : index
    %173 = vector.load %arg10[%c1_174, %c0_175, %c0_176] : memref<7x128x128xf32, #tpu.memory_space<vmem>>, vector<1x128x128xf32>
    %174 = vector.shape_cast %173 : vector<1x128x128xf32> to vector<128x128xf32>
    %cst_177 = arith.constant dense<0.000000e+00> : vector<8x128xf32>
    %175 = tpu.matmul %172, %174, %cst_177 {dimension_numbers = #tpu.dot_dimension_numbers<[1], [0], [0], [1], [0, 0, 1, 1], [], []>} : vector<8x128xf32>, vector<128x128xf32>, vector<8x128xf32> -> vector<8x128xf32>
    %176 = arith.addf %169, %175 : vector<8x128xf32>
    %c2_178 = arith.constant 2 : index
    %c0_179 = arith.constant 0 : index
    %c0_180 = arith.constant 0 : index
    %177 = vector.load %arg9[%c2_178, %c0_179, %c0_180] : memref<7x8x16xf32, #tpu.memory_space<vmem>>, vector<1x8x16xf32>
    %178 = vector.shape_cast %177 : vector<1x8x16xf32> to vector<8x16xf32>
    %cst_181 = arith.constant dense<0.000000e+00> : vector<8x128xf32>
    %179 = tpu.matmul %178, %161, %cst_181 {dimension_numbers = #tpu.dot_dimension_numbers<[1], [0], [0], [1], [0, 0, 1, 1], [], []>} : vector<8x16xf32>, vector<16x128xf32>, vector<8x128xf32> -> vector<8x128xf32>
    %c2_182 = arith.constant 2 : index
    %c0_183 = arith.constant 0 : index
    %c0_184 = arith.constant 0 : index
    %180 = vector.load %arg10[%c2_182, %c0_183, %c0_184] : memref<7x128x128xf32, #tpu.memory_space<vmem>>, vector<1x128x128xf32>
    %181 = vector.shape_cast %180 : vector<1x128x128xf32> to vector<128x128xf32>
    %cst_185 = arith.constant dense<0.000000e+00> : vector<8x128xf32>
    %182 = tpu.matmul %179, %181, %cst_185 {dimension_numbers = #tpu.dot_dimension_numbers<[1], [0], [0], [1], [0, 0, 1, 1], [], []>} : vector<8x128xf32>, vector<128x128xf32>, vector<8x128xf32> -> vector<8x128xf32>
    %183 = arith.addf %176, %182 : vector<8x128xf32>
    %c3_186 = arith.constant 3 : index
    %c0_187 = arith.constant 0 : index
    %c0_188 = arith.constant 0 : index
    %184 = vector.load %arg9[%c3_186, %c0_187, %c0_188] : memref<7x8x16xf32, #tpu.memory_space<vmem>>, vector<1x8x16xf32>
    %185 = vector.shape_cast %184 : vector<1x8x16xf32> to vector<8x16xf32>
    %cst_189 = arith.constant dense<0.000000e+00> : vector<8x128xf32>
    %186 = tpu.matmul %185, %161, %cst_189 {dimension_numbers = #tpu.dot_dimension_numbers<[1], [0], [0], [1], [0, 0, 1, 1], [], []>} : vector<8x16xf32>, vector<16x128xf32>, vector<8x128xf32> -> vector<8x128xf32>
    %c3_190 = arith.constant 3 : index
    %c0_191 = arith.constant 0 : index
    %c0_192 = arith.constant 0 : index
    %187 = vector.load %arg10[%c3_190, %c0_191, %c0_192] : memref<7x128x128xf32, #tpu.memory_space<vmem>>, vector<1x128x128xf32>
    %188 = vector.shape_cast %187 : vector<1x128x128xf32> to vector<128x128xf32>
    %cst_193 = arith.constant dense<0.000000e+00> : vector<8x128xf32>
    %189 = tpu.matmul %186, %188, %cst_193 {dimension_numbers = #tpu.dot_dimension_numbers<[1], [0], [0], [1], [0, 0, 1, 1], [], []>} : vector<8x128xf32>, vector<128x128xf32>, vector<8x128xf32> -> vector<8x128xf32>
    %190 = arith.addf %183, %189 : vector<8x128xf32>
    %c4_194 = arith.constant 4 : index
    %c0_195 = arith.constant 0 : index
    %c0_196 = arith.constant 0 : index
    %191 = vector.load %arg9[%c4_194, %c0_195, %c0_196] : memref<7x8x16xf32, #tpu.memory_space<vmem>>, vector<1x8x16xf32>
    %192 = vector.shape_cast %191 : vector<1x8x16xf32> to vector<8x16xf32>
    %cst_197 = arith.constant dense<0.000000e+00> : vector<8x128xf32>
    %193 = tpu.matmul %192, %161, %cst_197 {dimension_numbers = #tpu.dot_dimension_numbers<[1], [0], [0], [1], [0, 0, 1, 1], [], []>} : vector<8x16xf32>, vector<16x128xf32>, vector<8x128xf32> -> vector<8x128xf32>
    %c4_198 = arith.constant 4 : index
    %c0_199 = arith.constant 0 : index
    %c0_200 = arith.constant 0 : index
    %194 = vector.load %arg10[%c4_198, %c0_199, %c0_200] : memref<7x128x128xf32, #tpu.memory_space<vmem>>, vector<1x128x128xf32>
    %195 = vector.shape_cast %194 : vector<1x128x128xf32> to vector<128x128xf32>
    %cst_201 = arith.constant dense<0.000000e+00> : vector<8x128xf32>
    %196 = tpu.matmul %193, %195, %cst_201 {dimension_numbers = #tpu.dot_dimension_numbers<[1], [0], [0], [1], [0, 0, 1, 1], [], []>} : vector<8x128xf32>, vector<128x128xf32>, vector<8x128xf32> -> vector<8x128xf32>
    %197 = arith.addf %190, %196 : vector<8x128xf32>
    %c5_202 = arith.constant 5 : index
    %c0_203 = arith.constant 0 : index
    %c0_204 = arith.constant 0 : index
    %198 = vector.load %arg9[%c5_202, %c0_203, %c0_204] : memref<7x8x16xf32, #tpu.memory_space<vmem>>, vector<1x8x16xf32>
    %199 = vector.shape_cast %198 : vector<1x8x16xf32> to vector<8x16xf32>
    %cst_205 = arith.constant dense<0.000000e+00> : vector<8x128xf32>
    %200 = tpu.matmul %199, %161, %cst_205 {dimension_numbers = #tpu.dot_dimension_numbers<[1], [0], [0], [1], [0, 0, 1, 1], [], []>} : vector<8x16xf32>, vector<16x128xf32>, vector<8x128xf32> -> vector<8x128xf32>
    %c5_206 = arith.constant 5 : index
    %c0_207 = arith.constant 0 : index
    %c0_208 = arith.constant 0 : index
    %201 = vector.load %arg10[%c5_206, %c0_207, %c0_208] : memref<7x128x128xf32, #tpu.memory_space<vmem>>, vector<1x128x128xf32>
    %202 = vector.shape_cast %201 : vector<1x128x128xf32> to vector<128x128xf32>
    %cst_209 = arith.constant dense<0.000000e+00> : vector<8x128xf32>
    %203 = tpu.matmul %200, %202, %cst_209 {dimension_numbers = #tpu.dot_dimension_numbers<[1], [0], [0], [1], [0, 0, 1, 1], [], []>} : vector<8x128xf32>, vector<128x128xf32>, vector<8x128xf32> -> vector<8x128xf32>
    %204 = arith.addf %197, %203 : vector<8x128xf32>
    %c6_210 = arith.constant 6 : index
    %c0_211 = arith.constant 0 : index
    %c0_212 = arith.constant 0 : index
    %205 = vector.load %arg9[%c6_210, %c0_211, %c0_212] : memref<7x8x16xf32, #tpu.memory_space<vmem>>, vector<1x8x16xf32>
    %206 = vector.shape_cast %205 : vector<1x8x16xf32> to vector<8x16xf32>
    %cst_213 = arith.constant dense<0.000000e+00> : vector<8x128xf32>
    %207 = tpu.matmul %206, %161, %cst_213 {dimension_numbers = #tpu.dot_dimension_numbers<[1], [0], [0], [1], [0, 0, 1, 1], [], []>} : vector<8x16xf32>, vector<16x128xf32>, vector<8x128xf32> -> vector<8x128xf32>
    %c6_214 = arith.constant 6 : index
    %c0_215 = arith.constant 0 : index
    %c0_216 = arith.constant 0 : index
    %208 = vector.load %arg10[%c6_214, %c0_215, %c0_216] : memref<7x128x128xf32, #tpu.memory_space<vmem>>, vector<1x128x128xf32>
    %209 = vector.shape_cast %208 : vector<1x128x128xf32> to vector<128x128xf32>
    %cst_217 = arith.constant dense<0.000000e+00> : vector<8x128xf32>
    %210 = tpu.matmul %207, %209, %cst_217 {dimension_numbers = #tpu.dot_dimension_numbers<[1], [0], [0], [1], [0, 0, 1, 1], [], []>} : vector<8x128xf32>, vector<128x128xf32>, vector<8x128xf32> -> vector<8x128xf32>
    %211 = arith.addf %204, %210 : vector<8x128xf32>
    %c0_218 = arith.constant 0 : index
    %c0_219 = arith.constant 0 : index
    %212 = vector.load %arg11[%c0_218, %c0_219] : memref<1x128xf32, #tpu.memory_space<vmem>>, vector<1x128xf32>
    %213 = vector.broadcast %212 : vector<1x128xf32> to vector<8x128xf32>
    %214 = arith.addf %211, %213 : vector<8x128xf32>
    %cst_220 = arith.constant 0.000000e+00 : f32
    %215 = vector.broadcast %cst_220 : f32 to vector<8x128xf32>
    %216 = arith.cmpf ogt, %214, %215 : vector<8x128xf32>
    %c2_221 = arith.constant 2 : index
    %217 = memref.load %arg1[%c2_221] : memref<6xf32, #tpu.memory_space<smem>>
    %218 = vector.broadcast %217 : f32 to vector<8x128xf32>
    %219 = arith.mulf %218, %214 : vector<8x128xf32>
    %220 = arith.select %216, %214, %219 : vector<8x128xi1>, vector<8x128xf32>
    %cst_222 = arith.constant 0.000000e+00 : f32
    %221 = vector.broadcast %cst_222 : f32 to vector<4x128xf32>
    %c0_223 = arith.constant 0 : index
    %c0_224 = arith.constant 0 : index
    %c0_225 = arith.constant 0 : index
    %222 = vector.load %arg12[%c0_223, %c0_224, %c0_225] : memref<5x4x8xf32, #tpu.memory_space<vmem>>, vector<1x4x8xf32>
    %223 = vector.shape_cast %222 : vector<1x4x8xf32> to vector<4x8xf32>
    %cst_226 = arith.constant dense<0.000000e+00> : vector<4x128xf32>
    %224 = tpu.matmul %223, %220, %cst_226 {dimension_numbers = #tpu.dot_dimension_numbers<[1], [0], [0], [1], [0, 0, 1, 1], [], []>} : vector<4x8xf32>, vector<8x128xf32>, vector<4x128xf32> -> vector<4x128xf32>
    %c0_227 = arith.constant 0 : index
    %c0_228 = arith.constant 0 : index
    %c0_229 = arith.constant 0 : index
    %225 = vector.load %arg13[%c0_227, %c0_228, %c0_229] : memref<5x128x128xf32, #tpu.memory_space<vmem>>, vector<1x128x128xf32>
    %226 = vector.shape_cast %225 : vector<1x128x128xf32> to vector<128x128xf32>
    %cst_230 = arith.constant dense<0.000000e+00> : vector<4x128xf32>
    %227 = tpu.matmul %224, %226, %cst_230 {dimension_numbers = #tpu.dot_dimension_numbers<[1], [0], [0], [1], [0, 0, 1, 1], [], []>} : vector<4x128xf32>, vector<128x128xf32>, vector<4x128xf32> -> vector<4x128xf32>
    %228 = arith.addf %221, %227 : vector<4x128xf32>
    %c1_231 = arith.constant 1 : index
    %c0_232 = arith.constant 0 : index
    %c0_233 = arith.constant 0 : index
    %229 = vector.load %arg12[%c1_231, %c0_232, %c0_233] : memref<5x4x8xf32, #tpu.memory_space<vmem>>, vector<1x4x8xf32>
    %230 = vector.shape_cast %229 : vector<1x4x8xf32> to vector<4x8xf32>
    %cst_234 = arith.constant dense<0.000000e+00> : vector<4x128xf32>
    %231 = tpu.matmul %230, %220, %cst_234 {dimension_numbers = #tpu.dot_dimension_numbers<[1], [0], [0], [1], [0, 0, 1, 1], [], []>} : vector<4x8xf32>, vector<8x128xf32>, vector<4x128xf32> -> vector<4x128xf32>
    %c1_235 = arith.constant 1 : index
    %c0_236 = arith.constant 0 : index
    %c0_237 = arith.constant 0 : index
    %232 = vector.load %arg13[%c1_235, %c0_236, %c0_237] : memref<5x128x128xf32, #tpu.memory_space<vmem>>, vector<1x128x128xf32>
    %233 = vector.shape_cast %232 : vector<1x128x128xf32> to vector<128x128xf32>
    %cst_238 = arith.constant dense<0.000000e+00> : vector<4x128xf32>
    %234 = tpu.matmul %231, %233, %cst_238 {dimension_numbers = #tpu.dot_dimension_numbers<[1], [0], [0], [1], [0, 0, 1, 1], [], []>} : vector<4x128xf32>, vector<128x128xf32>, vector<4x128xf32> -> vector<4x128xf32>
    %235 = arith.addf %228, %234 : vector<4x128xf32>
    %c2_239 = arith.constant 2 : index
    %c0_240 = arith.constant 0 : index
    %c0_241 = arith.constant 0 : index
    %236 = vector.load %arg12[%c2_239, %c0_240, %c0_241] : memref<5x4x8xf32, #tpu.memory_space<vmem>>, vector<1x4x8xf32>
    %237 = vector.shape_cast %236 : vector<1x4x8xf32> to vector<4x8xf32>
    %cst_242 = arith.constant dense<0.000000e+00> : vector<4x128xf32>
    %238 = tpu.matmul %237, %220, %cst_242 {dimension_numbers = #tpu.dot_dimension_numbers<[1], [0], [0], [1], [0, 0, 1, 1], [], []>} : vector<4x8xf32>, vector<8x128xf32>, vector<4x128xf32> -> vector<4x128xf32>
    %c2_243 = arith.constant 2 : index
    %c0_244 = arith.constant 0 : index
    %c0_245 = arith.constant 0 : index
    %239 = vector.load %arg13[%c2_243, %c0_244, %c0_245] : memref<5x128x128xf32, #tpu.memory_space<vmem>>, vector<1x128x128xf32>
    %240 = vector.shape_cast %239 : vector<1x128x128xf32> to vector<128x128xf32>
    %cst_246 = arith.constant dense<0.000000e+00> : vector<4x128xf32>
    %241 = tpu.matmul %238, %240, %cst_246 {dimension_numbers = #tpu.dot_dimension_numbers<[1], [0], [0], [1], [0, 0, 1, 1], [], []>} : vector<4x128xf32>, vector<128x128xf32>, vector<4x128xf32> -> vector<4x128xf32>
    %242 = arith.addf %235, %241 : vector<4x128xf32>
    %c3_247 = arith.constant 3 : index
    %c0_248 = arith.constant 0 : index
    %c0_249 = arith.constant 0 : index
    %243 = vector.load %arg12[%c3_247, %c0_248, %c0_249] : memref<5x4x8xf32, #tpu.memory_space<vmem>>, vector<1x4x8xf32>
    %244 = vector.shape_cast %243 : vector<1x4x8xf32> to vector<4x8xf32>
    %cst_250 = arith.constant dense<0.000000e+00> : vector<4x128xf32>
    %245 = tpu.matmul %244, %220, %cst_250 {dimension_numbers = #tpu.dot_dimension_numbers<[1], [0], [0], [1], [0, 0, 1, 1], [], []>} : vector<4x8xf32>, vector<8x128xf32>, vector<4x128xf32> -> vector<4x128xf32>
    %c3_251 = arith.constant 3 : index
    %c0_252 = arith.constant 0 : index
    %c0_253 = arith.constant 0 : index
    %246 = vector.load %arg13[%c3_251, %c0_252, %c0_253] : memref<5x128x128xf32, #tpu.memory_space<vmem>>, vector<1x128x128xf32>
    %247 = vector.shape_cast %246 : vector<1x128x128xf32> to vector<128x128xf32>
    %cst_254 = arith.constant dense<0.000000e+00> : vector<4x128xf32>
    %248 = tpu.matmul %245, %247, %cst_254 {dimension_numbers = #tpu.dot_dimension_numbers<[1], [0], [0], [1], [0, 0, 1, 1], [], []>} : vector<4x128xf32>, vector<128x128xf32>, vector<4x128xf32> -> vector<4x128xf32>
    %249 = arith.addf %242, %248 : vector<4x128xf32>
    %c4_255 = arith.constant 4 : index
    %c0_256 = arith.constant 0 : index
    %c0_257 = arith.constant 0 : index
    %250 = vector.load %arg12[%c4_255, %c0_256, %c0_257] : memref<5x4x8xf32, #tpu.memory_space<vmem>>, vector<1x4x8xf32>
    %251 = vector.shape_cast %250 : vector<1x4x8xf32> to vector<4x8xf32>
    %cst_258 = arith.constant dense<0.000000e+00> : vector<4x128xf32>
    %252 = tpu.matmul %251, %220, %cst_258 {dimension_numbers = #tpu.dot_dimension_numbers<[1], [0], [0], [1], [0, 0, 1, 1], [], []>} : vector<4x8xf32>, vector<8x128xf32>, vector<4x128xf32> -> vector<4x128xf32>
    %c4_259 = arith.constant 4 : index
    %c0_260 = arith.constant 0 : index
    %c0_261 = arith.constant 0 : index
    %253 = vector.load %arg13[%c4_259, %c0_260, %c0_261] : memref<5x128x128xf32, #tpu.memory_space<vmem>>, vector<1x128x128xf32>
    %254 = vector.shape_cast %253 : vector<1x128x128xf32> to vector<128x128xf32>
    %cst_262 = arith.constant dense<0.000000e+00> : vector<4x128xf32>
    %255 = tpu.matmul %252, %254, %cst_262 {dimension_numbers = #tpu.dot_dimension_numbers<[1], [0], [0], [1], [0, 0, 1, 1], [], []>} : vector<4x128xf32>, vector<128x128xf32>, vector<4x128xf32> -> vector<4x128xf32>
    %256 = arith.addf %249, %255 : vector<4x128xf32>
    %c0_263 = arith.constant 0 : index
    %c0_264 = arith.constant 0 : index
    %257 = vector.load %arg14[%c0_263, %c0_264] : memref<1x128xf32, #tpu.memory_space<vmem>>, vector<1x128xf32>
    %258 = vector.broadcast %257 : vector<1x128xf32> to vector<4x128xf32>
    %259 = arith.addf %256, %258 : vector<4x128xf32>
    %cst_265 = arith.constant 0.000000e+00 : f32
    %260 = vector.broadcast %cst_265 : f32 to vector<4x128xf32>
    %261 = arith.cmpf ogt, %259, %260 : vector<4x128xf32>
    %c3_266 = arith.constant 3 : index
    %262 = memref.load %arg1[%c3_266] : memref<6xf32, #tpu.memory_space<smem>>
    %263 = vector.broadcast %262 : f32 to vector<4x128xf32>
    %264 = arith.mulf %263, %259 : vector<4x128xf32>
    %265 = arith.select %261, %259, %264 : vector<4x128xi1>, vector<4x128xf32>
    %cst_267 = arith.constant 0.000000e+00 : f32
    %266 = vector.broadcast %cst_267 : f32 to vector<2x64xf32>
    %c0_268 = arith.constant 0 : index
    %c0_269 = arith.constant 0 : index
    %c0_270 = arith.constant 0 : index
    %267 = vector.load %arg15[%c0_268, %c0_269, %c0_270] : memref<3x2x4xf32, #tpu.memory_space<vmem>>, vector<1x2x4xf32>
    %268 = vector.shape_cast %267 : vector<1x2x4xf32> to vector<2x4xf32>
    %cst_271 = arith.constant dense<0.000000e+00> : vector<2x128xf32>
    %269 = tpu.matmul %268, %265, %cst_271 {dimension_numbers = #tpu.dot_dimension_numbers<[1], [0], [0], [1], [0, 0, 1, 1], [], []>} : vector<2x4xf32>, vector<4x128xf32>, vector<2x128xf32> -> vector<2x128xf32>
    %c0_272 = arith.constant 0 : index
    %c0_273 = arith.constant 0 : index
    %c0_274 = arith.constant 0 : index
    %270 = vector.load %arg16[%c0_272, %c0_273, %c0_274] : memref<3x128x64xf32, #tpu.memory_space<vmem>>, vector<1x128x64xf32>
    %271 = vector.shape_cast %270 : vector<1x128x64xf32> to vector<128x64xf32>
    %cst_275 = arith.constant dense<0.000000e+00> : vector<2x64xf32>
    %272 = tpu.matmul %269, %271, %cst_275 {dimension_numbers = #tpu.dot_dimension_numbers<[1], [0], [0], [1], [0, 0, 1, 1], [], []>} : vector<2x128xf32>, vector<128x64xf32>, vector<2x64xf32> -> vector<2x64xf32>
    %273 = arith.addf %266, %272 : vector<2x64xf32>
    %c1_276 = arith.constant 1 : index
    %c0_277 = arith.constant 0 : index
    %c0_278 = arith.constant 0 : index
    %274 = vector.load %arg15[%c1_276, %c0_277, %c0_278] : memref<3x2x4xf32, #tpu.memory_space<vmem>>, vector<1x2x4xf32>
    %275 = vector.shape_cast %274 : vector<1x2x4xf32> to vector<2x4xf32>
    %cst_279 = arith.constant dense<0.000000e+00> : vector<2x128xf32>
    %276 = tpu.matmul %275, %265, %cst_279 {dimension_numbers = #tpu.dot_dimension_numbers<[1], [0], [0], [1], [0, 0, 1, 1], [], []>} : vector<2x4xf32>, vector<4x128xf32>, vector<2x128xf32> -> vector<2x128xf32>
    %c1_280 = arith.constant 1 : index
    %c0_281 = arith.constant 0 : index
    %c0_282 = arith.constant 0 : index
    %277 = vector.load %arg16[%c1_280, %c0_281, %c0_282] : memref<3x128x64xf32, #tpu.memory_space<vmem>>, vector<1x128x64xf32>
    %278 = vector.shape_cast %277 : vector<1x128x64xf32> to vector<128x64xf32>
    %cst_283 = arith.constant dense<0.000000e+00> : vector<2x64xf32>
    %279 = tpu.matmul %276, %278, %cst_283 {dimension_numbers = #tpu.dot_dimension_numbers<[1], [0], [0], [1], [0, 0, 1, 1], [], []>} : vector<2x128xf32>, vector<128x64xf32>, vector<2x64xf32> -> vector<2x64xf32>
    %280 = arith.addf %273, %279 : vector<2x64xf32>
    %c2_284 = arith.constant 2 : index
    %c0_285 = arith.constant 0 : index
    %c0_286 = arith.constant 0 : index
    %281 = vector.load %arg15[%c2_284, %c0_285, %c0_286] : memref<3x2x4xf32, #tpu.memory_space<vmem>>, vector<1x2x4xf32>
    %282 = vector.shape_cast %281 : vector<1x2x4xf32> to vector<2x4xf32>
    %cst_287 = arith.constant dense<0.000000e+00> : vector<2x128xf32>
    %283 = tpu.matmul %282, %265, %cst_287 {dimension_numbers = #tpu.dot_dimension_numbers<[1], [0], [0], [1], [0, 0, 1, 1], [], []>} : vector<2x4xf32>, vector<4x128xf32>, vector<2x128xf32> -> vector<2x128xf32>
    %c2_288 = arith.constant 2 : index
    %c0_289 = arith.constant 0 : index
    %c0_290 = arith.constant 0 : index
    %284 = vector.load %arg16[%c2_288, %c0_289, %c0_290] : memref<3x128x64xf32, #tpu.memory_space<vmem>>, vector<1x128x64xf32>
    %285 = vector.shape_cast %284 : vector<1x128x64xf32> to vector<128x64xf32>
    %cst_291 = arith.constant dense<0.000000e+00> : vector<2x64xf32>
    %286 = tpu.matmul %283, %285, %cst_291 {dimension_numbers = #tpu.dot_dimension_numbers<[1], [0], [0], [1], [0, 0, 1, 1], [], []>} : vector<2x128xf32>, vector<128x64xf32>, vector<2x64xf32> -> vector<2x64xf32>
    %287 = arith.addf %280, %286 : vector<2x64xf32>
    %c0_292 = arith.constant 0 : index
    %c0_293 = arith.constant 0 : index
    %288 = vector.load %arg17[%c0_292, %c0_293] : memref<1x64xf32, #tpu.memory_space<vmem>>, vector<1x64xf32>
    %289 = vector.broadcast %288 : vector<1x64xf32> to vector<2x64xf32>
    %290 = arith.addf %287, %289 : vector<2x64xf32>
    %cst_294 = arith.constant 0.000000e+00 : f32
    %291 = vector.broadcast %cst_294 : f32 to vector<2x64xf32>
    %292 = arith.cmpf ogt, %290, %291 : vector<2x64xf32>
    %c4_295 = arith.constant 4 : index
    %293 = memref.load %arg1[%c4_295] : memref<6xf32, #tpu.memory_space<smem>>
    %294 = vector.broadcast %293 : f32 to vector<2x64xf32>
    %295 = arith.mulf %294, %290 : vector<2x64xf32>
    %296 = arith.select %292, %290, %295 : vector<2x64xi1>, vector<2x64xf32>
    %cst_296 = arith.constant 0.000000e+00 : f32
    %297 = vector.broadcast %cst_296 : f32 to vector<1x32xf32>
    %c0_297 = arith.constant 0 : index
    %c0_298 = arith.constant 0 : index
    %c0_299 = arith.constant 0 : index
    %298 = vector.load %arg18[%c0_297, %c0_298, %c0_299] : memref<3x1x2xf32, #tpu.memory_space<vmem>>, vector<1x1x2xf32>
    %299 = vector.shape_cast %298 : vector<1x1x2xf32> to vector<1x2xf32>
    %cst_300 = arith.constant dense<0.000000e+00> : vector<1x64xf32>
    %300 = tpu.matmul %299, %296, %cst_300 {dimension_numbers = #tpu.dot_dimension_numbers<[1], [0], [0], [1], [0, 0, 1, 1], [], []>} : vector<1x2xf32>, vector<2x64xf32>, vector<1x64xf32> -> vector<1x64xf32>
    %c0_301 = arith.constant 0 : index
    %c0_302 = arith.constant 0 : index
    %c0_303 = arith.constant 0 : index
    %301 = vector.load %arg19[%c0_301, %c0_302, %c0_303] : memref<3x64x32xf32, #tpu.memory_space<vmem>>, vector<1x64x32xf32>
    %302 = vector.shape_cast %301 : vector<1x64x32xf32> to vector<64x32xf32>
    %cst_304 = arith.constant dense<0.000000e+00> : vector<1x32xf32>
    %303 = tpu.matmul %300, %302, %cst_304 {dimension_numbers = #tpu.dot_dimension_numbers<[1], [0], [0], [1], [0, 0, 1, 1], [], []>} : vector<1x64xf32>, vector<64x32xf32>, vector<1x32xf32> -> vector<1x32xf32>
    %304 = arith.addf %297, %303 : vector<1x32xf32>
    %c1_305 = arith.constant 1 : index
    %c0_306 = arith.constant 0 : index
    %c0_307 = arith.constant 0 : index
    %305 = vector.load %arg18[%c1_305, %c0_306, %c0_307] : memref<3x1x2xf32, #tpu.memory_space<vmem>>, vector<1x1x2xf32>
    %306 = vector.shape_cast %305 : vector<1x1x2xf32> to vector<1x2xf32>
    %cst_308 = arith.constant dense<0.000000e+00> : vector<1x64xf32>
    %307 = tpu.matmul %306, %296, %cst_308 {dimension_numbers = #tpu.dot_dimension_numbers<[1], [0], [0], [1], [0, 0, 1, 1], [], []>} : vector<1x2xf32>, vector<2x64xf32>, vector<1x64xf32> -> vector<1x64xf32>
    %c1_309 = arith.constant 1 : index
    %c0_310 = arith.constant 0 : index
    %c0_311 = arith.constant 0 : index
    %308 = vector.load %arg19[%c1_309, %c0_310, %c0_311] : memref<3x64x32xf32, #tpu.memory_space<vmem>>, vector<1x64x32xf32>
    %309 = vector.shape_cast %308 : vector<1x64x32xf32> to vector<64x32xf32>
    %cst_312 = arith.constant dense<0.000000e+00> : vector<1x32xf32>
    %310 = tpu.matmul %307, %309, %cst_312 {dimension_numbers = #tpu.dot_dimension_numbers<[1], [0], [0], [1], [0, 0, 1, 1], [], []>} : vector<1x64xf32>, vector<64x32xf32>, vector<1x32xf32> -> vector<1x32xf32>
    %311 = arith.addf %304, %310 : vector<1x32xf32>
    %c2_313 = arith.constant 2 : index
    %c0_314 = arith.constant 0 : index
    %c0_315 = arith.constant 0 : index
    %312 = vector.load %arg18[%c2_313, %c0_314, %c0_315] : memref<3x1x2xf32, #tpu.memory_space<vmem>>, vector<1x1x2xf32>
    %313 = vector.shape_cast %312 : vector<1x1x2xf32> to vector<1x2xf32>
    %cst_316 = arith.constant dense<0.000000e+00> : vector<1x64xf32>
    %314 = tpu.matmul %313, %296, %cst_316 {dimension_numbers = #tpu.dot_dimension_numbers<[1], [0], [0], [1], [0, 0, 1, 1], [], []>} : vector<1x2xf32>, vector<2x64xf32>, vector<1x64xf32> -> vector<1x64xf32>
    %c2_317 = arith.constant 2 : index
    %c0_318 = arith.constant 0 : index
    %c0_319 = arith.constant 0 : index
    %315 = vector.load %arg19[%c2_317, %c0_318, %c0_319] : memref<3x64x32xf32, #tpu.memory_space<vmem>>, vector<1x64x32xf32>
    %316 = vector.shape_cast %315 : vector<1x64x32xf32> to vector<64x32xf32>
    %cst_320 = arith.constant dense<0.000000e+00> : vector<1x32xf32>
    %317 = tpu.matmul %314, %316, %cst_320 {dimension_numbers = #tpu.dot_dimension_numbers<[1], [0], [0], [1], [0, 0, 1, 1], [], []>} : vector<1x64xf32>, vector<64x32xf32>, vector<1x32xf32> -> vector<1x32xf32>
    %318 = arith.addf %311, %317 : vector<1x32xf32>
    %c0_321 = arith.constant 0 : index
    %c0_322 = arith.constant 0 : index
    %319 = vector.load %arg20[%c0_321, %c0_322] : memref<1x32xf32, #tpu.memory_space<vmem>>, vector<1x32xf32>
    %320 = arith.addf %318, %319 : vector<1x32xf32>
    %cst_323 = arith.constant 0.000000e+00 : f32
    %321 = vector.broadcast %cst_323 : f32 to vector<1x32xf32>
    %322 = arith.cmpf ogt, %320, %321 : vector<1x32xf32>
    %c5_324 = arith.constant 5 : index
    %323 = memref.load %arg1[%c5_324] : memref<6xf32, #tpu.memory_space<smem>>
    %324 = vector.broadcast %323 : f32 to vector<1x32xf32>
    %325 = arith.mulf %324, %320 : vector<1x32xf32>
    %326 = arith.select %322, %320, %325 : vector<1x32xi1>, vector<1x32xf32>
    %c0_325 = arith.constant 0 : index
    %c0_326 = arith.constant 0 : index
    %c0_327 = arith.constant 0 : index
    %327 = vector.load %arg21[%c0_325, %c0_326, %c0_327] : memref<1x1x32xf32, #tpu.memory_space<vmem>>, vector<1x1x32xf32>
    %328 = vector.shape_cast %327 : vector<1x1x32xf32> to vector<1x32xf32>
    %329 = vector.shape_cast %326 : vector<1x32xf32> to vector<1x1x32xf32>
    tpu.vector_store %arg21[%c0_325, %c0_326, %c0_327], %329 {strides = array<i32>} : memref<1x1x32xf32, #tpu.memory_space<vmem>>, vector<1x1x32xf32>,
    return
  }
  func.func @transform_0(%arg0: i32) -> i32 {
    %c0_i32 = arith.constant 0 : i32
    %c0_i32_0 = arith.constant 0 : i32
    return %c0_i32 : i32
  }
  func.func @transform_1(%arg0: i32) -> (i32, i32, i32) {
    %c0_i32 = arith.constant 0 : i32
    %c0_i32_0 = arith.constant 0 : i32
    %c0_i32_1 = arith.constant 0 : i32
    return %arg0, %c0_i32, %c0_i32_0 : i32, i32, i32
  }
  func.func @transform_2(%arg0: i32) -> (i32, i32, i32) {
    %c0_i32 = arith.constant 0 : i32
    %c0_i32_0 = arith.constant 0 : i32
    %c0_i32_1 = arith.constant 0 : i32
    %c0_i32_2 = arith.constant 0 : i32
    return %c0_i32, %c0_i32_0, %c0_i32_1 : i32, i32, i32
  }
  func.func @transform_3(%arg0: i32) -> (i32, i32, i32) {
    %c0_i32 = arith.constant 0 : i32
    %c0_i32_0 = arith.constant 0 : i32
    %c0_i32_1 = arith.constant 0 : i32
    %c0_i32_2 = arith.constant 0 : i32
    return %c0_i32, %c0_i32_0, %c0_i32_1 : i32, i32, i32
  }
  func.func @transform_4(%arg0: i32) -> (i32, i32) {
    %c0_i32 = arith.constant 0 : i32
    %c0_i32_0 = arith.constant 0 : i32
    %c0_i32_1 = arith.constant 0 : i32
    return %c0_i32, %c0_i32_0 : i32, i32
  }
  func.func @transform_5(%arg0: i32) -> (i32, i32, i32) {
    %c0_i32 = arith.constant 0 : i32
    %c0_i32_0 = arith.constant 0 : i32
    %c0_i32_1 = arith.constant 0 : i32
    %c0_i32_2 = arith.constant 0 : i32
    return %c0_i32, %c0_i32_0, %c0_i32_1 : i32, i32, i32
  }
  func.func @transform_6(%arg0: i32) -> (i32, i32, i32) {
    %c0_i32 = arith.constant 0 : i32
    %c0_i32_0 = arith.constant 0 : i32
    %c0_i32_1 = arith.constant 0 : i32
    %c0_i32_2 = arith.constant 0 : i32
    return %c0_i32, %c0_i32_0, %c0_i32_1 : i32, i32, i32
  }
  func.func @transform_7(%arg0: i32) -> (i32, i32) {
    %c0_i32 = arith.constant 0 : i32
    %c0_i32_0 = arith.constant 0 : i32
    %c0_i32_1 = arith.constant 0 : i32
    return %c0_i32, %c0_i32_0 : i32, i32
  }
  func.func @transform_8(%arg0: i32) -> (i32, i32, i32) {
    %c0_i32 = arith.constant 0 : i32
    %c0_i32_0 = arith.constant 0 : i32
    %c0_i32_1 = arith.constant 0 : i32
    %c0_i32_2 = arith.constant 0 : i32
    return %c0_i32, %c0_i32_0, %c0_i32_1 : i32, i32, i32
  }
  func.func @transform_9(%arg0: i32) -> (i32, i32, i32) {
    %c0_i32 = arith.constant 0 : i32
    %c0_i32_0 = arith.constant 0 : i32
    %c0_i32_1 = arith.constant 0 : i32
    %c0_i32_2 = arith.constant 0 : i32
    return %c0_i32, %c0_i32_0, %c0_i32_1 : i32, i32, i32
  }
  func.func @transform_10(%arg0: i32) -> (i32, i32) {
    %c0_i32 = arith.constant 0 : i32
    %c0_i32_0 = arith.constant 0 : i32
    %c0_i32_1 = arith.constant 0 : i32
    return %c0_i32, %c0_i32_0 : i32, i32
  }
  func.func @transform_11(%arg0: i32) -> (i32, i32, i32) {
    %c0_i32 = arith.constant 0 : i32
    %c0_i32_0 = arith.constant 0 : i32
    %c0_i32_1 = arith.constant 0 : i32
    %c0_i32_2 = arith.constant 0 : i32
    return %c0_i32, %c0_i32_0, %c0_i32_1 : i32, i32, i32
  }
  func.func @transform_12(%arg0: i32) -> (i32, i32, i32) {
    %c0_i32 = arith.constant 0 : i32
    %c0_i32_0 = arith.constant 0 : i32
    %c0_i32_1 = arith.constant 0 : i32
    %c0_i32_2 = arith.constant 0 : i32
    return %c0_i32, %c0_i32_0, %c0_i32_1 : i32, i32, i32
  }
  func.func @transform_13(%arg0: i32) -> (i32, i32) {
    %c0_i32 = arith.constant 0 : i32
    %c0_i32_0 = arith.constant 0 : i32
    %c0_i32_1 = arith.constant 0 : i32
    return %c0_i32, %c0_i32_0 : i32, i32
  }
  func.func @transform_14(%arg0: i32) -> (i32, i32, i32) {
    %c0_i32 = arith.constant 0 : i32
    %c0_i32_0 = arith.constant 0 : i32
    %c0_i32_1 = arith.constant 0 : i32
    %c0_i32_2 = arith.constant 0 : i32
    return %c0_i32, %c0_i32_0, %c0_i32_1 : i32, i32, i32
  }
  func.func @transform_15(%arg0: i32) -> (i32, i32, i32) {
    %c0_i32 = arith.constant 0 : i32
    %c0_i32_0 = arith.constant 0 : i32
    %c0_i32_1 = arith.constant 0 : i32
    %c0_i32_2 = arith.constant 0 : i32
    return %c0_i32, %c0_i32_0, %c0_i32_1 : i32, i32, i32
  }
  func.func @transform_16(%arg0: i32) -> (i32, i32) {
    %c0_i32 = arith.constant 0 : i32
    %c0_i32_0 = arith.constant 0 : i32
    %c0_i32_1 = arith.constant 0 : i32
    return %c0_i32, %c0_i32_0 : i32, i32
  }
  func.func @transform_17(%arg0: i32) -> (i32, i32, i32) {
    %c0_i32 = arith.constant 0 : i32
    %c0_i32_0 = arith.constant 0 : i32
    %c0_i32_1 = arith.constant 0 : i32
    %c0_i32_2 = arith.constant 0 : i32
    return %c0_i32, %c0_i32_0, %c0_i32_1 : i32, i32, i32
  }
  func.func @transform_18(%arg0: i32) -> (i32, i32, i32) {
    %c0_i32 = arith.constant 0 : i32
    %c0_i32_0 = arith.constant 0 : i32
    %c0_i32_1 = arith.constant 0 : i32
    %c0_i32_2 = arith.constant 0 : i32
    return %c0_i32, %c0_i32_0, %c0_i32_1 : i32, i32, i32
  }
  func.func @transform_19(%arg0: i32) -> (i32, i32) {
    %c0_i32 = arith.constant 0 : i32
    %c0_i32_0 = arith.constant 0 : i32
    %c0_i32_1 = arith.constant 0 : i32
    return %c0_i32, %c0_i32_0 : i32, i32
  }
  func.func @transform_20(%arg0: i32) -> (i32, i32, i32) {
    %c0_i32 = arith.constant 0 : i32
    %c0_i32_0 = arith.constant 0 : i32
    %c0_i32_1 = arith.constant 0 : i32
    return %arg0, %c0_i32, %c0_i32_0 : i32, i32, i32
  }
}

</mosaic_0001>

<bundles_post_ra>
// kernel: forward.1
= control target key start
LH: loop header
LB: loop body
LE: loop exit
PB: predicated region body
PF: predicated region fallthrough
CT: control target
= control target key end

     0   :  { %s12589_s0 = inlined_call_operand.vmem [shape: f32[6], index: 0, kind: input, shape index: {}]   ;;  %s12590_s1 = inlined_call_operand.hbm [shape: f32[2,64,64], index: 1, kind: input, shape index: {}]   ;;  %s12591_s2 = inlined_call_operand.hbm [shape: f32[11,32,64], index: 2, kind: input, shape index: {}]   ;;  %s12592_s3 = inlined_call_operand.hbm [shape: f32[11,64,128], index: 3, kind: input, shape index: {}]   ;;  %s12593_s4 = inlined_call_operand.hbm [shape: f32[1,128], index: 4, kind: input, shape index: {}]   ;;  %s12594_s5 = inlined_call_operand.hbm [shape: f32[9,16,32], index: 5, kind: input, shape index: {}]   ;;  %s12595_s6 = inlined_call_operand.hbm [shape: f32[9,128,128], index: 6, kind: input, shape index: {}]   ;;  %s12596_s7 = inlined_call_operand.hbm [shape: f32[1,128], index: 7, kind: input, shape index: {}]   ;;  %s12597_s8 = inlined_call_operand.hbm [shape: f32[7,8,16], index: 8, kind: input, shape index: {}]   ;;  %s12598_s9 = inlined_call_operand.hbm [shape: f32[7,128,128], index: 9, kind: input, shape index: {}]   ;;  %s12599_s10 = inlined_call_operand.hbm [shape: f32[1,128], index: 10, kind: input, shape index: {}]   ;;  %s12600_s11 = inlined_call_operand.vmem [shape: f32[5,4,8], index: 11, kind: input, shape index: {}]   ;;  %s12601_s12 = inlined_call_operand.hbm [shape: f32[5,128,128], index: 12, kind: input, shape index: {}]   ;;  %s12602_s13 = inlined_call_operand.hbm [shape: f32[1,128], index: 13, kind: input, shape index: {}]   ;;  %s12603_s14 = inlined_call_operand.vmem [shape: f32[3,2,4], index: 14, kind: input, shape index: {}]   ;;  %s12604_s15 = inlined_call_operand.hbm [shape: f32[3,128,64], index: 15, kind: input, shape index: {}]   ;;  %s12605_s16 = inlined_call_operand.vmem [shape: f32[1,64], index: 16, kind: input, shape index: {}]   ;;  %s12606_s17 = inlined_call_operand.vmem [shape: f32[3,1,2], index: 17, kind: input, shape index: {}]   ;;  %s12607_s18 = inlined_call_operand.hbm [shape: f32[3,64,32], index: 18, kind: input, shape index: {}]   ;;  %s12608_s19 = inlined_call_operand.vmem [shape: f32[1,32], index: 19, kind: input, shape index: {}]   ;;  %s12609_s20 = inlined_call_operand.hbm [shape: f32[2,1,32], index: 20, kind: output, shape index: {}]  }
   0x1   :  { %12622 = sst [smem:[#allocation38_spill]] %s12589_s0 }
   0x2   :  { %12623 = sst [smem:[#allocation39_spill]] %s12590_s1 }
   0x3   :  { %12624 = sst [smem:[#allocation40_spill]] %s12591_s2 }
   0x4   :  { %12625 = sst [smem:[#allocation41_spill]] %s12592_s3 }
   0x5   :  { %12626 = sst [smem:[#allocation42_spill]] %s12593_s4 }
   0x6   :  { %12627 = sst [smem:[#allocation43_spill]] %s12594_s5 }
   0x7   :  { %12628 = sst [smem:[#allocation44_spill]] %s12595_s6 }
   0x8   :  { %12629 = sst [smem:[#allocation45_spill]] %s12596_s7 }
   0x9   :  { %12630 = sst [smem:[#allocation46_spill]] %s12597_s8 }
   0xa   :  { %12631 = sst [smem:[#allocation47_spill]] %s12598_s9 }
   0xb   :  { %12632 = sst [smem:[#allocation48_spill]] %s12600_s11 }
   0xc   :  { %12633 = sst [smem:[#allocation49_spill]] %s12603_s14 }
   0xd   :  { %12634 = sst [smem:[#allocation50_spill]] %s12605_s16 }
   0xe   :  { %12635 = sst [smem:[#allocation51_spill]] %s12606_s17 }
   0xf   :  { %12636 = sst [smem:[#allocation52_spill]] %s12608_s19 }
  0x10   :  { %12637 = sst [smem:[#allocation53_spill]] %s12609_s20 }
  0x11   :  { %25 = vsyncpa [#allocation5], 0 }
  0x12   :  { %26 = vsyncpa [#allocation3], 0 }
  0x13   :  { %28 = vsyncpa [#allocation3 + $0x1], 0 }
  0x14   :  { %29 = vsyncpa [#allocation8], 0 }
  0x15   :  { %30 = vsyncpa [#allocation11], 0 }
  0x16   :  { %31 = vsyncpa [#allocation14], 0 }
  0x17   :  { %32 = vsyncpa [#allocation17], 0 }
  0x18   :  { %33 = vsyncpa [#allocation20], 0 }
  0x19   :  { %34 = vsyncpa [#allocation23], 0 }
  0x1a   :  { %35 = vsyncpa [#allocation26], 0 }
  0x1b   :  { %36 = vsyncpa [#allocation4], 0 }
  0x1c   :  { %38 = vsyncpa [#allocation4 + $0x1], 0  ;;  %s11365_s1 = smov 0   ;;  %s11367_s22 = smov 0  }
  0x1d   :  { %s11369_s23 = smov 0   ;;  %s11371_s24 = smov 0  }
  0x1e LB: > { %s11240_s2 = smov [#allocation7]   ;;  %s11386_s3 = sadd.s32 4294967295, %s11238_s24   ;;  %s11238_s24 = sphi %s11371_s24, %s12689_s24   ;;  %s11234_s23 = sphi %s11369_s23, %s12688_s23   ;;  %s11230_s22 = sphi %s11367_s22, %s12687_s22   ;;  %s11226_s1 = sphi %s11365_s1, %s12686_s1  }
  0x1f   : > { %s523_s25 = sshll.u32 %s11240_s2, 4  ;;  %p7991_p0 = scmp.ge.s32.totalorder %s11238_s24, 1  ;;  %s524_s25 = int_to_ptr.vmem [resolvable:$true] %s523_s25 }
  0x20   : > { %p12617_p1 = scmp.eq.s32.totalorder %s11386_s3, 0  ;;  %p500_p2 = scmp.lt.s32.totalorder %s11238_s24, 3 }
  0x21   : > { %s11241_s27 = smov [#allocation10]   ;;  %s11242_s29 = smov [#allocation13]  }
  0x22   : > { %p11391_p3 = pnand %p7991_p0, %p500_p2  ;;  %s550_s28 = sshll.u32 %s11241_s27, 4  ;;  %s551_s28 = int_to_ptr.vmem [resolvable:$true] %s550_s28 }
  0x23   : > { %s573_s30 = sshll.u32 %s11242_s29, 4  ;;  %s10772_s21 = scalar_lea.vmem %s524_s25, 5632  ;;  %s11404_s30 = int_to_ptr.vmem [resolvable:$true] %s573_s30 }
  0x24   : > { %s12638_s26 = scalar_select %p11391_p3, 1, 0 }
  0x25   : > { %p10630_p5 = pneg %p11391_p3  ;;  %p10773_p8 = scmp.ne.s32.totalorder %s524_s25, %s10772_s21 }
  0x26   : > { %p10780_p11 = scmp.lt.s32.totalorder %s524_s25, %s524_s25  ;;  %p10781_p12 = scmp.lt.s32.totalorder %s10772_s21, %s10772_s21 }
  0x27   : > { %p11400_p6 = pnand %p10630_p5, %p12617_p1 }
  0x28   : > { %p10782_p13 = por %p10781_p12, %p10780_p11 }
  0x29   : > { %p11408_p7 = pneg %p11400_p6 }
  0x2b   : > { %p10775_p9 = pnand %p10773_p8, %p11408_p7 }
  0x2d   : > { %p10776_p10 = pneg %p10775_p9 }
  0x2f   : > { %p10783_p0 = pnand %p10782_p13, %p10776_p10 }
  0x31   : > { %10786 = shalt.err (!%p10783_p0)
}
  0x32   : > { %s12615_s2 = smov 128   ;;  %s12619_s27 = smov 8  }
  0x33   : > { %s12641_s19 = sld [smem:[#allocation40_spill]]  ;;  %s10798_s17 = scalar_lea.vmem %s551_s28, 16 }
  0x34   : > { %p10799_p2 = scmp.ne.s32.totalorder %s551_s28, %s10798_s17  ;;  %s10805_s21 = scalar_lea.vmem %s551_s28, 32 }
  0x35   : > { %p10806_p9 = scmp.lt.s32.totalorder %s551_s28, %s551_s28  ;;  %p10807_p10 = scmp.lt.s32.totalorder %s10805_s21, %s10798_s17 }
  0x36   : > { %p10801_p5 = pnand %p10799_p2, %p11408_p7 }
  0x37   : > { %p10808_p11 = por %p10807_p10, %p10806_p9 }
  0x38   : > { %p10802_p8 = pneg %p10801_p5 }
  0x39   : > { %10636 = dma.hbm_to_vmem [thread:$0]  (!%p11400_p6), %s12641_s19, 5632, %s524_s25, [#allocation8], %s12615_s2, %s12615_s2, %s12619_s27  }
  0x3a   : > { %p10809_p12 = pnand %p10808_p11, %p10802_p8 }
  0x3c   : > { %10812 = shalt.err (!%p10809_p12)
}
  0x3d   : > { %s12642_s11 = sld [smem:[#allocation42_spill]]  ;;  %s10824_s19 = scalar_lea.vmem %s11404_s30, 18432 }
  0x3e   : > { %p10825_p13 = scmp.ne.s32.totalorder %s11404_s30, %s10824_s19  ;;  %p10832_p5 = scmp.lt.s32.totalorder %s11404_s30, %s11404_s30 }
  0x3f   : > { %p10833_p9 = scmp.lt.s32.totalorder %s10824_s19, %s10824_s19 }
  0x40   : > { %p10827_p0 = pnand %p10825_p13, %p11408_p7 }
  0x41   : > { %p10834_p8 = por %p10833_p9, %p10832_p5 }
  0x42   : > { %p10828_p2 = pneg %p10827_p0 }
  0x43   : > { %10642 = dma.hbm_to_vmem [thread:$0]  (!%p11400_p6), %s12642_s11, 16, %s551_s28, [#allocation11]  }
  0x44   : > { %p10835_p10 = pnand %p10834_p8, %p10828_p2 }
  0x46   : > { %10838 = shalt.err (!%p10835_p10)
}
  0x47   : > { %s12643_s6 = sld [smem:[#allocation44_spill]]  ;;  %s11245_s11 = smov [#allocation16]  }
  0x48   : > { %s597_s17 = sshll.u32 %s11245_s11, 4  ;;  %s11246_s20 = smov [#allocation19]   ;;  %s598_s17 = int_to_ptr.vmem [resolvable:$true] %s597_s17 }
  0x49   : > { %s624_s25 = sshll.u32 %s11246_s20, 4  ;;  %s10850_s28 = scalar_lea.vmem %s598_s17, 896  ;;  %s625_s25 = int_to_ptr.vmem [resolvable:$true] %s624_s25 }
  0x4a   : > { %p10851_p11 = scmp.ne.s32.totalorder %s598_s17, %s10850_s28  ;;  %p10858_p0 = scmp.lt.s32.totalorder %s598_s17, %s598_s17 }
  0x4b   : > { %p10859_p2 = scmp.lt.s32.totalorder %s10850_s28, %s10850_s28 }
  0x4c   : > { %p10853_p12 = pnand %p10851_p11, %p11408_p7 }
  0x4d   : > { %10648 = dma.hbm_to_vmem [thread:$0]  (!%p11400_p6), %s12643_s6, 18432, %s11404_s30, [#allocation14], %s12615_s2, %s12615_s2, %s12619_s27  }
  0x4e   : > { %p10854_p13 = pneg %p10853_p12  ;;  %p10860_p5 = por %p10859_p2, %p10858_p0 }
  0x50   : > { %p10861_p9 = pnand %p10860_p5, %p10854_p13 }
  0x52   : > { %10864 = shalt.err (!%p10861_p9)
}
  0x53   : > { %s12644_s8 = sld [smem:[#allocation46_spill]]  ;;  %s10876_s21 = scalar_lea.vmem %s625_s25, 16 }
  0x54   : > { %p10877_p8 = scmp.ne.s32.totalorder %s625_s25, %s10876_s21  ;;  %s10883_s19 = scalar_lea.vmem %s625_s25, 32 }
  0x55   : > { %p10884_p12 = scmp.lt.s32.totalorder %s625_s25, %s625_s25  ;;  %p10885_p13 = scmp.lt.s32.totalorder %s10883_s19, %s10876_s21 }
  0x56   : > { %p10879_p10 = pnand %p10877_p8, %p11408_p7 }
  0x57   : > { %p10886_p0 = por %p10885_p13, %p10884_p12 }
  0x58   : > { %p10880_p11 = pneg %p10879_p10 }
  0x59   : > { %10654 = dma.hbm_to_vmem [thread:$0]  (!%p11400_p6), %s12644_s8, 896, %s598_s17, [#allocation17], %s12615_s2, %s12615_s2, %s12619_s27  }
  0x5a   : > { %p10887_p2 = pnand %p10886_p0, %p10880_p11 }
  0x5c   : > { %10890 = shalt.err (!%p10887_p2)
}
  0x5d   : > { %10660 = dma.hbm_to_vmem [thread:$0]  (!%p11400_p6), %s12599_s10, 16, %s625_s25, [#allocation20]  }
  0x5e   : > { %s11247_s11 = smov [#allocation22]   ;;  %s12645_s30 = sld [smem:[#allocation38_spill]] }
  0x5f   : > { %s651_s17 = sshll.u32 %s11247_s11, 4  ;;  %s652_s17 = int_to_ptr.vmem [resolvable:$true] %s651_s17 }
  0x60   : > { %s10902_s2 = scalar_lea.vmem %s652_s17, 16  ;;  %s10909_s21 = scalar_lea.vmem %s652_s17, 32 }
  0x61   : > { %p10903_p5 = scmp.ne.s32.totalorder %s652_s17, %s10902_s2  ;;  %p10910_p10 = scmp.lt.s32.totalorder %s652_s17, %s652_s17 }
  0x62   : > { %p10911_p11 = scmp.lt.s32.totalorder %s10909_s21, %s10902_s2 }
  0x63   : > { %p10905_p9 = pnand %p10903_p5, %p11408_p7 }
  0x64   : > { %s513_s29 = sshll.u32 %s12645_s30, 4  ;;  %p10912_p12 = por %p10911_p11, %p10910_p10  ;;  %s514_s29 = int_to_ptr.vmem [resolvable:$true] %s513_s29 }
  0x65   : > { %p10906_p8 = pneg %p10905_p9 }
  0x67   : > { %p10913_p13 = pnand %p10912_p12, %p10906_p8 }
  0x69   : > { %10916 = shalt.err (!%p10913_p13)
}
  0x6a   : > { %10666 = dma.hbm_to_vmem [thread:$0]  (!%p11400_p6), %s12602_s13, 16, %s652_s17, [#allocation23]  }
  0x6b   : > { %s10917_s14 = scalar_lea.vmem %s514_s29, 16  ;;  %p10925_p5 = scmp.lt.s32.totalorder %s514_s29, %s514_s29 }
  0x6c   : > { %p10918_p0 = scmp.ne.s32.totalorder %s514_s29, %s10917_s14  ;;  %p10926_p9 = scmp.lt.s32.totalorder %s10917_s14, %s10917_s14 }
  0x6e   : > { %p10920_p2 = pnand %p10918_p0, %p11408_p7  ;;  %p10927_p1 = por %p10926_p9, %p10925_p5 }
  0x70   : > { %p10921_p4 = pneg %p10920_p2 }
  0x72   : > { %p10928_p3 = pnand %p10927_p1, %p10921_p4 }
  0x74   : > { %10931 = shalt.err (!%p10928_p3)
}
  0x75   : > { %s11248_s2 = smov [#allocation2]   ;;  %s11249_s16 = smov [#allocation9]  }
  0x76   : > { %10633 = dma.vmem_to_smem (!%p11400_p6), %s514_s29, 16, %s11248_s2, [#allocation5]  }
  0x77   : > { %s536_s11 = sshll.u32 %s11249_s16, 4  ;;  %s11250_s20 = smov [#allocation12]   ;;  %s537_s11 = int_to_ptr.vmem [resolvable:$true] %s536_s11 }
  0x78   : > { %s560_s17 = sshll.u32 %s11250_s20, 4  ;;  %s10943_s28 = scalar_lea.vmem %s537_s11, 11264  ;;  %s561_s17 = int_to_ptr.vmem [resolvable:$true] %s560_s17 }
  0x79   : > { %p10944_p8 = scmp.ne.s32.totalorder %s537_s11, %s10943_s28  ;;  %p10951_p12 = scmp.lt.s32.totalorder %s537_s11, %s537_s11 }
  0x7a   : > { %p10952_p13 = scmp.lt.s32.totalorder %s10943_s28, %s10943_s28 }
  0x7b   : > { %p10946_p10 = pnand %p10944_p8, %p11408_p7 }
  0x7c   : > { %p10953_p0 = por %p10952_p13, %p10951_p12 }
  0x7d   : > { %p10947_p11 = pneg %p10946_p10 }
  0x7f   : > { %p10954_p1 = pnand %p10953_p0, %p10947_p11 }
  0x81   : > { %10957 = shalt.err (!%p10954_p1)
}
  0x82   : > { %s12646_s30 = smov 128   ;;  %s12647_s25 = sld [smem:[#allocation41_spill]] }
  0x83   : > { %s10969_s19 = scalar_lea.vmem %s561_s17, 2304  ;;  %p10977_p5 = scmp.lt.s32.totalorder %s561_s17, %s561_s17 }
  0x84   : > { %p10970_p3 = scmp.ne.s32.totalorder %s561_s17, %s10969_s19  ;;  %p10978_p9 = scmp.lt.s32.totalorder %s10969_s19, %s10969_s19 }
  0x86   : > { %p10972_p4 = pnand %p10970_p3, %p11408_p7  ;;  %p10979_p8 = por %p10978_p9, %p10977_p5 }
  0x88   : > { %10639 = dma.hbm_to_vmem [thread:$0]  (!%p11400_p6), %s12647_s25, 11264, %s537_s11, [#allocation8], %s12646_s30, %s12646_s30, %s12619_s27  }
  0x89   : > { %p10973_p2 = pneg %p10972_p4 }
  0x8b   : > { %p10980_p10 = pnand %p10979_p8, %p10973_p2 }
  0x8d   : > { %10983 = shalt.err (!%p10980_p10)
}
  0x8e   : > { %s12648_s5 = sld [smem:[#allocation43_spill]]  ;;  %s11251_s16 = smov [#allocation15]  }
  0x8f   : > { %s587_s11 = sshll.u32 %s11251_s16, 4  ;;  %s11252_s20 = smov [#allocation18]   ;;  %s588_s11 = int_to_ptr.vmem [resolvable:$true] %s587_s11 }
  0x90   : > { %s610_s28 = sshll.u32 %s11252_s20, 4  ;;  %s10995_s29 = scalar_lea.vmem %s588_s11, 16  ;;  %s611_s28 = int_to_ptr.vmem [resolvable:$true] %s610_s28 }
  0x91   : > { %p10996_p11 = scmp.ne.s32.totalorder %s588_s11, %s10995_s29  ;;  %s11002_s21 = scalar_lea.vmem %s588_s11, 32 }
  0x92   : > { %p11003_p0 = scmp.lt.s32.totalorder %s588_s11, %s588_s11  ;;  %p11004_p1 = scmp.lt.s32.totalorder %s11002_s21, %s10995_s29 }
  0x93   : > { %p10998_p12 = pnand %p10996_p11, %p11408_p7 }
  0x94   : > { %10645 = dma.hbm_to_vmem [thread:$0]  (!%p11400_p6), %s12648_s5, 2304, %s561_s17, [#allocation11], %s12646_s30, %s12646_s30, %s12619_s27  }
  0x95   : > { %p10999_p13 = pneg %p10998_p12  ;;  %p11005_p3 = por %p11004_p1, %p11003_p0 }
  0x97   : > { %p11006_p4 = pnand %p11005_p3, %p10999_p13 }
  0x99   : > { %11009 = shalt.err (!%p11006_p4)
}
  0x9a   : > { %s12649_s7 = sld [smem:[#allocation45_spill]]  ;;  %s11021_s19 = scalar_lea.vmem %s611_s28, 14336 }
  0x9b   : > { %p11022_p2 = scmp.ne.s32.totalorder %s611_s28, %s11021_s19  ;;  %p11029_p8 = scmp.lt.s32.totalorder %s611_s28, %s611_s28 }
  0x9c   : > { %p11030_p10 = scmp.lt.s32.totalorder %s11021_s19, %s11021_s19 }
  0x9d   : > { %p11024_p5 = pnand %p11022_p2, %p11408_p7 }
  0x9e   : > { %p11031_p11 = por %p11030_p10, %p11029_p8 }
  0x9f   : > { %p11025_p9 = pneg %p11024_p5 }
  0xa0   : > { %10651 = dma.hbm_to_vmem [thread:$0]  (!%p11400_p6), %s12649_s7, 16, %s588_s11, [#allocation14]  }
  0xa1   : > { %p11032_p12 = pnand %p11031_p11, %p11025_p9 }
  0xa3   : > { %11035 = shalt.err (!%p11032_p12)
}
  0xa4   : > { %s12650_s9 = sld [smem:[#allocation47_spill]]  ;;  %s11253_s16 = smov [#allocation21]  }
  0xa5   : > { %s637_s11 = sshll.u32 %s11253_s16, 4  ;;  %s11254_s20 = smov [#allocation24]   ;;  %s638_s11 = int_to_ptr.vmem [resolvable:$true] %s637_s11 }
  0xa6   : > { %s664_s29 = sshll.u32 %s11254_s20, 4  ;;  %s11047_s21 = scalar_lea.vmem %s638_s11, 10240  ;;  %s665_s29 = int_to_ptr.vmem [resolvable:$true] %s664_s29 }
  0xa7   : > { %p11048_p13 = scmp.ne.s32.totalorder %s638_s11, %s11047_s21  ;;  %p11055_p3 = scmp.lt.s32.totalorder %s638_s11, %s638_s11 }
  0xa8   : > { %p11056_p4 = scmp.lt.s32.totalorder %s11047_s21, %s11047_s21 }
  0xa9   : > { %p11050_p0 = pnand %p11048_p13, %p11408_p7 }
  0xaa   : > { %10657 = dma.hbm_to_vmem [thread:$0]  (!%p11400_p6), %s12650_s9, 14336, %s611_s28, [#allocation17], %s12646_s30, %s12646_s30, %s12619_s27  }
  0xab   : > { %p11051_p1 = pneg %p11050_p0  ;;  %p11057_p2 = por %p11056_p4, %p11055_p3 }
  0xad   : > { %p11058_p5 = pnand %p11057_p2, %p11051_p1 }
  0xaf   : > { %11061 = shalt.err (!%p11058_p5)
}
  0xb0   : > { %10663 = dma.hbm_to_vmem [thread:$0]  (!%p11400_p6), %s12601_s12, 10240, %s638_s11, [#allocation20], %s12646_s30, %s12646_s30, %s12619_s27  }
  0xb1   : > { %s11073_s17 = scalar_lea.vmem %s665_s29, 6144  ;;  %p11081_p11 = scmp.lt.s32.totalorder %s665_s29, %s665_s29 }
  0xb2   : > { %p11074_p9 = scmp.ne.s32.totalorder %s665_s29, %s11073_s17  ;;  %p11082_p12 = scmp.lt.s32.totalorder %s11073_s17, %s11073_s17 }
  0xb4   : > { %p11076_p8 = pnand %p11074_p9, %p11408_p7  ;;  %p11083_p13 = por %p11082_p12, %p11081_p11 }
  0xb6   : > { %p11077_p10 = pneg %p11076_p8 }
  0xb8   : > { %p11084_p0 = pnand %p11083_p13, %p11077_p10 }
  0xba   : > { %11087 = shalt.err (!%p11084_p0)
}
  0xbb   : > { %10669 = dma.hbm_to_vmem [thread:$0]  (!%p11400_p6), %s12604_s15, 6144, %s665_s29, [#allocation23], %s12646_s30, %s12646_s30, %s12619_s27  }
  0xbc   : > { %s11255_s2 = smov [#allocation25]  }
  0xbd   : > { %s683_s16 = sshll.u32 %s11255_s2, 4  ;;  %s684_s16 = int_to_ptr.vmem [resolvable:$true] %s683_s16 }
  0xbe   : > { %s11099_s11 = scalar_lea.vmem %s684_s16, 3072  ;;  %p11107_p2 = scmp.lt.s32.totalorder %s684_s16, %s684_s16 }
  0xbf   : > { %p11100_p1 = scmp.ne.s32.totalorder %s684_s16, %s11099_s11  ;;  %p11108_p5 = scmp.lt.s32.totalorder %s11099_s11, %s11099_s11 }
  0xc1   : > { %p11102_p3 = pnand %p11100_p1, %p11408_p7  ;;  %p11109_p9 = por %p11108_p5, %p11107_p2 }
  0xc3   : > { %p11103_p4 = pneg %p11102_p3 }
  0xc5   : > { %p11110_p8 = pnand %p11109_p9, %p11103_p4 }
  0xc7   : > { %11113 = shalt.err (!%p11110_p8)
}
  0xc8   : > { %10672 = dma.hbm_to_vmem [thread:$0]  (!%p11400_p6), %s12607_s18, 3072, %s684_s16, [#allocation26], %s12646_s30, %s12646_s30, %s12619_s27  }
  0xc9   : > { %s7990_s4 = sadd.s32 4294967294, %s11238_s24   ;;  %s11544_s0 = sadd.s32 1, %s11238_s24  }
  0xca   : > { %s69_s21 = ssub.s32 %s11238_s24, %s11544_s0  ;;  %s72_s28 = sadd.s32 1, %s11234_s23 }
  0xcb   : > { %p70_p7 = scmp.eq.s32.totalorder %s69_s21, 0  ;;  %p79_p10 = scmp.ne.s32.totalorder %s11234_s23, %s11230_s22 }
  0xcc   : > { %p80_p11 = scmp.eq.s32.totalorder %s11238_s24, 0  ;;  %p85_p12 = scmp.ne.s32.totalorder %s11230_s22, %s11226_s1 }
  0xcd   : > { %s11555_s25 = scalar_select %p70_p7, %s11234_s23, %s72_s28  }
  0xce   : > { %p11557_p13 = por %p80_p11, %p79_p10  ;;  %p12652_p0 = scmp.eq.s32.totalorder %s11386_s3, 0 }
  0xcf   : > { %p487_p1 = scmp.eq.s32.totalorder %s11386_s3, 1  ;;  %p493_p3 = scmp.eq.s32.totalorder %s7990_s4, 1 }
  0xd0   : > { %p11563_p6 = por %p12652_p0, %p85_p12  ;;  %p10695_p4 = scmp.lt.s32.totalorder %s11238_s24, 2 }
  0xd1   : > { %s700_s14 = sand.u32 1, %s11234_s23   ;;  %p11570_p2 = por %p487_p1, %p79_p10 }
  0xd2   : > { %s12653_s19 = scalar_select %p11563_p6, 1, 0 }
  0xd3   : > { %s12654_s2 = scalar_select %p11570_p2, 1, 0 }
  0xd4   : > { %p11574_p5 = por %p493_p3, %p85_p12  ;;  %s8007_s11 = sshll.u32 %s700_s14, 6 }
  0xd5   : > { %s8180_s20 = sshll.u32 %s11238_s24, 10  ;;  %s12656_s28 = sld [smem:[#allocation39_spill]] }
  0xd6   : > { %s12655_s16 = scalar_select %p11574_p5, 1, 0 }
  0xd7   : > { %s704_s4 = scalar_lea.vmem [#allocation6], %s8007_s11  ;;  %p11588_p9 = pnand %p10695_p4, %p11557_p13 }
  0xd8   : > { %s711_s5 = sshll.u32 %s704_s4, 4  ;;  %s11592_s7 = scalar_lea.sflag [#allocation3], %s700_s14  ;;  %s11584_s5 = int_to_ptr.vmem [resolvable:$true] %s711_s5 }
  0xd9   : > { %p11116_p7 = pneg %p11588_p9 }
  0xdb   : > { %s11582_s27 = scalar_lea.hbm %s12656_s28, %s8180_s20  ;;  %s11119_s11 = scalar_lea.hbm %s12656_s28, 2048 }
  0xdc   : > { %s11114_s8 = scalar_lea.hbm %s11582_s27, 1024  ;;  %p11120_p12 = scmp.lt.s32.totalorder %s11582_s27, %s12656_s28 }
  0xdd   : > { %p11115_p8 = scmp.ne.s32.totalorder %s11582_s27, %s11114_s8  ;;  %p11121_p13 = scmp.lt.s32.totalorder %s11119_s11, %s11114_s8 }
  0xdf   : > { %p11117_p10 = pnand %p11116_p7, %p11115_p8  ;;  %p11122_p0 = por %p11121_p13, %p11120_p12 }
  0xe1   : > { %p11118_p11 = pneg %p11117_p10 }
  0xe3   : > { %p11123_p1 = pnand %p11122_p0, %p11118_p11 }
  0xe5   : > { %11126 = shalt.err (!%p11123_p1)
}
  0xe6   : > { %s11127_s17 = scalar_lea.vmem %s11584_s5, 1024  ;;  %s11256_s14 = smov [#allocation6]  }
  0xe7   : > { %p11128_p3 = scmp.ne.s32.totalorder %s11584_s5, %s11127_s17  ;;  %s11132_s9 = sshll.u32 %s11256_s14, 4  ;;  %s11133_s9 = int_to_ptr.vmem [resolvable:$false] %s11132_s9 }
  0xe8   : > { %s11134_s20 = scalar_lea.vmem %s11133_s9, 2048  ;;  %p11135_p10 = scmp.lt.s32.totalorder %s11584_s5, %s11133_s9 }
  0xe9   : > { %p11130_p4 = pnand %p11128_p3, %p11116_p7  ;;  %p11136_p5 = scmp.lt.s32.totalorder %s11134_s20, %s11127_s17 }
  0xeb   : > { %p11131_p8 = pneg %p11130_p4  ;;  %p11137_p2 = por %p11136_p5, %p11135_p10 }
  0xed   : > { %p11138_p6 = pnand %p11137_p2, %p11131_p8 }
  0xef   : > { %11141 = shalt.err (!%p11138_p6)
}
  0xf0   : > { %s12658_s8 = smov 8   ;;  %p12659_p7 = scmp.ne.s32.totalorder %s12638_s26, 0 }
  0xf1   : > { %10676 = dma.hbm_to_vmem [thread:$0]  (!%p11588_p9), %s11582_s27, 1024, %s11584_s5, %s11592_s7, %s12646_s30, %s12646_s30, %s12658_s8  }
  0xf2   : > { %723 = sbr.rel (%p12659_p7) target bundleno = 5244 (0x147c), region = 100  ;;  %p12660_p11 = scmp.eq.s32.totalorder (!%p12659_p7), %s11386_s3, 0 }
  0xf7   : > { %11185 = dma.done.wait (%p12660_p11), [#allocation5], 16   ;;  %p12661_p12 = pmov %p12660_p11 }
  0xf8   : > { %s11623_s9 = sand.u32 1, %s11230_s22   ;;  %p12662_p6 = scmp.ne.s32.totalorder %s12653_s19, 0 }
  0xf9   : > { %11187 = vsyncadd (%p12661_p12), [#allocation5], 4294967280  ;;  %s8012_s6 = sshll.u32 %s11623_s9, 6  ;;  %s730_s29 = scalar_lea.sflag [#allocation3], %s11623_s9 }
  0xfa   : > { %s11627_s11 = scalar_lea.vmem [#allocation6], %s8012_s6 }
  0xfb   : > { %11189 = dma.done.wait (%p12662_p6), %s730_s29, 1024  }
  0xfc   : > { %11191 = vsyncadd (%p12662_p6), %s730_s29, 4294966272  ;;  %p12663_p2 = pmov %p12660_p11 }
  0xfe   : > { %11193 = dma.done.wait (%p12663_p2), [#allocation8], 16896   ;;  %p12664_p5 = pmov %p12663_p2 }
  0xff   : > { %p12665_p9 = pmov %p12663_p2 }
 0x100   : > { %11195 = vsyncadd (%p12664_p5), [#allocation8], 4294950400 }
 0x101   : > { %11197 = dma.done.wait (%p12665_p9), [#allocation11], 2320   ;;  %p12666_p13 = pmov %p12663_p2 }
 0x102   : > { %p12667_p0 = pmov %p12663_p2 }
 0x103   : > { %11199 = vsyncadd (%p12666_p13), [#allocation11], 4294964976 }
 0x104   : > { %11201 = dma.done.wait (%p12667_p0), [#allocation14], 18448   ;;  %p12668_p1 = pmov %p12667_p0 }
 0x105   : > { %p12669_p3 = pmov %p12667_p0 }
 0x106   : > { %11203 = vsyncadd (%p12668_p1), [#allocation14], 4294948848 }
 0x107   : > { %11205 = dma.done.wait (%p12669_p3), [#allocation17], 15232   ;;  %p12670_p4 = pmov %p12667_p0 }
 0x108   : > { %p12671_p8 = pmov %p12667_p0 }
 0x109   : > { %11207 = vsyncadd (%p12670_p4), [#allocation17], 4294952064 }
 0x10a   : > { %11209 = dma.done.wait (%p12671_p8), [#allocation20], 10256   ;;  %p12672_p10 = pmov %p12667_p0 }
 0x10b   : > { %p12673_p7 = pmov %p12667_p0 }
 0x10c   : > { %11211 = vsyncadd (%p12672_p10), [#allocation20], 4294957040 }
 0x10d   : > { %11213 = dma.done.wait (%p12673_p7), [#allocation23], 6160   ;;  %p12674_p11 = pmov %p12667_p0 }
 0x10e   : > { %p12675_p12 = pmov %p12667_p0 }
 0x10f   : > { %11215 = vsyncadd (%p12674_p11), [#allocation23], 4294961136 }
 0x110   : > { %11217 = dma.done.wait (%p12675_p12), [#allocation26], 3072   ;;  %p12676_p6 = pmov %p12667_p0 }
 0x112   : > { %11219 = vsyncadd (%p12676_p6), [#allocation26], 4294964224 }
 0x113   : > { %790 = sfence }
 0x114   : > { %v11662_v0 = vld [vmem:[%s11627_s11 + $0x38] sm:$0xff]  ;;  %v11665_v1 = vld [vmem:[%s11627_s11 + $0x30] sm:$0xff]  ;;  %v11672_v2 = vld [vmem:[%s11627_s11 + $0x28] sm:$0xff]  ;;  %vm854_vm0 = vcmask 523264   ;;  %vm3200_vm1 = vcmask 261120   ;;  %s3188_s5 = sld [smem:[#allocation2]] }
 0x115   : > { %8986 = vmatprep.subr.mxu0 %v11662_v0  ;;  %9008 = vmatprep.subr.mxu1 %v11662_v0  ;;  %v11679_v3 = vld [vmem:[%s11627_s11 + $0x20] sm:$0xff]  ;;  %v11686_v4 = vld [vmem:[%s11627_s11 + $0x18] sm:$0xff]  ;;  %v11693_v5 = vld [vmem:[%s11627_s11 + $0x10] sm:$0xff]  ;;  %vm11258_vm6 = vmmov 0   ;;  %s8134_s7 = sld [smem:[#allocation2 + $0x1]]  ;;  %vm4813_vm9 = vcmask 130048  }
 0x116   : > { %8987 = vmatpush3.msra.mxu0 %v11662_v0  ;;  %9009 = vmatpush3.msra.mxu1 %v11662_v0  ;;  %v11700_v6 = vld [vmem:[%s11627_s11 + $0x8] sm:$0xff]  ;;  %v11707_v7 = vld [vmem:[%s11627_s11] sm:$0xff]  ;;  %v852_v12 = vld [vmem:[#allocation7 + $0x10] sm:$0xff]  ;;  %s8143_s26 = sld [smem:[#allocation2 + $0x2]]  ;;  %vm5964_vm11 = vcmask 64512   ;;  %vm6793_vm13 = vcmask 1043456  }
 0x117   : > { %8988 = vmatprep.subr.mxu0 %v11665_v1  ;;  %9010 = vmatprep.subr.mxu1 %v11665_v1  ;;  %v850_v8 = vld [vmem:[#allocation7] sm:$0xff]  ;;  %v851_v10 = vld [vmem:[#allocation7 + $0x8] sm:$0xff]  ;;  %v963_v13 = vld [vmem:[#allocation7 + $0x30] sm:$0xff]  ;;  %s12677_s19 = sld [smem:[#allocation48_spill]]  ;;  %vm6789_vm14 = vcmask 31744   ;;  %s8177_s20 = sshll.u32 %s11386_s3, 4 }
 0x118   : > { %8989 = vmatpush3.msra.mxu0 %v11665_v1  ;;  %9011 = vmatpush3.msra.mxu1 %v11665_v1  ;;  %v961_v9 = vld [vmem:[#allocation7 + $0x20] sm:$0xff]  ;;  %v962_v11 = vld [vmem:[#allocation7 + $0x28] sm:$0xff]  ;;  %v1070_v14 = vld [vmem:[#allocation9 + $0x78] sm:$0xff]  ;;  %s8154_s11 = sld [smem:[#allocation2 + $0x3]]  ;;  %s7776_s30 = scalar_lea.sflag [#allocation4], %s11623_s9 }
 0x119   : > { %8990 = vmatprep.subr.mxu0 %v11672_v2  ;;  %9012 = vmatprep.subr.mxu1 %v11672_v2  ;;  %v959_v15 = vld [vmem:[#allocation9 + $0x38] sm:$0xff]  ;;  %v1069_v18 = vld [vmem:[#allocation9 + $0x70] sm:$0xff]  ;;  %v1068_v20 = vld [vmem:[#allocation9 + $0x68] sm:$0xff]  ;;  %s8164_s17 = sld [smem:[#allocation2 + $0x4]]  ;;  %p12683_p5 = scmp.ne.s32.totalorder %s12654_s2, 0 }
 0x11a   : > { %8991 = vmatpush3.msra.mxu0 %v11672_v2  ;;  %9013 = vmatpush3.msra.mxu1 %v11672_v2  ;;  %v853_v16 = vld [vmem:[#allocation7 + $0x18] sm:$0xff]  ;;  %v958_v19 = vld [vmem:[#allocation9 + $0x30] sm:$0xff]  ;;  %v957_v21 = vld [vmem:[#allocation9 + $0x28] sm:$0xff]  ;;  %s12679_s8 = sld [smem:[#allocation50_spill]]  ;;  %s11259_s3 = smov [#allocation27]  }
 0x11b   : > { %8992 = vmatprep.subr.mxu0 %v11679_v3  ;;  %9014 = vmatprep.subr.mxu1 %v11679_v3  ;;  %v964_v17 = vld [vmem:[#allocation7 + $0x38] sm:$0xff]  ;;  %v1067_v22 = vld [vmem:[#allocation9 + $0x60] sm:$0xff]  ;;  %v1065_v26 = vld [vmem:[#allocation9 + $0x50] sm:$0xff]  ;;  %s8176_s21 = sld [smem:[#allocation2 + $0x5]] }
 0x11c   : > { %8993 = vmatpush3.msra.mxu0 %v11679_v3  ;;  %9015 = vmatpush3.msra.mxu1 %v11679_v3  ;;  %v956_v23 = vld [vmem:[#allocation9 + $0x20] sm:$0xff]  ;;  %v1066_v24 = vld [vmem:[#allocation9 + $0x58] sm:$0xff]  ;;  %v954_v27 = vld [vmem:[#allocation9 + $0x10] sm:$0xff]  ;;  %s12681_s14 = sld [smem:[#allocation52_spill]] }
 0x11d   : > { %8994 = vmatprep.subr.mxu0 %v11686_v4  ;;  %9016 = vmatprep.subr.mxu1 %v11686_v4  ;;  %v955_v25 = vld [vmem:[#allocation9 + $0x18] sm:$0xff]  ;;  %v1064_v28 = vld [vmem:[#allocation9 + $0x48] sm:$0xff]  ;;  %v1063_v30 = vld [vmem:[#allocation9 + $0x40] sm:$0xff] }
 0x11e   : > { %8995 = vmatpush3.msra.mxu0 %v11686_v4  ;;  %9017 = vmatpush3.msra.mxu1 %v11686_v4  ;;  %v953_v29 = vld [vmem:[#allocation9 + $0x8] sm:$0xff]  ;;  %v952_v31 = vld [vmem:[#allocation9] sm:$0xff]  ;;  %v1268_v42 = vld [vmem:[#allocation7 + $0x50] sm:$0xff] }
 0x11f   : > { %8996 = vmatprep.subr.mxu0 %v11693_v5  ;;  %9018 = vmatprep.subr.mxu1 %v11693_v5  ;;  %v1266_v40 = vld [vmem:[#allocation7 + $0x40] sm:$0xff]  ;;  %v1267_v41 = vld [vmem:[#allocation7 + $0x48] sm:$0xff]  ;;  %v1269_v43 = vld [vmem:[#allocation7 + $0x58] sm:$0xff] }
 0x120   : > { %8997 = vmatpush3.msra.mxu0 %v11693_v5  ;;  %9019 = vmatpush3.msra.mxu1 %v11693_v5  ;;  %v1478_v44 = vld [vmem:[#allocation7 + $0x60] sm:$0xff]  ;;  %v1479_v45 = vld [vmem:[#allocation7 + $0x68] sm:$0xff]  ;;  %v1480_v46 = vld [vmem:[#allocation7 + $0x70] sm:$0xff] }
 0x121   : > { %8998 = vmatprep.subr.mxu0 %v11700_v6  ;;  %9020 = vmatprep.subr.mxu1 %v11700_v6  ;;  %v1481_v47 = vld [vmem:[#allocation7 + $0x78] sm:$0xff]  ;;  %v1690_v48 = vld [vmem:[#allocation7 + $0x80] sm:$0xff]  ;;  %v1691_v49 = vld [vmem:[#allocation7 + $0x88] sm:$0xff] }
 0x122   : > { %8999 = vmatpush3.msra.mxu0 %v11700_v6  ;;  %9021 = vmatpush3.msra.mxu1 %v11700_v6  ;;  %v1692_v50 = vld [vmem:[#allocation7 + $0x90] sm:$0xff]  ;;  %v1693_v51 = vld [vmem:[#allocation7 + $0x98] sm:$0xff]  ;;  %v1902_v52 = vld [vmem:[#allocation7 + $0xa0] sm:$0xff] }
 0x123   : > { %9000 = vmatprep.subr.mxu0 %v11707_v7  ;;  %9022 = vmatprep.subr.mxu1 %v11707_v7  ;;  %v1903_v53 = vld [vmem:[#allocation7 + $0xa8] sm:$0xff]  ;;  %v1904_v54 = vld [vmem:[#allocation7 + $0xb0] sm:$0xff]  ;;  %v1905_v55 = vld [vmem:[#allocation7 + $0xb8] sm:$0xff] }
 0x124   : > { %9001 = vmatpush3.msra.mxu0 %v11707_v7  ;;  %9002 = vmatprep.mubr.msk.f32.mxu0 %vm854_vm0, %v850_v8  ;;  %v2114_v56 = vld [vmem:[#allocation7 + $0xc0] sm:$0xff]  ;;  %v1375_v57 = vld [vmem:[#allocation9 + $0xb8] sm:$0xff]  ;;  %v1374_v58 = vld [vmem:[#allocation9 + $0xb0] sm:$0xff] }
 0x125   : > { %9023 = vmatpush3.msra.mxu1 %v11707_v7  ;;  %9024 = vmatprep.mubr.msk.f32.mxu1 %vm854_vm0, %v961_v9  ;;  %v1373_v59 = vld [vmem:[#allocation9 + $0xa8] sm:$0xff]  ;;  %v1372_v60 = vld [vmem:[#allocation9 + $0xa0] sm:$0xff]  ;;  %v1371_v61 = vld [vmem:[#allocation9 + $0x98] sm:$0xff] }
 0x126   : > { %9003 = vmatmul.mubr.msk.f32.vlgmr.msra.gmra.mxu0 %vm854_vm0, %v851_v10  ;;  %9025 = vmatmul.mubr.msk.f32.vlgmr.msra.gmra.mxu1 %vm854_vm0, %v962_v11  ;;  %v2115_v62 = vld [vmem:[#allocation7 + $0xc8] sm:$0xff]  ;;  %v2116_v63 = vld [vmem:[#allocation7 + $0xd0] sm:$0xff]  ;;  %v2117_v9 = vld [vmem:[#allocation7 + $0xd8] sm:$0xff] }
 0x127   : > { %9005 = vmatprep.mubr.msk.f32.mxu0 %vm854_vm0, %v852_v12  ;;  %9027 = vmatprep.mubr.msk.f32.mxu1 %vm854_vm0, %v963_v13  ;;  %v1370_v8 = vld [vmem:[#allocation9 + $0x90] sm:$0xff]  ;;  %v2326_v10 = vld [vmem:[#allocation7 + $0xe0] sm:$0xff]  ;;  %v1369_v11 = vld [vmem:[#allocation9 + $0x88] sm:$0xff] }
 0x128   : > { %9030 = vmatprep.subr.mxu0 %v1070_v14  ;;  %9052 = vmatprep.subr.mxu1 %v959_v15  ;;  %v1368_v12 = vld [vmem:[#allocation9 + $0x80] sm:$0xff]  ;;  %v11842_v13 = vld [vmem:[#allocation9 + $0xf8] sm:$0xff] }
 0x129   : > { %9031 = vmatpush3.msra.mxu0 %v1070_v14  ;;  %9053 = vmatpush3.msra.mxu1 %v959_v15  ;;  %v2327_v14 = vld [vmem:[#allocation7 + $0xe8] sm:$0xff]  ;;  %v2328_v15 = vld [vmem:[#allocation7 + $0xf0] sm:$0xff] }
 0x12a   : > { %9006 = vmatmul.mubr.msk.f32.gmra.mxu0 %vm854_vm0, %v853_v16  ;;  %9028 = vmatmul.mubr.msk.f32.gmra.mxu1 %vm854_vm0, %v964_v17  ;;  %v2329_v16 = vld [vmem:[#allocation7 + $0xf8] sm:$0xff]  ;;  %v2538_v17 = vld [vmem:[#allocation7 + $0x100] sm:$0xff] }
 0x12b   : > { %9032 = vmatprep.subr.mxu0 %v1069_v18  ;;  %9054 = vmatprep.subr.mxu1 %v958_v19 }
 0x12c   : > { %9033 = vmatpush3.msra.mxu0 %v1069_v18  ;;  %9055 = vmatpush3.msra.mxu1 %v958_v19  ;;  %v2539_v18 = vld [vmem:[#allocation7 + $0x108] sm:$0xff]  ;;  %v2540_v19 = vld [vmem:[#allocation7 + $0x110] sm:$0xff] }
 0x12d   : > { %9034 = vmatprep.subr.mxu0 %v1068_v20  ;;  %9056 = vmatprep.subr.mxu1 %v957_v21 }
 0x12e   : > { %9035 = vmatpush3.msra.mxu0 %v1068_v20  ;;  %9057 = vmatpush3.msra.mxu1 %v957_v21  ;;  %v2541_v20 = vld [vmem:[#allocation7 + $0x118] sm:$0xff]  ;;  %v2750_v21 = vld [vmem:[#allocation7 + $0x120] sm:$0xff] }
 0x12f   : > { %9036 = vmatprep.subr.mxu0 %v1067_v22  ;;  %9058 = vmatprep.subr.mxu1 %v956_v23 }
 0x130   : > { %9037 = vmatpush3.msra.mxu0 %v1067_v22  ;;  %9059 = vmatpush3.msra.mxu1 %v956_v23  ;;  %v2751_v22 = vld [vmem:[#allocation7 + $0x128] sm:$0xff]  ;;  %v2752_v23 = vld [vmem:[#allocation7 + $0x130] sm:$0xff] }
 0x131   : > { %9038 = vmatprep.subr.mxu0 %v1066_v24  ;;  %9060 = vmatprep.subr.mxu1 %v955_v25 }
 0x132   : > { %9039 = vmatpush3.msra.mxu0 %v1066_v24  ;;  %9061 = vmatpush3.msra.mxu1 %v955_v25  ;;  %v2753_v24 = vld [vmem:[#allocation7 + $0x138] sm:$0xff]  ;;  %v2962_v25 = vld [vmem:[#allocation7 + $0x140] sm:$0xff] }
 0x133   : > { %9040 = vmatprep.subr.mxu0 %v1065_v26  ;;  %9062 = vmatprep.subr.mxu1 %v954_v27 }
 0x134   : > { %9041 = vmatpush3.msra.mxu0 %v1065_v26  ;;  %9063 = vmatpush3.msra.mxu1 %v954_v27 }
 0x135   : > { %9042 = vmatprep.subr.mxu0 %v1064_v28  ;;  %9064 = vmatprep.subr.mxu1 %v953_v29 }
 0x136   : > { %9043 = vmatpush3.msra.mxu0 %v1064_v28  ;;  %9065 = vmatpush3.msra.mxu1 %v953_v29  ;;  %v1585_v29 = vld [vmem:[#allocation9 + $0xe8] sm:$0xff] }
 0x137   : > { %9044 = vmatprep.subr.mxu0 %v1063_v30  ;;  %9066 = vmatprep.subr.mxu1 %v952_v31 }
 0x138   : > { %9045 = vmatpush3.msra.mxu0 %v1063_v30  ;;  %9067 = vmatpush3.msra.mxu1 %v952_v31  ;;  %v1584_v31 = vld [vmem:[#allocation9 + $0xe0] sm:$0xff] }
 0x139   : > { %9074 = vmatprep.subr.mxu0 %v11662_v0  ;;  %9096 = vmatprep.subr.mxu1 %v1375_v57 }
 0x1e6   : > { %v9004_v32 = vpop.f32.mrf.mxu0  ;;  %v9026_v33 = vpop.f32.mrf.mxu1 }
 0x1e8   : > { %v933_v34 = vpop.f32.mrf.mxu0  ;;  %v1043_v35 = vpop.f32.mrf.mxu1 }
 0x1e9   : > { %9046 = vmatprep.mubr.msk.f32.mxu0 %vm854_vm0, %v1043_v35  ;;  %9068 = vmatprep.mubr.msk.f32.mxu1 %vm854_vm0, %v933_v34  ;;  %v1581_v34 = vld [vmem:[#allocation9 + $0xc8] sm:$0xff]  ;;  %v1580_v35 = vld [vmem:[#allocation9 + $0xc0] sm:$0xff] }
 0x1ea   : > { %9047 = vmatmul.mubr.msk.f32.vlgmr.msra.gmra.mxu0 %vm854_vm0, %v9026_v33  ;;  %9069 = vmatmul.mubr.msk.f32.vlgmr.msra.gmra.mxu1 %vm854_vm0, %v9004_v32  ;;  %v9007_v36 = vpop.f32.mrf.mxu0  ;;  %v9029_v37 = vpop.f32.mrf.mxu1  ;;  %v1583_v32 = vld [vmem:[#allocation9 + $0xd8] sm:$0xff]  ;;  %v1582_v33 = vld [vmem:[#allocation9 + $0xd0] sm:$0xff] }
 0x1eb   : > { %9075 = vmatpush3.msra.mxu0 %v11662_v0  ;;  %9097 = vmatpush3.msra.mxu1 %v1375_v57  ;;  %v2006_v57 = vld [vmem:[#allocation9 + $0x150] sm:$0xff] }
 0x1ec   : > { %9076 = vmatprep.subr.mxu0 %v11665_v1  ;;  %v943_v38 = vpop.f32.mrf.mxu0  ;;  %v1053_v39 = vpop.f32.mrf.mxu1  ;;  %9098 = vmatprep.subr.mxu1 %v1374_v58 }
 0x1ed   : > { %9077 = vmatpush3.msra.mxu0 %v11665_v1  ;;  %9049 = vmatprep.mubr.msk.f32.mxu0 %vm854_vm0, %v1053_v39  ;;  %v1798_v39 = vld [vmem:[#allocation9 + $0x130] sm:$0xff] }
 0x1ee   : > { %9078 = vmatprep.subr.mxu0 %v11672_v2  ;;  %9071 = vmatprep.mubr.msk.f32.mxu1 %vm854_vm0, %v943_v38 }
 0x1ef   : > { %9079 = vmatpush3.msra.mxu0 %v11672_v2  ;;  %9072 = vmatmul.mubr.msk.f32.gmra.mxu1 %vm854_vm0, %v9007_v36 }
 0x1f0   : > { %9080 = vmatprep.subr.mxu0 %v11679_v3  ;;  %9050 = vmatmul.mubr.msk.f32.gmra.mxu0 %vm854_vm0, %v9029_v37  ;;  %v1799_v37 = vld [vmem:[#allocation9 + $0x138] sm:$0xff] }
 0x1f1   : > { %9081 = vmatpush3.msra.mxu0 %v11679_v3  ;;  %9090 = vmatprep.mubr.msk.f32.mxu0 %vm854_vm0, %v1266_v40 }
 0x1f2   : > { %9082 = vmatprep.subr.mxu0 %v11686_v4  ;;  %9099 = vmatpush3.msra.mxu1 %v1374_v58  ;;  %v2005_v58 = vld [vmem:[#allocation9 + $0x148] sm:$0xff] }
 0x1f3   : > { %9083 = vmatpush3.msra.mxu0 %v11686_v4  ;;  %9100 = vmatprep.subr.mxu1 %v1373_v59 }
 0x1f4   : > { %9084 = vmatprep.subr.mxu0 %v11693_v5  ;;  %9101 = vmatpush3.msra.mxu1 %v1373_v59  ;;  %v2004_v59 = vld [vmem:[#allocation9 + $0x140] sm:$0xff] }
 0x1f5   : > { %9085 = vmatpush3.msra.mxu0 %v11693_v5  ;;  %9102 = vmatprep.subr.mxu1 %v1372_v60 }
 0x1f6   : > { %9086 = vmatprep.subr.mxu0 %v11700_v6  ;;  %9103 = vmatpush3.msra.mxu1 %v1372_v60 }
 0x1f7   : > { %9087 = vmatpush3.msra.mxu0 %v11700_v6  ;;  %9104 = vmatprep.subr.mxu1 %v1371_v61 }
 0x1f8   : > { %9088 = vmatprep.subr.mxu0 %v11707_v7  ;;  %9105 = vmatpush3.msra.mxu1 %v1371_v61  ;;  %v2223_v61 = vld [vmem:[#allocation9 + $0x1b8] sm:$0xff] }
 0x1f9   : > { %9089 = vmatpush3.msra.mxu0 %v11707_v7  ;;  %9106 = vmatprep.subr.mxu1 %v1370_v8 }
 0x1fa   : > { %9091 = vmatmul.mubr.msk.f32.vlgmr.msra.gmra.mxu0 %vm854_vm0, %v1267_v41  ;;  %9118 = vmatprep.subr.mxu0 %v11662_v0  ;;  %v1797_v41 = vld [vmem:[#allocation9 + $0x128] sm:$0xff] }
 0x1fb   : > { %9119 = vmatpush3.msra.mxu0 %v11662_v0  ;;  %9093 = vmatprep.mubr.msk.f32.mxu0 %vm854_vm0, %v1268_v42 }
 0x1fc   : > { %9120 = vmatprep.subr.mxu0 %v11665_v1  ;;  %9107 = vmatpush3.msra.mxu1 %v1370_v8 }
 0x1fd   : > { %9121 = vmatpush3.msra.mxu0 %v11665_v1  ;;  %9108 = vmatprep.subr.mxu1 %v1369_v11 }
 0x1fe   : > { %9094 = vmatmul.mubr.msk.f32.gmra.mxu0 %vm854_vm0, %v1269_v43  ;;  %9122 = vmatprep.subr.mxu0 %v11672_v2  ;;  %v1796_v43 = vld [vmem:[#allocation9 + $0x120] sm:$0xff] }
 0x1ff   : > { %9123 = vmatpush3.msra.mxu0 %v11672_v2  ;;  %9134 = vmatprep.mubr.msk.f32.mxu0 %vm854_vm0, %v1478_v44  ;;  %v1795_v44 = vld [vmem:[#allocation9 + $0x118] sm:$0xff] }
 0x200   : > { %9124 = vmatprep.subr.mxu0 %v11679_v3  ;;  %9109 = vmatpush3.msra.mxu1 %v1369_v11  ;;  %v2220_v11 = vld [vmem:[#allocation9 + $0x1a0] sm:$0xff] }
 0x201   : > { %9125 = vmatpush3.msra.mxu0 %v11679_v3  ;;  %9110 = vmatprep.subr.mxu1 %v1368_v12 }
 0x202   : > { %9126 = vmatprep.subr.mxu0 %v11686_v4  ;;  %9111 = vmatpush3.msra.mxu1 %v1368_v12  ;;  %v2219_v12 = vld [vmem:[#allocation9 + $0x198] sm:$0xff] }
 0x203   : > { %9127 = vmatpush3.msra.mxu0 %v11686_v4  ;;  %9140 = vmatprep.subr.mxu1 %v11842_v13 }
 0x204   : > { %9128 = vmatprep.subr.mxu0 %v11693_v5 }
 0x205   : > { %9129 = vmatpush3.msra.mxu0 %v11693_v5 }
 0x206   : > { %9130 = vmatprep.subr.mxu0 %v11700_v6 }
 0x207   : > { %9131 = vmatpush3.msra.mxu0 %v11700_v6 }
 0x208   : > { %9132 = vmatprep.subr.mxu0 %v11707_v7 }
 0x209   : > { %9133 = vmatpush3.msra.mxu0 %v11707_v7 }
 0x20a   : > { %9135 = vmatmul.mubr.msk.f32.vlgmr.msra.gmra.mxu0 %vm854_vm0, %v1479_v45  ;;  %9162 = vmatprep.subr.mxu0 %v11662_v0  ;;  %v1794_v45 = vld [vmem:[#allocation9 + $0x110] sm:$0xff] }
 0x20b   : > { %9163 = vmatpush3.msra.mxu0 %v11662_v0  ;;  %9137 = vmatprep.mubr.msk.f32.mxu0 %vm854_vm0, %v1480_v46  ;;  %v1793_v46 = vld [vmem:[#allocation9 + $0x108] sm:$0xff] }
 0x20c   : > { %9164 = vmatprep.subr.mxu0 %v11665_v1 }
 0x20d   : > { %9165 = vmatpush3.msra.mxu0 %v11665_v1 }
 0x20e   : > { %9138 = vmatmul.mubr.msk.f32.gmra.mxu0 %vm854_vm0, %v1481_v47  ;;  %9166 = vmatprep.subr.mxu0 %v11672_v2  ;;  %v1792_v47 = vld [vmem:[#allocation9 + $0x100] sm:$0xff] }
 0x20f   : > { %9167 = vmatpush3.msra.mxu0 %v11672_v2  ;;  %9178 = vmatprep.mubr.msk.f32.mxu0 %vm854_vm0, %v1690_v48 }
 0x210   : > { %9168 = vmatprep.subr.mxu0 %v11679_v3 }
 0x211   : > { %9169 = vmatpush3.msra.mxu0 %v11679_v3 }
 0x212   : > { %9170 = vmatprep.subr.mxu0 %v11686_v4 }
 0x213   : > { %9171 = vmatpush3.msra.mxu0 %v11686_v4 }
 0x214   : > { %9172 = vmatprep.subr.mxu0 %v11693_v5 }
 0x215   : > { %9173 = vmatpush3.msra.mxu0 %v11693_v5 }
 0x216   : > { %9174 = vmatprep.subr.mxu0 %v11700_v6 }
 0x217   : > { %9175 = vmatpush3.msra.mxu0 %v11700_v6 }
 0x218   : > { %9176 = vmatprep.subr.mxu0 %v11707_v7 }
 0x219   : > { %9177 = vmatpush3.msra.mxu0 %v11707_v7 }
 0x21a   : > { %9179 = vmatmul.mubr.msk.f32.vlgmr.msra.gmra.mxu0 %vm854_vm0, %v1691_v49  ;;  %9206 = vmatprep.subr.mxu0 %v11662_v0  ;;  %v2011_v49 = vld [vmem:[#allocation9 + $0x178] sm:$0xff] }
 0x21b   : > { %9207 = vmatpush3.msra.mxu0 %v11662_v0  ;;  %9181 = vmatprep.mubr.msk.f32.mxu0 %vm854_vm0, %v1692_v50 }
 0x21c   : > { %9208 = vmatprep.subr.mxu0 %v11665_v1 }
 0x21d   : > { %9209 = vmatpush3.msra.mxu0 %v11665_v1 }
 0x21e   : > { %9182 = vmatmul.mubr.msk.f32.gmra.mxu0 %vm854_vm0, %v1693_v51  ;;  %9210 = vmatprep.subr.mxu0 %v11672_v2  ;;  %v2010_v51 = vld [vmem:[#allocation9 + $0x170] sm:$0xff] }
 0x21f   : > { %9211 = vmatpush3.msra.mxu0 %v11672_v2  ;;  %9222 = vmatprep.mubr.msk.f32.mxu0 %vm854_vm0, %v1902_v52 }
 0x220   : > { %9212 = vmatprep.subr.mxu0 %v11679_v3 }
 0x221   : > { %9213 = vmatpush3.msra.mxu0 %v11679_v3 }
 0x222   : > { %9214 = vmatprep.subr.mxu0 %v11686_v4 }
 0x223   : > { %9215 = vmatpush3.msra.mxu0 %v11686_v4 }
 0x224   : > { %9216 = vmatprep.subr.mxu0 %v11693_v5 }
 0x225   : > { %9217 = vmatpush3.msra.mxu0 %v11693_v5 }
 0x226   : > { %9218 = vmatprep.subr.mxu0 %v11700_v6 }
 0x227   : > { %9219 = vmatpush3.msra.mxu0 %v11700_v6 }
 0x228   : > { %9220 = vmatprep.subr.mxu0 %v11707_v7 }
 0x229   : > { %9221 = vmatpush3.msra.mxu0 %v11707_v7 }
 0x22a   : > { %9223 = vmatmul.mubr.msk.f32.vlgmr.msra.gmra.mxu0 %vm854_vm0, %v1903_v53  ;;  %9250 = vmatprep.subr.mxu0 %v11662_v0  ;;  %v2009_v53 = vld [vmem:[#allocation9 + $0x168] sm:$0xff] }
 0x22b   : > { %9251 = vmatpush3.msra.mxu0 %v11662_v0  ;;  %9225 = vmatprep.mubr.msk.f32.mxu0 %vm854_vm0, %v1904_v54 }
 0x22c   : > { %9252 = vmatprep.subr.mxu0 %v11665_v1 }
 0x22d   : > { %9253 = vmatpush3.msra.mxu0 %v11665_v1 }
 0x22e   : > { %9226 = vmatmul.mubr.msk.f32.gmra.mxu0 %vm854_vm0, %v1905_v55  ;;  %9254 = vmatprep.subr.mxu0 %v11672_v2  ;;  %v2008_v55 = vld [vmem:[#allocation9 + $0x160] sm:$0xff] }
 0x22f   : > { %9255 = vmatpush3.msra.mxu0 %v11672_v2  ;;  %9266 = vmatprep.mubr.msk.f32.mxu0 %vm854_vm0, %v2114_v56  ;;  %v2007_v56 = vld [vmem:[#allocation9 + $0x158] sm:$0xff] }
 0x230   : > { %9256 = vmatprep.subr.mxu0 %v11679_v3 }
 0x231   : > { %9257 = vmatpush3.msra.mxu0 %v11679_v3 }
 0x232   : > { %9258 = vmatprep.subr.mxu0 %v11686_v4 }
 0x233   : > { %9259 = vmatpush3.msra.mxu0 %v11686_v4 }
 0x234   : > { %9260 = vmatprep.subr.mxu0 %v11693_v5 }
 0x235   : > { %9261 = vmatpush3.msra.mxu0 %v11693_v5 }
 0x236   : > { %9262 = vmatprep.subr.mxu0 %v11700_v6 }
 0x237   : > { %9263 = vmatpush3.msra.mxu0 %v11700_v6 }
 0x238   : > { %9264 = vmatprep.subr.mxu0 %v11707_v7 }
 0x239   : > { %9265 = vmatpush3.msra.mxu0 %v11707_v7 }
 0x23a   : > { %9267 = vmatmul.mubr.msk.f32.vlgmr.msra.gmra.mxu0 %vm854_vm0, %v2115_v62  ;;  %9294 = vmatprep.subr.mxu0 %v11662_v0 }
 0x23b   : > { %9295 = vmatpush3.msra.mxu0 %v11662_v0  ;;  %9269 = vmatprep.mubr.msk.f32.mxu0 %vm854_vm0, %v2116_v63  ;;  %v2222_v63 = vld [vmem:[#allocation9 + $0x1b0] sm:$0xff] }
 0x23c   : > { %9296 = vmatprep.subr.mxu0 %v11665_v1 }
 0x23d   : > { %9297 = vmatpush3.msra.mxu0 %v11665_v1 }
 0x23e   : > { %9270 = vmatmul.mubr.msk.f32.gmra.mxu0 %vm854_vm0, %v2117_v9  ;;  %9298 = vmatprep.subr.mxu0 %v11672_v2  ;;  %v2221_v9 = vld [vmem:[#allocation9 + $0x1a8] sm:$0xff] }
 0x23f   : > { %9299 = vmatpush3.msra.mxu0 %v11672_v2  ;;  %9310 = vmatprep.mubr.msk.f32.mxu0 %vm854_vm0, %v2326_v10 }
 0x240   : > { %9300 = vmatprep.subr.mxu0 %v11679_v3 }
 0x241   : > { %9301 = vmatpush3.msra.mxu0 %v11679_v3 }
 0x242   : > { %9302 = vmatprep.subr.mxu0 %v11686_v4 }
 0x243   : > { %9303 = vmatpush3.msra.mxu0 %v11686_v4 }
 0x244   : > { %9304 = vmatprep.subr.mxu0 %v11693_v5 }
 0x245   : > { %9305 = vmatpush3.msra.mxu0 %v11693_v5 }
 0x246   : > { %9306 = vmatprep.subr.mxu0 %v11700_v6 }
 0x247   : > { %9307 = vmatpush3.msra.mxu0 %v11700_v6 }
 0x248   : > { %9308 = vmatprep.subr.mxu0 %v11707_v7 }
 0x249   : > { %9309 = vmatpush3.msra.mxu0 %v11707_v7 }
 0x24a   : > { %9311 = vmatmul.mubr.msk.f32.vlgmr.msra.gmra.mxu0 %vm854_vm0, %v2327_v14  ;;  %9338 = vmatprep.subr.mxu0 %v11662_v0  ;;  %v2217_v14 = vld [vmem:[#allocation9 + $0x188] sm:$0xff] }
 0x24b   : > { %9339 = vmatpush3.msra.mxu0 %v11662_v0  ;;  %9313 = vmatprep.mubr.msk.f32.mxu0 %vm854_vm0, %v2328_v15  ;;  %v2216_v15 = vld [vmem:[#allocation9 + $0x180] sm:$0xff] }
 0x24c   : > { %9340 = vmatprep.subr.mxu0 %v11665_v1 }
 0x24d   : > { %9341 = vmatpush3.msra.mxu0 %v11665_v1 }
 0x24e   : > { %9314 = vmatmul.mubr.msk.f32.gmra.mxu0 %vm854_vm0, %v2329_v16  ;;  %9342 = vmatprep.subr.mxu0 %v11672_v2 }
 0x24f   : > { %9343 = vmatpush3.msra.mxu0 %v11672_v2  ;;  %9354 = vmatprep.mubr.msk.f32.mxu0 %vm854_vm0, %v2538_v17  ;;  %v2435_v17 = vld [vmem:[#allocation9 + $0x1f8] sm:$0xff] }
 0x250   : > { %9344 = vmatprep.subr.mxu0 %v11679_v3 }
 0x251   : > { %9345 = vmatpush3.msra.mxu0 %v11679_v3 }
 0x252   : > { %9346 = vmatprep.subr.mxu0 %v11686_v4 }
 0x253   : > { %9347 = vmatpush3.msra.mxu0 %v11686_v4 }
 0x254   : > { %9348 = vmatprep.subr.mxu0 %v11693_v5 }
 0x255   : > { %9349 = vmatpush3.msra.mxu0 %v11693_v5 }
 0x256   : > { %9350 = vmatprep.subr.mxu0 %v11700_v6 }
 0x257   : > { %9351 = vmatpush3.msra.mxu0 %v11700_v6 }
 0x258   : > { %9352 = vmatprep.subr.mxu0 %v11707_v7 }
 0x259   : > { %9353 = vmatpush3.msra.mxu0 %v11707_v7 }
 0x25a   : > { %9355 = vmatmul.mubr.msk.f32.vlgmr.msra.gmra.mxu0 %vm854_vm0, %v2539_v18  ;;  %9382 = vmatprep.subr.mxu0 %v11662_v0 }
 0x25b   : > { %9383 = vmatpush3.msra.mxu0 %v11662_v0  ;;  %9357 = vmatprep.mubr.msk.f32.mxu0 %vm854_vm0, %v2540_v19  ;;  %v2434_v19 = vld [vmem:[#allocation9 + $0x1f0] sm:$0xff] }
 0x25c   : > { %9384 = vmatprep.subr.mxu0 %v11665_v1 }
 0x25d   : > { %9385 = vmatpush3.msra.mxu0 %v11665_v1 }
 0x25e   : > { %9358 = vmatmul.mubr.msk.f32.gmra.mxu0 %vm854_vm0, %v2541_v20  ;;  %9386 = vmatprep.subr.mxu0 %v11672_v2 }
 0x25f   : > { %9387 = vmatpush3.msra.mxu0 %v11672_v2  ;;  %9398 = vmatprep.mubr.msk.f32.mxu0 %vm854_vm0, %v2750_v21  ;;  %v2433_v21 = vld [vmem:[#allocation9 + $0x1e8] sm:$0xff] }
 0x260   : > { %9388 = vmatprep.subr.mxu0 %v11679_v3 }
 0x261   : > { %9389 = vmatpush3.msra.mxu0 %v11679_v3 }
 0x262   : > { %9390 = vmatprep.subr.mxu0 %v11686_v4 }
 0x263   : > { %9391 = vmatpush3.msra.mxu0 %v11686_v4 }
 0x264   : > { %9392 = vmatprep.subr.mxu0 %v11693_v5 }
 0x265   : > { %9393 = vmatpush3.msra.mxu0 %v11693_v5 }
 0x266   : > { %9394 = vmatprep.subr.mxu0 %v11700_v6 }
 0x267   : > { %9395 = vmatpush3.msra.mxu0 %v11700_v6 }
 0x268   : > { %9396 = vmatprep.subr.mxu0 %v11707_v7 }
 0x269   : > { %9397 = vmatpush3.msra.mxu0 %v11707_v7 }
 0x26a   : > { %9399 = vmatmul.mubr.msk.f32.vlgmr.msra.gmra.mxu0 %vm854_vm0, %v2751_v22  ;;  %9426 = vmatprep.subr.mxu0 %v11662_v0 }
 0x26b   : > { %9427 = vmatpush3.msra.mxu0 %v11662_v0  ;;  %9401 = vmatprep.mubr.msk.f32.mxu0 %vm854_vm0, %v2752_v23  ;;  %v2963_v0 = vld [vmem:[#allocation7 + $0x148] sm:$0xff]  ;;  %v2432_v23 = vld [vmem:[#allocation9 + $0x1e0] sm:$0xff] }
 0x26c   : > { %9428 = vmatprep.subr.mxu0 %v11665_v1 }
 0x26d   : > { %9429 = vmatpush3.msra.mxu0 %v11665_v1  ;;  %v2964_v1 = vld [vmem:[#allocation7 + $0x150] sm:$0xff] }
 0x26e   : > { %9402 = vmatmul.mubr.msk.f32.gmra.mxu0 %vm854_vm0, %v2753_v24  ;;  %9430 = vmatprep.subr.mxu0 %v11672_v2  ;;  %v2431_v24 = vld [vmem:[#allocation9 + $0x1d8] sm:$0xff] }
 0x26f   : > { %9431 = vmatpush3.msra.mxu0 %v11672_v2  ;;  %9442 = vmatprep.mubr.msk.f32.mxu0 %vm854_vm0, %v2962_v25  ;;  %v2965_v2 = vld [vmem:[#allocation7 + $0x158] sm:$0xff]  ;;  %v2430_v25 = vld [vmem:[#allocation9 + $0x1d0] sm:$0xff] }
 0x270   : > { %9432 = vmatprep.subr.mxu0 %v11679_v3 }
 0x271   : > { %9433 = vmatpush3.msra.mxu0 %v11679_v3 }
 0x272   : > { %9434 = vmatprep.subr.mxu0 %v11686_v4 }
 0x273   : > { %9435 = vmatpush3.msra.mxu0 %v11686_v4 }
 0x274   : > { %9436 = vmatprep.subr.mxu0 %v11693_v5 }
 0x275   : > { %9437 = vmatpush3.msra.mxu0 %v11693_v5 }
 0x276   : > { %9438 = vmatprep.subr.mxu0 %v11700_v6 }
 0x277   : > { %9439 = vmatpush3.msra.mxu0 %v11700_v6 }
 0x278   : > { %9440 = vmatprep.subr.mxu0 %v11707_v7 }
 0x279   : > { %9441 = vmatpush3.msra.mxu0 %v11707_v7  ;;  %v1586_v7 = vld [vmem:[#allocation9 + $0xf0] sm:$0xff] }
 0x27a   : > { %9443 = vmatmul.mubr.msk.f32.vlgmr.msra.gmra.mxu0 %vm854_vm0, %v2963_v0  ;;  %v2429_v0 = vld [vmem:[#allocation9 + $0x1c8] sm:$0xff] }
 0x27b   : > { %9445 = vmatprep.mubr.msk.f32.mxu0 %vm854_vm0, %v2964_v1  ;;  %v2428_v1 = vld [vmem:[#allocation9 + $0x1c0] sm:$0xff] }
 0x27e   : > { %9446 = vmatmul.mubr.msk.f32.gmra.mxu0 %vm854_vm0, %v2965_v2 }
 0x2aa   : > { %v11916_v3 = vpop.f32.mrf.mxu0 }
 0x2ac   : > { %v11918_v4 = vpop.f32.mrf.mxu0 }
 0x2b0   : > { %v11920_v5 = vpop.f32.mrf.mxu0 }
 0x2b2   : > { %v11922_v6 = vpop.f32.mrf.mxu0 }
 0x2ba   : > { %v9092_v26 = vpop.f32.mrf.mxu0 }
 0x2bc   : > { %v1348_v27 = vpop.f32.mrf.mxu0 }
 0x2bd   : > { %9112 = vmatprep.mubr.msk.f32.mxu1 %vm854_vm0, %v1348_v27 }
 0x2be   : > { %v9095_v28 = vpop.f32.mrf.mxu0  ;;  %9113 = vmatmul.mubr.msk.f32.vlgmr.msra.gmra.mxu1 %vm854_vm0, %v9092_v26  ;;  %v2647_v26 = vld [vmem:[#allocation9 + $0x238] sm:$0xff] }
 0x2bf   : > { %9141 = vmatpush3.msra.mxu1 %v11842_v13  ;;  %v2218_v13 = vld [vmem:[#allocation9 + $0x190] sm:$0xff] }
 0x2c0   : > { %v1358_v30 = vpop.f32.mrf.mxu0  ;;  %9142 = vmatprep.subr.mxu1 %v1586_v7 }
 0x2c1   : > { %9115 = vmatprep.mubr.msk.f32.mxu1 %vm854_vm0, %v1358_v30  ;;  %9143 = vmatpush3.msra.mxu1 %v1586_v7  ;;  %v2646_v7 = vld [vmem:[#allocation9 + $0x230] sm:$0xff] }
 0x2c2   : > { %9116 = vmatmul.mubr.msk.f32.gmra.mxu1 %vm854_vm0, %v9095_v28  ;;  %9144 = vmatprep.subr.mxu1 %v1585_v29 }
 0x2c3   : > { %9145 = vmatpush3.msra.mxu1 %v1585_v29  ;;  %v2645_v29 = vld [vmem:[#allocation9 + $0x228] sm:$0xff] }
 0x2c4   : > { %9146 = vmatprep.subr.mxu1 %v1584_v31 }
 0x2c5   : > { %9147 = vmatpush3.msra.mxu1 %v1584_v31  ;;  %v2644_v31 = vld [vmem:[#allocation9 + $0x220] sm:$0xff] }
 0x2c6   : > { %9148 = vmatprep.subr.mxu1 %v1583_v32 }
 0x2c7   : > { %9149 = vmatpush3.msra.mxu1 %v1583_v32  ;;  %v2643_v32 = vld [vmem:[#allocation9 + $0x218] sm:$0xff] }
 0x2c8   : > { %9150 = vmatprep.subr.mxu1 %v1582_v33 }
 0x2c9   : > { %9151 = vmatpush3.msra.mxu1 %v1582_v33  ;;  %v2642_v33 = vld [vmem:[#allocation9 + $0x210] sm:$0xff] }
 0x2ca   : > { %v9136_v36 = vpop.f32.mrf.mxu0  ;;  %9152 = vmatprep.subr.mxu1 %v1581_v34 }
 0x2cb   : > { %9153 = vmatpush3.msra.mxu1 %v1581_v34  ;;  %v2641_v34 = vld [vmem:[#allocation9 + $0x208] sm:$0xff] }
 0x2cc   : > { %v1560_v38 = vpop.f32.mrf.mxu0  ;;  %9154 = vmatprep.subr.mxu1 %v1580_v35 }
 0x2cd   : > { %9155 = vmatpush3.msra.mxu1 %v1580_v35  ;;  %9156 = vmatprep.mubr.msk.f32.mxu1 %vm854_vm0, %v1560_v38  ;;  %v2640_v35 = vld [vmem:[#allocation9 + $0x200] sm:$0xff] }
 0x2ce   : > { %v9139_v40 = vpop.f32.mrf.mxu0  ;;  %9157 = vmatmul.mubr.msk.f32.vlgmr.msra.gmra.mxu1 %vm854_vm0, %v9136_v36  ;;  %9184 = vmatprep.subr.mxu1 %v1799_v37 }
 0x2cf   : > { %9185 = vmatpush3.msra.mxu1 %v1799_v37  ;;  %v2859_v37 = vld [vmem:[#allocation9 + $0x278] sm:$0xff] }
 0x2d0   : > { %v1570_v42 = vpop.f32.mrf.mxu0  ;;  %9186 = vmatprep.subr.mxu1 %v1798_v39 }
 0x2d1   : > { %9159 = vmatprep.mubr.msk.f32.mxu1 %vm854_vm0, %v1570_v42  ;;  %9187 = vmatpush3.msra.mxu1 %v1798_v39  ;;  %v2858_v39 = vld [vmem:[#allocation9 + $0x270] sm:$0xff] }
 0x2d2   : > { %9160 = vmatmul.mubr.msk.f32.gmra.mxu1 %vm854_vm0, %v9139_v40  ;;  %9188 = vmatprep.subr.mxu1 %v1797_v41 }
 0x2d3   : > { %9189 = vmatpush3.msra.mxu1 %v1797_v41  ;;  %v2857_v41 = vld [vmem:[#allocation9 + $0x268] sm:$0xff] }
 0x2d4   : > { %9190 = vmatprep.subr.mxu1 %v1796_v43 }
 0x2d5   : > { %9191 = vmatpush3.msra.mxu1 %v1796_v43  ;;  %v2856_v43 = vld [vmem:[#allocation9 + $0x260] sm:$0xff] }
 0x2d6   : > { %9192 = vmatprep.subr.mxu1 %v1795_v44 }
 0x2d7   : > { %9193 = vmatpush3.msra.mxu1 %v1795_v44  ;;  %v2855_v44 = vld [vmem:[#allocation9 + $0x258] sm:$0xff] }
 0x2d8   : > { %9194 = vmatprep.subr.mxu1 %v1794_v45 }
 0x2d9   : > { %9195 = vmatpush3.msra.mxu1 %v1794_v45  ;;  %v2854_v45 = vld [vmem:[#allocation9 + $0x250] sm:$0xff] }
 0x2da   : > { %v9180_v48 = vpop.f32.mrf.mxu0  ;;  %9196 = vmatprep.subr.mxu1 %v1793_v46 }
 0x2db   : > { %9197 = vmatpush3.msra.mxu1 %v1793_v46  ;;  %v2853_v46 = vld [vmem:[#allocation9 + $0x248] sm:$0xff] }
 0x2dc   : > { %v1772_v50 = vpop.f32.mrf.mxu0  ;;  %9198 = vmatprep.subr.mxu1 %v1792_v47 }
 0x2dd   : > { %9199 = vmatpush3.msra.mxu1 %v1792_v47  ;;  %9200 = vmatprep.mubr.msk.f32.mxu1 %vm854_vm0, %v1772_v50  ;;  %v2852_v47 = vld [vmem:[#allocation9 + $0x240] sm:$0xff] }
 0x2de   : > { %v9183_v52 = vpop.f32.mrf.mxu0  ;;  %9201 = vmatmul.mubr.msk.f32.vlgmr.msra.gmra.mxu1 %vm854_vm0, %v9180_v48  ;;  %9228 = vmatprep.subr.mxu1 %v2011_v49 }
 0x2df   : > { %9229 = vmatpush3.msra.mxu1 %v2011_v49  ;;  %v3071_v49 = vld [vmem:[#allocation9 + $0x2b8] sm:$0xff] }
 0x2e0   : > { %v1782_v54 = vpop.f32.mrf.mxu0  ;;  %9230 = vmatprep.subr.mxu1 %v2010_v51 }
 0x2e1   : > { %9203 = vmatprep.mubr.msk.f32.mxu1 %vm854_vm0, %v1782_v54  ;;  %9231 = vmatpush3.msra.mxu1 %v2010_v51  ;;  %v3070_v51 = vld [vmem:[#allocation9 + $0x2b0] sm:$0xff] }
 0x2e2   : > { %9204 = vmatmul.mubr.msk.f32.gmra.mxu1 %vm854_vm0, %v9183_v52  ;;  %9232 = vmatprep.subr.mxu1 %v2009_v53 }
 0x2e3   : > { %9233 = vmatpush3.msra.mxu1 %v2009_v53  ;;  %v3069_v53 = vld [vmem:[#allocation9 + $0x2a8] sm:$0xff] }
 0x2e4   : > { %9234 = vmatprep.subr.mxu1 %v2008_v55 }
 0x2e5   : > { %9235 = vmatpush3.msra.mxu1 %v2008_v55  ;;  %v3068_v55 = vld [vmem:[#allocation9 + $0x2a0] sm:$0xff] }
 0x2e6   : > { %9236 = vmatprep.subr.mxu1 %v2007_v56 }
 0x2e7   : > { %9237 = vmatpush3.msra.mxu1 %v2007_v56  ;;  %v3067_v56 = vld [vmem:[#allocation9 + $0x298] sm:$0xff] }
 0x2e8   : > { %9238 = vmatprep.subr.mxu1 %v2006_v57 }
 0x2e9   : > { %9239 = vmatpush3.msra.mxu1 %v2006_v57  ;;  %v3066_v57 = vld [vmem:[#allocation9 + $0x290] sm:$0xff] }
 0x2ea   : > { %v9224_v60 = vpop.f32.mrf.mxu0  ;;  %9240 = vmatprep.subr.mxu1 %v2005_v58 }
 0x2eb   : > { %9241 = vmatpush3.msra.mxu1 %v2005_v58  ;;  %v3065_v58 = vld [vmem:[#allocation9 + $0x288] sm:$0xff] }
 0x2ec   : > { %v1984_v62 = vpop.f32.mrf.mxu0  ;;  %9242 = vmatprep.subr.mxu1 %v2004_v59 }
 0x2ed   : > { %9243 = vmatpush3.msra.mxu1 %v2004_v59  ;;  %9244 = vmatprep.mubr.msk.f32.mxu1 %vm854_vm0, %v1984_v62  ;;  %v3064_v59 = vld [vmem:[#allocation9 + $0x280] sm:$0xff] }
 0x2ee   : > { %v9227_v8 = vpop.f32.mrf.mxu0  ;;  %9245 = vmatmul.mubr.msk.f32.vlgmr.msra.gmra.mxu1 %vm854_vm0, %v9224_v60  ;;  %9272 = vmatprep.subr.mxu1 %v2223_v61 }
 0x2ef   : > { %9273 = vmatpush3.msra.mxu1 %v2223_v61 }
 0x2f0   : > { %v1994_v10 = vpop.f32.mrf.mxu0  ;;  %9274 = vmatprep.subr.mxu1 %v2222_v63 }
 0x2f1   : > { %9247 = vmatprep.mubr.msk.f32.mxu1 %vm854_vm0, %v1994_v10  ;;  %9275 = vmatpush3.msra.mxu1 %v2222_v63 }
 0x2f2   : > { %9248 = vmatmul.mubr.msk.f32.gmra.mxu1 %vm854_vm0, %v9227_v8  ;;  %9276 = vmatprep.subr.mxu1 %v2221_v9  ;;  %v9070_v8 = vpop.f32.mrf.mxu1 }
 0x2f3   : > { %9277 = vmatpush3.msra.mxu1 %v2221_v9 }
 0x2f4   : > { %9278 = vmatprep.subr.mxu1 %v2220_v11  ;;  %v1246_v9 = vpop.f32.mrf.mxu1 }
 0x2f5   : > { %9279 = vmatpush3.msra.mxu1 %v2220_v11 }
 0x2f6   : > { %9280 = vmatprep.subr.mxu1 %v2219_v12  ;;  %v9073_v10 = vpop.f32.mrf.mxu1 }
 0x2f7   : > { %9281 = vmatpush3.msra.mxu1 %v2219_v12 }
 0x2f8   : > { %9282 = vmatprep.subr.mxu1 %v2218_v13  ;;  %v1256_v11 = vpop.f32.mrf.mxu1 }
 0x2f9   : > { %9283 = vmatpush3.msra.mxu1 %v2218_v13  ;;  %v3198_v13 = vld [vmem:[#allocation12] sm:$0xff] }
 0x2fa   : > { %v9268_v16 = vpop.f32.mrf.mxu0  ;;  %9284 = vmatprep.subr.mxu1 %v2217_v14  ;;  %9478 = vmatprep.mubr.msk.f32.mxu0 %vm3200_vm1, %v3198_v13 }
 0x2fb   : > { %9285 = vmatpush3.msra.mxu1 %v2217_v14  ;;  %v3299_v14 = vld [vmem:[#allocation12 + $0x10] sm:$0xff] }
 0x2fc   : > { %v2196_v18 = vpop.f32.mrf.mxu0  ;;  %9286 = vmatprep.subr.mxu1 %v2216_v15 }
 0x2fd   : > { %9287 = vmatpush3.msra.mxu1 %v2216_v15  ;;  %9288 = vmatprep.mubr.msk.f32.mxu1 %vm854_vm0, %v2196_v18 }
 0x2fe   : > { %v9271_v20 = vpop.f32.mrf.mxu0  ;;  %9289 = vmatmul.mubr.msk.f32.vlgmr.msra.gmra.mxu1 %vm854_vm0, %v9268_v16  ;;  %9316 = vmatprep.subr.mxu1 %v2435_v17 }
 0x2ff   : > { %9317 = vmatpush3.msra.mxu1 %v2435_v17 }
 0x300   : > { %v2206_v22 = vpop.f32.mrf.mxu0  ;;  %9318 = vmatprep.subr.mxu1 %v2434_v19 }
 0x301   : > { %9291 = vmatprep.mubr.msk.f32.mxu1 %vm854_vm0, %v2206_v22  ;;  %9319 = vmatpush3.msra.mxu1 %v2434_v19 }
 0x302   : > { %9292 = vmatmul.mubr.msk.f32.gmra.mxu1 %vm854_vm0, %v9271_v20  ;;  %9320 = vmatprep.subr.mxu1 %v2433_v21 }
 0x303   : > { %9321 = vmatpush3.msra.mxu1 %v2433_v21 }
 0x304   : > { %9322 = vmatprep.subr.mxu1 %v2432_v23 }
 0x305   : > { %9323 = vmatpush3.msra.mxu1 %v2432_v23 }
 0x306   : > { %9324 = vmatprep.subr.mxu1 %v2431_v24 }
 0x307   : > { %9325 = vmatpush3.msra.mxu1 %v2431_v24 }
 0x308   : > { %9326 = vmatprep.subr.mxu1 %v2430_v25 }
 0x309   : > { %9327 = vmatpush3.msra.mxu1 %v2430_v25 }
 0x30a   : > { %v9312_v2 = vpop.f32.mrf.mxu0  ;;  %9328 = vmatprep.subr.mxu1 %v2429_v0 }
 0x30b   : > { %9329 = vmatpush3.msra.mxu1 %v2429_v0 }
 0x30c   : > { %v2408_v27 = vpop.f32.mrf.mxu0  ;;  %9330 = vmatprep.subr.mxu1 %v2428_v1 }
 0x30d   : > { %9331 = vmatpush3.msra.mxu1 %v2428_v1  ;;  %9332 = vmatprep.mubr.msk.f32.mxu1 %vm854_vm0, %v2408_v27 }
 0x30e   : > { %v9315_v28 = vpop.f32.mrf.mxu0  ;;  %9333 = vmatmul.mubr.msk.f32.vlgmr.msra.gmra.mxu1 %vm854_vm0, %v9312_v2  ;;  %9360 = vmatprep.subr.mxu1 %v2647_v26 }
 0x30f   : > { %9361 = vmatpush3.msra.mxu1 %v2647_v26 }
 0x310   : > { %v2418_v30 = vpop.f32.mrf.mxu0  ;;  %9362 = vmatprep.subr.mxu1 %v2646_v7 }
 0x311   : > { %9335 = vmatprep.mubr.msk.f32.mxu1 %vm854_vm0, %v2418_v30  ;;  %9363 = vmatpush3.msra.mxu1 %v2646_v7 }
 0x312   : > { %9336 = vmatmul.mubr.msk.f32.gmra.mxu1 %vm854_vm0, %v9315_v28  ;;  %9364 = vmatprep.subr.mxu1 %v2645_v29 }
 0x313   : > { %9365 = vmatpush3.msra.mxu1 %v2645_v29 }
 0x314   : > { %9366 = vmatprep.subr.mxu1 %v2644_v31 }
 0x315   : > { %9367 = vmatpush3.msra.mxu1 %v2644_v31 }
 0x316   : > { %9368 = vmatprep.subr.mxu1 %v2643_v32 }
 0x317   : > { %9369 = vmatpush3.msra.mxu1 %v2643_v32 }
 0x318   : > { %9370 = vmatprep.subr.mxu1 %v2642_v33 }
 0x319   : > { %9371 = vmatpush3.msra.mxu1 %v2642_v33 }
 0x31a   : > { %v9356_v36 = vpop.f32.mrf.mxu0  ;;  %9372 = vmatprep.subr.mxu1 %v2641_v34 }
 0x31b   : > { %9373 = vmatpush3.msra.mxu1 %v2641_v34 }
 0x31c   : > { %v2620_v38 = vpop.f32.mrf.mxu0  ;;  %9374 = vmatprep.subr.mxu1 %v2640_v35 }
 0x31d   : > { %9375 = vmatpush3.msra.mxu1 %v2640_v35  ;;  %9376 = vmatprep.mubr.msk.f32.mxu1 %vm854_vm0, %v2620_v38  ;;  %v1252_v38 = vadd.f32 %v9070_v8, %v11916_v3 }
 0x31e   : > { %v9359_v40 = vpop.f32.mrf.mxu0  ;;  %9377 = vmatmul.mubr.msk.f32.vlgmr.msra.gmra.mxu1 %vm854_vm0, %v9356_v36  ;;  %9404 = vmatprep.subr.mxu1 %v2859_v37 }
 0x31f   : > { %9405 = vmatpush3.msra.mxu1 %v2859_v37 }
 0x320   : > { %v2630_v42 = vpop.f32.mrf.mxu0  ;;  %9406 = vmatprep.subr.mxu1 %v2858_v39 }
 0x321   : > { %9379 = vmatprep.mubr.msk.f32.mxu1 %vm854_vm0, %v2630_v42  ;;  %9407 = vmatpush3.msra.mxu1 %v2858_v39 }
 0x322   : > { %9380 = vmatmul.mubr.msk.f32.gmra.mxu1 %vm854_vm0, %v9359_v40  ;;  %9408 = vmatprep.subr.mxu1 %v2857_v41  ;;  %v1262_v40 = vadd.f32 %v9073_v10, %v11920_v5 }
 0x323   : > { %9409 = vmatpush3.msra.mxu1 %v2857_v41  ;;  %v1247_v41 = vadd.f32 %v1246_v9, %v11918_v4 }
 0x324   : > { %9410 = vmatprep.subr.mxu1 %v2856_v43 }
 0x325   : > { %9411 = vmatpush3.msra.mxu1 %v2856_v43 }
 0x326   : > { %9412 = vmatprep.subr.mxu1 %v2855_v44 }
 0x327   : > { %9413 = vmatpush3.msra.mxu1 %v2855_v44  ;;  %v1257_v44 = vadd.f32 %v1256_v11, %v11922_v6 }
 0x328   : > { %9414 = vmatprep.subr.mxu1 %v2854_v45 }
 0x329   : > { %9415 = vmatpush3.msra.mxu1 %v2854_v45 }
 0x32a   : > { %v9400_v48 = vpop.f32.mrf.mxu0  ;;  %9416 = vmatprep.subr.mxu1 %v2853_v46 }
 0x32b   : > { %9417 = vmatpush3.msra.mxu1 %v2853_v46 }
 0x32c   : > { %v2832_v50 = vpop.f32.mrf.mxu0  ;;  %9418 = vmatprep.subr.mxu1 %v2852_v47 }
 0x32d   : > { %9419 = vmatpush3.msra.mxu1 %v2852_v47  ;;  %9420 = vmatprep.mubr.msk.f32.mxu1 %vm854_vm0, %v2832_v50 }
 0x32e   : > { %v9403_v52 = vpop.f32.mrf.mxu0  ;;  %9421 = vmatmul.mubr.msk.f32.vlgmr.msra.gmra.mxu1 %vm854_vm0, %v9400_v48  ;;  %9448 = vmatprep.subr.mxu1 %v3071_v49 }
 0x32f   : > { %9449 = vmatpush3.msra.mxu1 %v3071_v49 }
 0x330   : > { %v2842_v54 = vpop.f32.mrf.mxu0  ;;  %9450 = vmatprep.subr.mxu1 %v3070_v51 }
 0x331   : > { %9423 = vmatprep.mubr.msk.f32.mxu1 %vm854_vm0, %v2842_v54  ;;  %9451 = vmatpush3.msra.mxu1 %v3070_v51 }
 0x332   : > { %9424 = vmatmul.mubr.msk.f32.gmra.mxu1 %vm854_vm0, %v9403_v52  ;;  %9452 = vmatprep.subr.mxu1 %v3069_v53 }
 0x333   : > { %9453 = vmatpush3.msra.mxu1 %v3069_v53 }
 0x334   : > { %9454 = vmatprep.subr.mxu1 %v3068_v55 }
 0x335   : > { %9455 = vmatpush3.msra.mxu1 %v3068_v55 }
 0x336   : > { %9456 = vmatprep.subr.mxu1 %v3067_v56 }
 0x337   : > { %9457 = vmatpush3.msra.mxu1 %v3067_v56 }
 0x338   : > { %9458 = vmatprep.subr.mxu1 %v3066_v57 }
 0x339   : > { %9459 = vmatpush3.msra.mxu1 %v3066_v57 }
 0x33a   : > { %v9444_v60 = vpop.f32.mrf.mxu0  ;;  %9460 = vmatprep.subr.mxu1 %v3065_v58 }
 0x33b   : > { %9461 = vmatpush3.msra.mxu1 %v3065_v58 }
 0x33c   : > { %v3044_v61 = vpop.f32.mrf.mxu0  ;;  %9462 = vmatprep.subr.mxu1 %v3064_v59 }
 0x33d   : > { %9463 = vmatpush3.msra.mxu1 %v3064_v59  ;;  %9464 = vmatprep.mubr.msk.f32.mxu1 %vm854_vm0, %v3044_v61 }
 0x33e   : > { %v9447_v62 = vpop.f32.mrf.mxu0  ;;  %9465 = vmatmul.mubr.msk.f32.vlgmr.msra.gmra.mxu1 %vm854_vm0, %v9444_v60 }
 0x340   : > { %v3054_v63 = vpop.f32.mrf.mxu0 }
 0x341   : > { %9467 = vmatprep.mubr.msk.f32.mxu1 %vm854_vm0, %v3054_v63 }
 0x342   : > { %9468 = vmatmul.mubr.msk.f32.gmra.mxu1 %vm854_vm0, %v9447_v62 }
 0x343   : > { %9489 = vmatprep.mubr.msk.f32.mxu1 %vm3200_vm1, %v3299_v14 }
 0x37e   : > { %v9114_v12 = vpop.f32.mrf.mxu1 }
 0x37f   : > { %v1474_v42 = vadd.f32 %v9114_v12, %v1252_v38  ;;  %v3398_v38 = vld [vmem:[#allocation13 + $0xf8] sm:$0xff] }
 0x380   : > { %v1454_v15 = vpop.f32.mrf.mxu1 }
 0x381   : > { %v1473_v45 = vadd.f32 %v1454_v15, %v1247_v41  ;;  %v3296_v41 = vld [vmem:[#allocation13 + $0x70] sm:$0xff] }
 0x382   : > { %v9117_v16 = vpop.f32.mrf.mxu1 }
 0x383   : > { %v1476_v43 = vadd.f32 %v9117_v16, %v1262_v40  ;;  %v3397_v40 = vld [vmem:[#allocation13 + $0xf0] sm:$0xff] }
 0x384   : > { %v1464_v17 = vpop.f32.mrf.mxu1 }
 0x385   : > { %v1475_v49 = vadd.f32 %v1464_v17, %v1257_v44  ;;  %v3395_v44 = vld [vmem:[#allocation13 + $0xe0] sm:$0xff] }
 0x38e   : > { %v9158_v18 = vpop.f32.mrf.mxu1 }
 0x38f   : > { %v1686_v46 = vadd.f32 %v9158_v18, %v1474_v42  ;;  %v3396_v42 = vld [vmem:[#allocation13 + $0xe8] sm:$0xff] }
 0x390   : > { %v1666_v19 = vpop.f32.mrf.mxu1 }
 0x391   : > { %v1685_v50 = vadd.f32 %v1666_v19, %v1473_v45  ;;  %v3294_v45 = vld [vmem:[#allocation13 + $0x60] sm:$0xff] }
 0x392   : > { %v9161_v20 = vpop.f32.mrf.mxu1 }
 0x393   : > { %v1688_v48 = vadd.f32 %v9161_v20, %v1476_v43  ;;  %v3295_v43 = vld [vmem:[#allocation13 + $0x68] sm:$0xff] }
 0x394   : > { %v1676_v21 = vpop.f32.mrf.mxu1 }
 0x395   : > { %v1687_v53 = vadd.f32 %v1676_v21, %v1475_v49  ;;  %v8114_v21 = vld [vmem:[#allocation10] ss:$0 sm:$0xff]  ;;  %v3292_v49 = vld [vmem:[#allocation13 + $0x50] sm:$0xff] }
 0x39e   : > { %v9202_v22 = vpop.f32.mrf.mxu1 }
 0x39f   : > { %v1898_v51 = vadd.f32 %v9202_v22, %v1686_v46  ;;  %v3394_v46 = vld [vmem:[#allocation13 + $0xd8] sm:$0xff] }
 0x3a0   : > { %v1878_v23 = vpop.f32.mrf.mxu1 }
 0x3a1   : > { %v1897_v54 = vadd.f32 %v1878_v23, %v1685_v50  ;;  %v3392_v50 = vld [vmem:[#allocation13 + $0xc8] sm:$0xff] }
 0x3a2   : > { %v9205_v24 = vpop.f32.mrf.mxu1 }
 0x3a3   : > { %v1900_v52 = vadd.f32 %v9205_v24, %v1688_v48  ;;  %v3393_v48 = vld [vmem:[#allocation13 + $0xd0] sm:$0xff] }
 0x3a4   : > { %v1888_v25 = vpop.f32.mrf.mxu1 }
 0x3a5   : > { %v1899_v5 = vadd.f32 %v1888_v25, %v1687_v53  ;;  %v3290_v53 = vld [vmem:[#allocation13 + $0x40] sm:$0xff] }
 0x3ae   : > { %v9246_v0 = vpop.f32.mrf.mxu1 }
 0x3af   : > { %v2110_v3 = vadd.f32 %v9246_v0, %v1898_v51  ;;  %v3291_v51 = vld [vmem:[#allocation13 + $0x48] sm:$0xff] }
 0x3b0   : > { %v2090_v1 = vpop.f32.mrf.mxu1 }
 0x3b1   : > { %v2109_v57 = vadd.f32 %v2090_v1, %v1897_v54  ;;  %v3390_v54 = vld [vmem:[#allocation13 + $0xb8] sm:$0xff] }
 0x3b2   : > { %v9249_v2 = vpop.f32.mrf.mxu1 }
 0x3b3   : > { %v2112_v56 = vadd.f32 %v9249_v2, %v1900_v52  ;;  %v3189_v2 = vstv %s3188_s5  ;;  %v3391_v52 = vld [vmem:[#allocation13 + $0xc0] sm:$0xff] }
 0x3b4   : > { %v2100_v26 = vpop.f32.mrf.mxu1 }
 0x3b5   : > { %v2111_v59 = vadd.f32 %v2100_v26, %v1899_v5  ;;  %v3388_v5 = vld [vmem:[#allocation13 + $0xa8] sm:$0xff] }
 0x3be   : > { %v9290_v27 = vpop.f32.mrf.mxu1 }
 0x3bf   : > { %v2322_v4 = vadd.f32 %v9290_v27, %v2110_v3  ;;  %v3289_v3 = vld [vmem:[#allocation13 + $0x38] sm:$0xff] }
 0x3c0   : > { %v2302_v7 = vpop.f32.mrf.mxu1 }
 0x3c1   : > { %v2321_v60 = vadd.f32 %v2302_v7, %v2109_v57  ;;  %v3287_v57 = vld [vmem:[#allocation13 + $0x28] sm:$0xff] }
 0x3c2   : > { %v9293_v28 = vpop.f32.mrf.mxu1 }
 0x3c3   : > { %v2324_v58 = vadd.f32 %v9293_v28, %v2112_v56  ;;  %v3288_v56 = vld [vmem:[#allocation13 + $0x30] sm:$0xff] }
 0x3c4   : > { %v2312_v29 = vpop.f32.mrf.mxu1 }
 0x3c5   : > { %v2323_v63 = vadd.f32 %v2312_v29, %v2111_v59  ;;  %v3386_v59 = vld [vmem:[#allocation13 + $0x98] sm:$0xff] }
 0x3ce   : > { %v9334_v30 = vpop.f32.mrf.mxu1 }
 0x3cf   : > { %v2534_v6 = vadd.f32 %v9334_v30, %v2322_v4  ;;  %v3387_v4 = vld [vmem:[#allocation13 + $0xa0] sm:$0xff] }
 0x3d0   : > { %v2514_v31 = vpop.f32.mrf.mxu1 }
 0x3d1   : > { %v2533_v8 = vadd.f32 %v2514_v31, %v2321_v60  ;;  %v3285_v60 = vld [vmem:[#allocation13 + $0x18] sm:$0xff] }
 0x3d2   : > { %v9337_v32 = vpop.f32.mrf.mxu1 }
 0x3d3   : > { %v2536_v62 = vadd.f32 %v9337_v32, %v2324_v58  ;;  %v3286_v58 = vld [vmem:[#allocation13 + $0x20] sm:$0xff] }
 0x3d4   : > { %v2524_v33 = vpop.f32.mrf.mxu1 }
 0x3d5   : > { %v2535_v12 = vadd.f32 %v2524_v33, %v2323_v63  ;;  %v3283_v63 = vld [vmem:[#allocation13 + $0x8] sm:$0xff] }
 0x3de   : > { %v9378_v34 = vpop.f32.mrf.mxu1 }
 0x3df   : > { %v2746_v9 = vadd.f32 %v9378_v34, %v2534_v6  ;;  %v3385_v6 = vld [vmem:[#allocation13 + $0x90] sm:$0xff] }
 0x3e0   : > { %v2726_v35 = vpop.f32.mrf.mxu1 }
 0x3e1   : > { %v2745_v13 = vadd.f32 %v2726_v35, %v2533_v8  ;;  %v3383_v8 = vld [vmem:[#allocation13 + $0x80] sm:$0xff] }
 0x3e2   : > { %v9381_v36 = vpop.f32.mrf.mxu1 }
 0x3e3   : > { %v2748_v11 = vadd.f32 %v9381_v36, %v2536_v62  ;;  %v3199_v36 = vld [vmem:[#allocation12 + $0x8] sm:$0xff]  ;;  %v3384_v62 = vld [vmem:[#allocation13 + $0x88] sm:$0xff] }
 0x3e4   : > { %v2736_v37 = vpop.f32.mrf.mxu1 }
 0x3e5   : > { %v2747_v17 = vadd.f32 %v2736_v37, %v2535_v12  ;;  %v3300_v37 = vld [vmem:[#allocation12 + $0x18] sm:$0xff] }
 0x3ee   : > { %v9422_v39 = vpop.f32.mrf.mxu1 }
 0x3ef   : > { %v2958_v14 = vadd.f32 %v9422_v39, %v2746_v9  ;;  %v3297_v39 = vld [vmem:[#allocation13 + $0x78] sm:$0xff]  ;;  %v3282_v9 = vld [vmem:[#allocation13] sm:$0xff] }
 0x3f0   : > { %v2938_v47 = vpop.f32.mrf.mxu1 }
 0x3f1   : > { %v2957_v18 = vadd.f32 %v2938_v47, %v2745_v13  ;;  %v3293_v47 = vld [vmem:[#allocation13 + $0x58] sm:$0xff] }
 0x3f2   : > { %v9425_v55 = vpop.f32.mrf.mxu1 }
 0x3f3   : > { %v2960_v16 = vadd.f32 %v9425_v55, %v2748_v11  ;;  %v3389_v55 = vld [vmem:[#allocation13 + $0xb0] sm:$0xff] }
 0x3f4   : > { %v2948_v61 = vpop.f32.mrf.mxu1 }
 0x3f5   : > { %v2959_v23 = vadd.f32 %v2948_v61, %v2747_v17  ;;  %v3284_v61 = vld [vmem:[#allocation13 + $0x10] sm:$0xff]  ;;  %v3646_v17 = vld [vmem:[#allocation13 + $0x160] sm:$0xff] }
 0x3fe   : > { %v9466_v10 = vpop.f32.mrf.mxu1 }
 0x3ff   : > { %v3170_v19 = vadd.f32 %v9466_v10, %v2958_v14  ;;  %v3649_v10 = vld [vmem:[#allocation13 + $0x178] sm:$0xff] }
 0x400   : > { %v3150_v15 = vpop.f32.mrf.mxu1 }
 0x401   : > { %v3169_v24 = vadd.f32 %v3150_v15, %v2957_v18  ;;  %v3181_v1 = vadd.f32 %v8114_v21, %v3170_v19  ;;  %v3648_v15 = vld [vmem:[#allocation13 + $0x170] sm:$0xff]  ;;  %v3551_v19 = vld [vmem:[#allocation12 + $0x28] sm:$0xff] }
 0x402   : > { %v9469_v20 = vpop.f32.mrf.mxu1  ;;  %v3550_v18 = vld [vmem:[#allocation12 + $0x20] sm:$0xff] }
 0x403   : > { %v3172_v22 = vadd.f32 %v9469_v20, %v2960_v16  ;;  %v3180_v7 = vadd.f32 %v8114_v21, %v3169_v24  ;;  %v3191_v30 = vmul.f32 %v3189_v2, %v3181_v1  ;;  %vm3185_vm4 = vcmp.gt.f32.partialorder %v3181_v1, 0.0  ;;  %v3647_v16 = vld [vmem:[#allocation13 + $0x168] sm:$0xff]  ;;  %v3645_v20 = vld [vmem:[#allocation13 + $0x158] sm:$0xff]  ;;  %v3728_v24 = vld [vmem:[#allocation12 + $0x30] sm:$0xff] }
 0x404   : > { %v3160_v25 = vpop.f32.mrf.mxu1 }
 0x405   : > { %v3183_v0 = vadd.f32 %v8114_v21, %v3172_v22  ;;  %v3171_v26 = vadd.f32 %v3160_v25, %v2959_v23  ;;  %v3190_v32 = vmul.f32 %v3189_v2, %v3180_v7  ;;  %vm3184_vm5 = vcmp.gt.f32.partialorder %v3180_v7, 0.0  ;;  %v3643_v22 = vld [vmem:[#allocation13 + $0x148] sm:$0xff]  ;;  %v3642_v23 = vld [vmem:[#allocation13 + $0x140] sm:$0xff]  ;;  %v3641_v25 = vld [vmem:[#allocation13 + $0x138] sm:$0xff] }
 0x406   : > { %v11977_v34 = vsel %vm3185_vm4, %v3181_v1, %v3191_v30  ;;  %v3827_v1 = vld [vmem:[#allocation13 + $0x1f8] sm:$0xff]  ;;  %v3824_v30 = vld [vmem:[#allocation13 + $0x1e0] sm:$0xff]  ;;  %vm7773_vm4 = vcmask 253952  }
 0x407   : > { %vm3187_vm2 = vcmp.gt.f32.partialorder %v3183_v0, 0.0  ;;  %v3193_v27 = vmul.f32 %v3189_v2, %v3183_v0  ;;  %v3182_v28 = vadd.f32 %v8114_v21, %v3171_v26  ;;  %v11983_v35 = vsel %vm3184_vm5, %v3180_v7, %v3190_v32  ;;  %v3644_v21 = vld [vmem:[#allocation13 + $0x150] sm:$0xff]  ;;  %v3825_v7 = vld [vmem:[#allocation13 + $0x1e8] sm:$0xff]  ;;  %v3823_v32 = vld [vmem:[#allocation13 + $0x1d8] sm:$0xff] }
 0x408   : > { %v3826_v26 = vld [vmem:[#allocation13 + $0x1f0] sm:$0xff] }
 0x409   : > { %v11967_v29 = vsel %vm3187_vm2, %v3183_v0, %v3193_v27  ;;  %vm3186_vm3 = vcmp.gt.f32.partialorder %v3182_v28, 0.0  ;;  %v3192_v31 = vmul.f32 %v3189_v2, %v3182_v28  ;;  %v3729_v0 = vld [vmem:[#allocation12 + $0x38] sm:$0xff]  ;;  %v3640_v2 = vld [vmem:[#allocation13 + $0x130] sm:$0xff]  ;;  %vm7292_vm2 = vcmask 15360  }
 0x40a   : > { %9470 = vmatprep.subr.mxu0 %v11967_v29  ;;  %9481 = vmatprep.subr.mxu1 %v11967_v29  ;;  %v3639_v27 = vld [vmem:[#allocation13 + $0x128] sm:$0xff] }
 0x40b   : > { %9471 = vmatpush3.msra.mxu0 %v11967_v29  ;;  %9482 = vmatpush3.msra.mxu1 %v11967_v29  ;;  %v11973_v33 = vsel %vm3186_vm3, %v3182_v28, %v3192_v31  ;;  %v3638_v28 = vld [vmem:[#allocation13 + $0x120] sm:$0xff]  ;;  %v3637_v31 = vld [vmem:[#allocation13 + $0x118] sm:$0xff] }
 0x40c   : > { %9472 = vmatprep.subr.mxu0 %v11973_v33  ;;  %9483 = vmatprep.subr.mxu1 %v11973_v33 }
 0x40d   : > { %9473 = vmatpush3.msra.mxu0 %v11973_v33  ;;  %9484 = vmatpush3.msra.mxu1 %v11973_v33 }
 0x40e   : > { %9474 = vmatprep.subr.mxu0 %v11977_v34  ;;  %9485 = vmatprep.subr.mxu1 %v11977_v34 }
 0x40f   : > { %9475 = vmatpush3.msra.mxu0 %v11977_v34  ;;  %9486 = vmatpush3.msra.mxu1 %v11977_v34 }
 0x410   : > { %9476 = vmatprep.subr.mxu0 %v11983_v35  ;;  %9487 = vmatprep.subr.mxu1 %v11983_v35 }
 0x411   : > { %9477 = vmatpush3.msra.mxu0 %v11983_v35  ;;  %9488 = vmatpush3.msra.mxu1 %v11983_v35 }
 0x412   : > { %9479 = vmatmul.mubr.msk.f32.vlgmr.msra.gmra.mxu0 %vm3200_vm1, %v3199_v36  ;;  %9490 = vmatmul.mubr.msk.f32.vlgmr.msra.gmra.mxu1 %vm3200_vm1, %v3300_v37  ;;  %v3636_v36 = vld [vmem:[#allocation13 + $0x110] sm:$0xff] }
 0x413   : > { %9492 = vmatprep.subr.mxu0 %v3398_v38  ;;  %9527 = vmatprep.subr.mxu1 %v3297_v39  ;;  %v3822_v37 = vld [vmem:[#allocation13 + $0x1d0] sm:$0xff] }
 0x414   : > { %9493 = vmatpush3.msra.mxu0 %v3398_v38  ;;  %9528 = vmatpush3.msra.mxu1 %v3297_v39  ;;  %v3635_v38 = vld [vmem:[#allocation13 + $0x108] sm:$0xff] }
 0x415   : > { %9494 = vmatprep.subr.mxu0 %v3397_v40  ;;  %9529 = vmatprep.subr.mxu1 %v3296_v41  ;;  %v3821_v39 = vld [vmem:[#allocation13 + $0x1c8] sm:$0xff] }
 0x416   : > { %9495 = vmatpush3.msra.mxu0 %v3397_v40  ;;  %9530 = vmatpush3.msra.mxu1 %v3296_v41  ;;  %v3634_v40 = vld [vmem:[#allocation13 + $0x100] sm:$0xff] }
 0x417   : > { %9496 = vmatprep.subr.mxu0 %v3396_v42  ;;  %9531 = vmatprep.subr.mxu1 %v3295_v43  ;;  %v3820_v41 = vld [vmem:[#allocation13 + $0x1c0] sm:$0xff] }
 0x418   : > { %9497 = vmatpush3.msra.mxu0 %v3396_v42  ;;  %9532 = vmatpush3.msra.mxu1 %v3295_v43  ;;  %v3819_v42 = vld [vmem:[#allocation13 + $0x1b8] sm:$0xff]  ;;  %v3818_v43 = vld [vmem:[#allocation13 + $0x1b0] sm:$0xff] }
 0x419   : > { %9498 = vmatprep.subr.mxu0 %v3395_v44  ;;  %9533 = vmatprep.subr.mxu1 %v3294_v45 }
 0x41a   : > { %9499 = vmatpush3.msra.mxu0 %v3395_v44  ;;  %9534 = vmatpush3.msra.mxu1 %v3294_v45  ;;  %v3817_v44 = vld [vmem:[#allocation13 + $0x1a8] sm:$0xff]  ;;  %v3816_v45 = vld [vmem:[#allocation13 + $0x1a0] sm:$0xff] }
 0x41b   : > { %9500 = vmatprep.subr.mxu0 %v3394_v46  ;;  %9535 = vmatprep.subr.mxu1 %v3293_v47 }
 0x41c   : > { %9501 = vmatpush3.msra.mxu0 %v3394_v46  ;;  %9536 = vmatpush3.msra.mxu1 %v3293_v47  ;;  %v3815_v46 = vld [vmem:[#allocation13 + $0x198] sm:$0xff]  ;;  %v3814_v47 = vld [vmem:[#allocation13 + $0x190] sm:$0xff] }
 0x41d   : > { %9502 = vmatprep.subr.mxu0 %v3393_v48  ;;  %9537 = vmatprep.subr.mxu1 %v3292_v49 }
 0x41e   : > { %9503 = vmatpush3.msra.mxu0 %v3393_v48  ;;  %9538 = vmatpush3.msra.mxu1 %v3292_v49  ;;  %v3813_v48 = vld [vmem:[#allocation13 + $0x188] sm:$0xff]  ;;  %v3812_v49 = vld [vmem:[#allocation13 + $0x180] sm:$0xff] }
 0x41f   : > { %9504 = vmatprep.subr.mxu0 %v3392_v50  ;;  %9539 = vmatprep.subr.mxu1 %v3291_v51 }
 0x420   : > { %9505 = vmatpush3.msra.mxu0 %v3392_v50  ;;  %9540 = vmatpush3.msra.mxu1 %v3291_v51 }
 0x421   : > { %9506 = vmatprep.subr.mxu0 %v3391_v52  ;;  %9541 = vmatprep.subr.mxu1 %v3290_v53 }
 0x422   : > { %9507 = vmatpush3.msra.mxu0 %v3391_v52  ;;  %9542 = vmatpush3.msra.mxu1 %v3290_v53 }
 0x423   : > { %9508 = vmatprep.subr.mxu0 %v3390_v54  ;;  %9543 = vmatprep.subr.mxu1 %v3289_v3 }
 0x424   : > { %9509 = vmatpush3.msra.mxu0 %v3390_v54  ;;  %9544 = vmatpush3.msra.mxu1 %v3289_v3 }
 0x425   : > { %9510 = vmatprep.subr.mxu0 %v3389_v55  ;;  %9545 = vmatprep.subr.mxu1 %v3288_v56 }
 0x426   : > { %9511 = vmatpush3.msra.mxu0 %v3389_v55  ;;  %9546 = vmatpush3.msra.mxu1 %v3288_v56  ;;  %v3906_v55 = vld [vmem:[#allocation12 + $0x40] sm:$0xff]  ;;  %v3907_v56 = vld [vmem:[#allocation12 + $0x48] sm:$0xff] }
 0x427   : > { %9512 = vmatprep.subr.mxu0 %v3388_v5  ;;  %9547 = vmatprep.subr.mxu1 %v3287_v57 }
 0x428   : > { %9513 = vmatpush3.msra.mxu0 %v3388_v5  ;;  %9548 = vmatpush3.msra.mxu1 %v3287_v57  ;;  %v4005_v5 = vld [vmem:[#allocation13 + $0x278] sm:$0xff] }
 0x429   : > { %9514 = vmatprep.subr.mxu0 %v3387_v4  ;;  %9549 = vmatprep.subr.mxu1 %v3286_v58 }
 0x42a   : > { %9515 = vmatpush3.msra.mxu0 %v3387_v4  ;;  %9550 = vmatpush3.msra.mxu1 %v3286_v58  ;;  %v4004_v4 = vld [vmem:[#allocation13 + $0x270] sm:$0xff] }
 0x42b   : > { %9516 = vmatprep.subr.mxu0 %v3386_v59  ;;  %9551 = vmatprep.subr.mxu1 %v3285_v60 }
 0x42c   : > { %9517 = vmatpush3.msra.mxu0 %v3386_v59  ;;  %9552 = vmatpush3.msra.mxu1 %v3285_v60  ;;  %v4003_v59 = vld [vmem:[#allocation13 + $0x268] sm:$0xff]  ;;  %v4002_v60 = vld [vmem:[#allocation13 + $0x260] sm:$0xff] }
 0x42d   : > { %9518 = vmatprep.subr.mxu0 %v3385_v6  ;;  %9553 = vmatprep.subr.mxu1 %v3284_v61 }
 0x42e   : > { %9519 = vmatpush3.msra.mxu0 %v3385_v6  ;;  %9554 = vmatpush3.msra.mxu1 %v3284_v61  ;;  %v4084_v6 = vld [vmem:[#allocation12 + $0x50] sm:$0xff]  ;;  %v4001_v61 = vld [vmem:[#allocation13 + $0x258] sm:$0xff] }
 0x42f   : > { %9520 = vmatprep.subr.mxu0 %v3384_v62  ;;  %9555 = vmatprep.subr.mxu1 %v3283_v63 }
 0x430   : > { %9521 = vmatpush3.msra.mxu0 %v3384_v62  ;;  %9556 = vmatpush3.msra.mxu1 %v3283_v63  ;;  %v4085_v62 = vld [vmem:[#allocation12 + $0x58] sm:$0xff]  ;;  %v4183_v63 = vld [vmem:[#allocation13 + $0x2f8] sm:$0xff] }
 0x431   : > { %9522 = vmatprep.subr.mxu0 %v3383_v8  ;;  %9557 = vmatprep.subr.mxu1 %v3282_v9 }
 0x432   : > { %9523 = vmatpush3.msra.mxu0 %v3383_v8  ;;  %9558 = vmatpush3.msra.mxu1 %v3282_v9  ;;  %v4000_v8 = vld [vmem:[#allocation13 + $0x250] sm:$0xff] }
 0x433   : > { %9562 = vmatprep.subr.mxu0 %v11967_v29  ;;  %9573 = vmatprep.subr.mxu1 %v3649_v10  ;;  %v4182_v9 = vld [vmem:[#allocation13 + $0x2f0] sm:$0xff] }
 0x4d2   : > { %v9480_v11 = vpop.f32.mrf.mxu0  ;;  %v9491_v12 = vpop.f32.mrf.mxu1 }
 0x4d4   : > { %v3273_v13 = vpop.f32.mrf.mxu0  ;;  %v3373_v14 = vpop.f32.mrf.mxu1 }
 0x4d5   : > { %9524 = vmatprep.mubr.f32.mxu0 %v3373_v14  ;;  %9559 = vmatprep.mubr.f32.mxu1 %v3273_v13  ;;  %v4180_v13 = vld [vmem:[#allocation13 + $0x2e0] sm:$0xff]  ;;  %v3997_v14 = vld [vmem:[#allocation13 + $0x238] sm:$0xff] }
 0x4d6   : > { %9525 = vmatmul.mubr.f32.vlgmr.msra.gmra.mxu0 %v9491_v12  ;;  %9560 = vmatmul.mubr.f32.vlgmr.msra.gmra.mxu1 %v9480_v11  ;;  %v4181_v11 = vld [vmem:[#allocation13 + $0x2e8] sm:$0xff]  ;;  %v3998_v12 = vld [vmem:[#allocation13 + $0x240] sm:$0xff] }
 0x4d7   : > { %9563 = vmatpush3.msra.mxu0 %v11967_v29  ;;  %9574 = vmatpush3.msra.mxu1 %v3649_v10  ;;  %v3999_v10 = vld [vmem:[#allocation13 + $0x248] sm:$0xff] }
 0x4d8   : > { %9564 = vmatprep.subr.mxu0 %v11973_v33  ;;  %9575 = vmatprep.subr.mxu1 %v3648_v15 }
 0x4d9   : > { %9565 = vmatpush3.msra.mxu0 %v11973_v33  ;;  %9576 = vmatpush3.msra.mxu1 %v3648_v15  ;;  %v4179_v15 = vld [vmem:[#allocation13 + $0x2d8] sm:$0xff] }
 0x4da   : > { %9566 = vmatprep.subr.mxu0 %v11977_v34  ;;  %9577 = vmatprep.subr.mxu1 %v3647_v16 }
 0x4db   : > { %9567 = vmatpush3.msra.mxu0 %v11977_v34  ;;  %9578 = vmatpush3.msra.mxu1 %v3647_v16  ;;  %v3996_v16 = vld [vmem:[#allocation13 + $0x230] sm:$0xff] }
 0x4dc   : > { %9568 = vmatprep.subr.mxu0 %v11983_v35  ;;  %9579 = vmatprep.subr.mxu1 %v3646_v17 }
 0x4dd   : > { %9569 = vmatpush3.msra.mxu0 %v11983_v35  ;;  %9570 = vmatprep.mubr.msk.f32.mxu0 %vm3200_vm1, %v3550_v18  ;;  %v3995_v18 = vld [vmem:[#allocation13 + $0x228] sm:$0xff] }
 0x4de   : > { %9580 = vmatpush3.msra.mxu1 %v3646_v17  ;;  %9571 = vmatmul.mubr.msk.f32.vlgmr.msra.gmra.mxu0 %vm3200_vm1, %v3551_v19  ;;  %v4178_v17 = vld [vmem:[#allocation13 + $0x2d0] sm:$0xff]  ;;  %v4177_v19 = vld [vmem:[#allocation13 + $0x2c8] sm:$0xff] }
 0x4df   : > { %9581 = vmatprep.subr.mxu1 %v3645_v20  ;;  %9608 = vmatprep.subr.mxu0 %v11967_v29 }
 0x4e0   : > { %9582 = vmatpush3.msra.mxu1 %v3645_v20  ;;  %9609 = vmatpush3.msra.mxu0 %v11967_v29  ;;  %v3994_v20 = vld [vmem:[#allocation13 + $0x220] sm:$0xff] }
 0x4e1   : > { %9583 = vmatprep.subr.mxu1 %v3644_v21  ;;  %9610 = vmatprep.subr.mxu0 %v11973_v33 }
 0x4e2   : > { %9584 = vmatpush3.msra.mxu1 %v3644_v21  ;;  %9611 = vmatpush3.msra.mxu0 %v11973_v33  ;;  %v4176_v21 = vld [vmem:[#allocation13 + $0x2c0] sm:$0xff] }
 0x4e3   : > { %9585 = vmatprep.subr.mxu1 %v3643_v22  ;;  %9612 = vmatprep.subr.mxu0 %v11977_v34 }
 0x4e4   : > { %9586 = vmatpush3.msra.mxu1 %v3643_v22  ;;  %9613 = vmatpush3.msra.mxu0 %v11977_v34  ;;  %v3993_v22 = vld [vmem:[#allocation13 + $0x218] sm:$0xff] }
 0x4e5   : > { %9587 = vmatprep.subr.mxu1 %v3642_v23  ;;  %9614 = vmatprep.subr.mxu0 %v11983_v35 }
 0x4e6   : > { %9588 = vmatpush3.msra.mxu1 %v3642_v23  ;;  %9615 = vmatpush3.msra.mxu0 %v11983_v35  ;;  %v4175_v23 = vld [vmem:[#allocation13 + $0x2b8] sm:$0xff] }
 0x4e7   : > { %9616 = vmatprep.mubr.msk.f32.mxu0 %vm3200_vm1, %v3728_v24  ;;  %9589 = vmatprep.subr.mxu1 %v3641_v25  ;;  %v3992_v24 = vld [vmem:[#allocation13 + $0x210] sm:$0xff] }
 0x4e8   : > { %9617 = vmatmul.mubr.msk.f32.vlgmr.msra.gmra.mxu0 %vm3200_vm1, %v3729_v0  ;;  %9619 = vmatprep.subr.mxu0 %v3827_v1  ;;  %v3991_v0 = vld [vmem:[#allocation13 + $0x208] sm:$0xff] }
 0x4e9   : > { %9590 = vmatpush3.msra.mxu1 %v3641_v25  ;;  %9620 = vmatpush3.msra.mxu0 %v3827_v1  ;;  %v4174_v25 = vld [vmem:[#allocation13 + $0x2b0] sm:$0xff]  ;;  %v4173_v1 = vld [vmem:[#allocation13 + $0x2a8] sm:$0xff] }
 0x4ea   : > { %9591 = vmatprep.subr.mxu1 %v3640_v2  ;;  %9621 = vmatprep.subr.mxu0 %v3826_v26 }
 0x4eb   : > { %9592 = vmatpush3.msra.mxu1 %v3640_v2  ;;  %9622 = vmatpush3.msra.mxu0 %v3826_v26  ;;  %v3990_v2 = vld [vmem:[#allocation13 + $0x200] sm:$0xff] }
 0x4ec   : > { %9593 = vmatprep.subr.mxu1 %v3639_v27  ;;  %9623 = vmatprep.subr.mxu0 %v3825_v7  ;;  %v4172_v26 = vld [vmem:[#allocation13 + $0x2a0] sm:$0xff] }
 0x4ed   : > { %9594 = vmatpush3.msra.mxu1 %v3639_v27  ;;  %9624 = vmatpush3.msra.mxu0 %v3825_v7  ;;  %v4171_v27 = vld [vmem:[#allocation13 + $0x298] sm:$0xff]  ;;  %v4170_v7 = vld [vmem:[#allocation13 + $0x290] sm:$0xff] }
 0x4ee   : > { %9595 = vmatprep.subr.mxu1 %v3638_v28  ;;  %9625 = vmatprep.subr.mxu0 %v3824_v30 }
 0x4ef   : > { %9596 = vmatpush3.msra.mxu1 %v3638_v28  ;;  %9626 = vmatpush3.msra.mxu0 %v3824_v30  ;;  %v4169_v28 = vld [vmem:[#allocation13 + $0x288] sm:$0xff]  ;;  %v4168_v30 = vld [vmem:[#allocation13 + $0x280] sm:$0xff] }
 0x4f0   : > { %9597 = vmatprep.subr.mxu1 %v3637_v31  ;;  %9627 = vmatprep.subr.mxu0 %v3823_v32 }
 0x4f1   : > { %9598 = vmatpush3.msra.mxu1 %v3637_v31  ;;  %9628 = vmatpush3.msra.mxu0 %v3823_v32 }
 0x4f2   : > { %9599 = vmatprep.subr.mxu1 %v3636_v36  ;;  %9629 = vmatprep.subr.mxu0 %v3822_v37 }
 0x4f3   : > { %9600 = vmatpush3.msra.mxu1 %v3636_v36  ;;  %9630 = vmatpush3.msra.mxu0 %v3822_v37 }
 0x4f4   : > { %9601 = vmatprep.subr.mxu1 %v3635_v38  ;;  %9631 = vmatprep.subr.mxu0 %v3821_v39 }
 0x4f5   : > { %9602 = vmatpush3.msra.mxu1 %v3635_v38  ;;  %9632 = vmatpush3.msra.mxu0 %v3821_v39 }
 0x4f6   : > { %9603 = vmatprep.subr.mxu1 %v3634_v40  ;;  %9633 = vmatprep.subr.mxu0 %v3820_v41 }
 0x4f7   : > { %9604 = vmatpush3.msra.mxu1 %v3634_v40  ;;  %9634 = vmatpush3.msra.mxu0 %v3820_v41 }
 0x4f8   : > { %9635 = vmatprep.subr.mxu0 %v3819_v42  ;;  %9654 = vmatprep.subr.mxu1 %v11967_v29 }
 0x4f9   : > { %9636 = vmatpush3.msra.mxu0 %v3819_v42 }
 0x4fa   : > { %9637 = vmatprep.subr.mxu0 %v3818_v43 }
 0x4fb   : > { %9638 = vmatpush3.msra.mxu0 %v3818_v43  ;;  %v4262_v43 = vld [vmem:[#allocation12 + $0x60] sm:$0xff] }
 0x4fc   : > { %9639 = vmatprep.subr.mxu0 %v3817_v44 }
 0x4fd   : > { %9640 = vmatpush3.msra.mxu0 %v3817_v44 }
 0x4fe   : > { %9641 = vmatprep.subr.mxu0 %v3816_v45 }
 0x4ff   : > { %9642 = vmatpush3.msra.mxu0 %v3816_v45 }
 0x500   : > { %9643 = vmatprep.subr.mxu0 %v3815_v46 }
 0x501   : > { %9644 = vmatpush3.msra.mxu0 %v3815_v46 }
 0x502   : > { %9645 = vmatprep.subr.mxu0 %v3814_v47 }
 0x503   : > { %9646 = vmatpush3.msra.mxu0 %v3814_v47  ;;  %v4263_v47 = vld [vmem:[#allocation12 + $0x68] sm:$0xff] }
 0x504   : > { %9647 = vmatprep.subr.mxu0 %v3813_v48 }
 0x505   : > { %9648 = vmatpush3.msra.mxu0 %v3813_v48  ;;  %v4361_v48 = vld [vmem:[#allocation13 + $0x378] sm:$0xff] }
 0x506   : > { %9649 = vmatprep.subr.mxu0 %v3812_v49 }
 0x507   : > { %9650 = vmatpush3.msra.mxu0 %v3812_v49 }
 0x508   : > { %9700 = vmatprep.subr.mxu0 %v11967_v29 }
 0x596   : > { %v9526_v50 = vpop.f32.mrf.mxu0  ;;  %v9561_v51 = vpop.f32.mrf.mxu1 }
 0x597   : > { %v12015_v52 = vadd.f32 %v9561_v51, %v9526_v50  ;;  %v4360_v50 = vld [vmem:[#allocation13 + $0x370] sm:$0xff] }
 0x598   : > { %v12017_v53 = vpop.f32.mrf.mxu0  ;;  %v3540_v31 = vpop.f32.mrf.mxu1 }
 0x599   : > { %v3541_v36 = vadd.f32 %v3540_v31, %v12017_v53  ;;  %v4358_v53 = vld [vmem:[#allocation13 + $0x360] sm:$0xff] }
 0x59e   : > { %v9572_v54 = vpop.f32.mrf.mxu0 }
 0x5a0   : > { %v3624_v3 = vpop.f32.mrf.mxu0 }
 0x5a1   : > { %9605 = vmatprep.mubr.f32.mxu1 %v3624_v3  ;;  %v4357_v3 = vld [vmem:[#allocation13 + $0x358] sm:$0xff] }
 0x5a2   : > { %9606 = vmatmul.mubr.f32.vlgmr.msra.gmra.mxu1 %v9572_v54  ;;  %v4440_v54 = vld [vmem:[#allocation12 + $0x70] sm:$0xff] }
 0x5a3   : > { %9655 = vmatpush3.msra.mxu1 %v11967_v29  ;;  %9662 = vmatprep.mubr.msk.f32.mxu1 %vm3200_vm1, %v3906_v55  ;;  %v4441_v55 = vld [vmem:[#allocation12 + $0x78] sm:$0xff] }
 0x5a4   : > { %9656 = vmatprep.subr.mxu1 %v11973_v33 }
 0x5a5   : > { %9657 = vmatpush3.msra.mxu1 %v11973_v33 }
 0x5a6   : > { %9658 = vmatprep.subr.mxu1 %v11977_v34 }
 0x5a7   : > { %9659 = vmatpush3.msra.mxu1 %v11977_v34 }
 0x5a8   : > { %v9618_v57 = vpop.f32.mrf.mxu0  ;;  %9660 = vmatprep.subr.mxu1 %v11983_v35 }
 0x5a9   : > { %9661 = vmatpush3.msra.mxu1 %v11983_v35 }
 0x5aa   : > { %v3802_v58 = vpop.f32.mrf.mxu0  ;;  %9663 = vmatmul.mubr.msk.f32.vlgmr.msra.gmra.mxu1 %vm3200_vm1, %v3907_v56  ;;  %9665 = vmatprep.subr.mxu1 %v4005_v5  ;;  %v4356_v56 = vld [vmem:[#allocation13 + $0x350] sm:$0xff] }
 0x5ab   : > { %9651 = vmatprep.mubr.f32.mxu0 %v3802_v58  ;;  %9666 = vmatpush3.msra.mxu1 %v4005_v5  ;;  %v4539_v5 = vld [vmem:[#allocation13 + $0x3f8] sm:$0xff]  ;;  %v4354_v58 = vld [vmem:[#allocation13 + $0x340] sm:$0xff] }
 0x5ac   : > { %9652 = vmatmul.mubr.f32.vlgmr.msra.gmra.mxu0 %v9618_v57  ;;  %9667 = vmatprep.subr.mxu1 %v4004_v4  ;;  %v4355_v57 = vld [vmem:[#allocation13 + $0x348] sm:$0xff] }
 0x5ad   : > { %9701 = vmatpush3.msra.mxu0 %v11967_v29  ;;  %9668 = vmatpush3.msra.mxu1 %v4004_v4  ;;  %v4538_v4 = vld [vmem:[#allocation13 + $0x3f0] sm:$0xff] }
 0x5ae   : > { %9702 = vmatprep.subr.mxu0 %v11973_v33  ;;  %9669 = vmatprep.subr.mxu1 %v4003_v59 }
 0x5af   : > { %9703 = vmatpush3.msra.mxu0 %v11973_v33  ;;  %9670 = vmatpush3.msra.mxu1 %v4003_v59  ;;  %v4537_v59 = vld [vmem:[#allocation13 + $0x3e8] sm:$0xff] }
 0x5b0   : > { %9704 = vmatprep.subr.mxu0 %v11977_v34  ;;  %9671 = vmatprep.subr.mxu1 %v4002_v60 }
 0x5b1   : > { %9705 = vmatpush3.msra.mxu0 %v11977_v34  ;;  %9672 = vmatpush3.msra.mxu1 %v4002_v60  ;;  %v4353_v60 = vld [vmem:[#allocation13 + $0x338] sm:$0xff] }
 0x5b2   : > { %9706 = vmatprep.subr.mxu0 %v11983_v35  ;;  %9708 = vmatprep.mubr.msk.f32.mxu0 %vm3200_vm1, %v4084_v6  ;;  %v4536_v6 = vld [vmem:[#allocation13 + $0x3e0] sm:$0xff] }
 0x5b3   : > { %9707 = vmatpush3.msra.mxu0 %v11983_v35  ;;  %9673 = vmatprep.subr.mxu1 %v4001_v61 }
 0x5b4   : > { %9709 = vmatmul.mubr.msk.f32.vlgmr.msra.gmra.mxu0 %vm3200_vm1, %v4085_v62  ;;  %9711 = vmatprep.subr.mxu0 %v4183_v63  ;;  %v4535_v62 = vld [vmem:[#allocation13 + $0x3d8] sm:$0xff] }
 0x5b5   : > { %9674 = vmatpush3.msra.mxu1 %v4001_v61  ;;  %9712 = vmatpush3.msra.mxu0 %v4183_v63  ;;  %v4352_v61 = vld [vmem:[#allocation13 + $0x330] sm:$0xff]  ;;  %v4351_v63 = vld [vmem:[#allocation13 + $0x328] sm:$0xff] }
 0x5b6   : > { %9675 = vmatprep.subr.mxu1 %v4000_v8  ;;  %9713 = vmatprep.subr.mxu0 %v4182_v9 }
 0x5b7   : > { %9676 = vmatpush3.msra.mxu1 %v4000_v8  ;;  %9714 = vmatpush3.msra.mxu0 %v4182_v9  ;;  %v4534_v8 = vld [vmem:[#allocation13 + $0x3d0] sm:$0xff]  ;;  %v4350_v9 = vld [vmem:[#allocation13 + $0x320] sm:$0xff] }
 0x5b8   : > { %9677 = vmatprep.subr.mxu1 %v3999_v10  ;;  %9715 = vmatprep.subr.mxu0 %v4181_v11 }
 0x5b9   : > { %9678 = vmatpush3.msra.mxu1 %v3999_v10  ;;  %9716 = vmatpush3.msra.mxu0 %v4181_v11  ;;  %v4533_v10 = vld [vmem:[#allocation13 + $0x3c8] sm:$0xff]  ;;  %v4349_v11 = vld [vmem:[#allocation13 + $0x318] sm:$0xff] }
 0x5ba   : > { %9679 = vmatprep.subr.mxu1 %v3998_v12  ;;  %9717 = vmatprep.subr.mxu0 %v4180_v13 }
 0x5bb   : > { %9680 = vmatpush3.msra.mxu1 %v3998_v12  ;;  %9718 = vmatpush3.msra.mxu0 %v4180_v13  ;;  %v4348_v12 = vld [vmem:[#allocation13 + $0x310] sm:$0xff]  ;;  %v4347_v13 = vld [vmem:[#allocation13 + $0x308] sm:$0xff] }
 0x5bc   : > { %9681 = vmatprep.subr.mxu1 %v3997_v14  ;;  %9719 = vmatprep.subr.mxu0 %v4179_v15 }
 0x5bd   : > { %9682 = vmatpush3.msra.mxu1 %v3997_v14  ;;  %9720 = vmatpush3.msra.mxu0 %v4179_v15  ;;  %v4346_v14 = vld [vmem:[#allocation13 + $0x300] sm:$0xff] }
 0x5be   : > { %9683 = vmatprep.subr.mxu1 %v3996_v16  ;;  %9721 = vmatprep.subr.mxu0 %v4178_v17  ;;  %v4532_v15 = vld [vmem:[#allocation13 + $0x3c0] sm:$0xff] }
 0x5bf   : > { %9684 = vmatpush3.msra.mxu1 %v3996_v16  ;;  %9722 = vmatpush3.msra.mxu0 %v4178_v17  ;;  %v4531_v16 = vld [vmem:[#allocation13 + $0x3b8] sm:$0xff]  ;;  %v4530_v17 = vld [vmem:[#allocation13 + $0x3b0] sm:$0xff] }
 0x5c0   : > { %9685 = vmatprep.subr.mxu1 %v3995_v18  ;;  %9723 = vmatprep.subr.mxu0 %v4177_v19 }
 0x5c1   : > { %9686 = vmatpush3.msra.mxu1 %v3995_v18  ;;  %9724 = vmatpush3.msra.mxu0 %v4177_v19  ;;  %v4529_v18 = vld [vmem:[#allocation13 + $0x3a8] sm:$0xff]  ;;  %v4528_v19 = vld [vmem:[#allocation13 + $0x3a0] sm:$0xff] }
 0x5c2   : > { %9687 = vmatprep.subr.mxu1 %v3994_v20  ;;  %9725 = vmatprep.subr.mxu0 %v4176_v21 }
 0x5c3   : > { %9688 = vmatpush3.msra.mxu1 %v3994_v20  ;;  %9726 = vmatpush3.msra.mxu0 %v4176_v21  ;;  %v4527_v20 = vld [vmem:[#allocation13 + $0x398] sm:$0xff]  ;;  %v4526_v21 = vld [vmem:[#allocation13 + $0x390] sm:$0xff] }
 0x5c4   : > { %9689 = vmatprep.subr.mxu1 %v3993_v22  ;;  %9727 = vmatprep.subr.mxu0 %v4175_v23 }
 0x5c5   : > { %9690 = vmatpush3.msra.mxu1 %v3993_v22  ;;  %9728 = vmatpush3.msra.mxu0 %v4175_v23  ;;  %v4525_v22 = vld [vmem:[#allocation13 + $0x388] sm:$0xff]  ;;  %v4524_v23 = vld [vmem:[#allocation13 + $0x380] sm:$0xff] }
 0x5c6   : > { %9691 = vmatprep.subr.mxu1 %v3992_v24  ;;  %9729 = vmatprep.subr.mxu0 %v4174_v25 }
 0x5c7   : > { %9692 = vmatpush3.msra.mxu1 %v3992_v24  ;;  %9730 = vmatpush3.msra.mxu0 %v4174_v25 }
 0x5c8   : > { %9693 = vmatprep.subr.mxu1 %v3991_v0  ;;  %9731 = vmatprep.subr.mxu0 %v4173_v1 }
 0x5c9   : > { %9694 = vmatpush3.msra.mxu1 %v3991_v0  ;;  %9732 = vmatpush3.msra.mxu0 %v4173_v1 }
 0x5ca   : > { %9695 = vmatprep.subr.mxu1 %v3990_v2  ;;  %9733 = vmatprep.subr.mxu0 %v4172_v26 }
 0x5cb   : > { %9696 = vmatpush3.msra.mxu1 %v3990_v2  ;;  %9734 = vmatpush3.msra.mxu0 %v4172_v26 }
 0x5cc   : > { %9735 = vmatprep.subr.mxu0 %v4171_v27  ;;  %9746 = vmatprep.subr.mxu1 %v11967_v29 }
 0x5cd   : > { %9736 = vmatpush3.msra.mxu0 %v4171_v27 }
 0x5ce   : > { %9737 = vmatprep.subr.mxu0 %v4170_v7 }
 0x5cf   : > { %9738 = vmatpush3.msra.mxu0 %v4170_v7  ;;  %v4618_v7 = vld [vmem:[#allocation12 + $0x80] sm:$0xff] }
 0x5d0   : > { %9739 = vmatprep.subr.mxu0 %v4169_v28 }
 0x5d1   : > { %9740 = vmatpush3.msra.mxu0 %v4169_v28 }
 0x5d2   : > { %9741 = vmatprep.subr.mxu0 %v4168_v30 }
 0x5d3   : > { %9742 = vmatpush3.msra.mxu0 %v4168_v30 }
 0x5d4   : > { %9792 = vmatprep.subr.mxu0 %v11967_v29 }
 0x662   : > { %v9607_v32 = vpop.f32.mrf.mxu1 }
 0x663   : > { %v3726_v37 = vadd.f32 %v9607_v32, %v12015_v52  ;;  %v4359_v52 = vld [vmem:[#allocation13 + $0x368] sm:$0xff]  ;;  %v4619_v32 = vld [vmem:[#allocation12 + $0x88] sm:$0xff] }
 0x664   : > { %v3716_v38 = vpop.f32.mrf.mxu1 }
 0x665   : > { %v3725_v39 = vadd.f32 %v3716_v38, %v3541_v36  ;;  %v4717_v36 = vld [vmem:[#allocation13 + $0x478] sm:$0xff]  ;;  %v4716_v38 = vld [vmem:[#allocation13 + $0x470] sm:$0xff] }
 0x66a   : > { %v9664_v40 = vpop.f32.mrf.mxu1 }
 0x66c   : > { %v9653_v41 = vpop.f32.mrf.mxu0  ;;  %v3980_v42 = vpop.f32.mrf.mxu1 }
 0x66d   : > { %v12041_v44 = vadd.f32 %v9653_v41, %v3726_v37  ;;  %9697 = vmatprep.mubr.f32.mxu1 %v3980_v42  ;;  %v4710_v41 = vld [vmem:[#allocation13 + $0x440] sm:$0xff]  ;;  %v4709_v42 = vld [vmem:[#allocation13 + $0x438] sm:$0xff] }
 0x66e   : > { %v3894_v45 = vpop.f32.mrf.mxu0  ;;  %9698 = vmatmul.mubr.f32.vlgmr.msra.gmra.mxu1 %v9664_v40  ;;  %v4712_v40 = vld [vmem:[#allocation13 + $0x450] sm:$0xff] }
 0x66f   : > { %v12043_v46 = vadd.f32 %v3894_v45, %v3725_v39  ;;  %9747 = vmatpush3.msra.mxu1 %v11967_v29  ;;  %9754 = vmatprep.mubr.msk.f32.mxu1 %vm3200_vm1, %v4262_v43  ;;  %v4708_v43 = vld [vmem:[#allocation13 + $0x430] sm:$0xff]  ;;  %v4706_v45 = vld [vmem:[#allocation13 + $0x420] sm:$0xff] }
 0x670   : > { %9748 = vmatprep.subr.mxu1 %v11973_v33 }
 0x671   : > { %9749 = vmatpush3.msra.mxu1 %v11973_v33 }
 0x672   : > { %9750 = vmatprep.subr.mxu1 %v11977_v34 }
 0x673   : > { %9751 = vmatpush3.msra.mxu1 %v11977_v34 }
 0x674   : > { %v9710_v49 = vpop.f32.mrf.mxu0  ;;  %9752 = vmatprep.subr.mxu1 %v11983_v35 }
 0x675   : > { %9753 = vmatpush3.msra.mxu1 %v11983_v35 }
 0x676   : > { %v4158_v51 = vpop.f32.mrf.mxu0  ;;  %9755 = vmatmul.mubr.msk.f32.vlgmr.msra.gmra.mxu1 %vm3200_vm1, %v4263_v47  ;;  %9757 = vmatprep.subr.mxu1 %v4361_v48  ;;  %v4704_v47 = vld [vmem:[#allocation13 + $0x410] sm:$0xff] }
 0x677   : > { %9743 = vmatprep.mubr.f32.mxu0 %v4158_v51  ;;  %9758 = vmatpush3.msra.mxu1 %v4361_v48  ;;  %v4703_v48 = vld [vmem:[#allocation13 + $0x408] sm:$0xff] }
 0x678   : > { %9744 = vmatmul.mubr.f32.vlgmr.msra.gmra.mxu0 %v9710_v49  ;;  %9759 = vmatprep.subr.mxu1 %v4360_v50  ;;  %v4702_v49 = vld [vmem:[#allocation13 + $0x400] sm:$0xff] }
 0x679   : > { %9793 = vmatpush3.msra.mxu0 %v11967_v29  ;;  %9760 = vmatpush3.msra.mxu1 %v4360_v50 }
 0x67a   : > { %9794 = vmatprep.subr.mxu0 %v11973_v33  ;;  %9761 = vmatprep.subr.mxu1 %v4359_v52 }
 0x67b   : > { %9795 = vmatpush3.msra.mxu0 %v11973_v33  ;;  %9762 = vmatpush3.msra.mxu1 %v4359_v52 }
 0x67c   : > { %9796 = vmatprep.subr.mxu0 %v11977_v34  ;;  %9763 = vmatprep.subr.mxu1 %v4358_v53 }
 0x67d   : > { %9797 = vmatpush3.msra.mxu0 %v11977_v34  ;;  %9764 = vmatpush3.msra.mxu1 %v4358_v53 }
 0x67e   : > { %9798 = vmatprep.subr.mxu0 %v11983_v35  ;;  %9800 = vmatprep.mubr.msk.f32.mxu0 %vm3200_vm1, %v4440_v54 }
 0x67f   : > { %9799 = vmatpush3.msra.mxu0 %v11983_v35  ;;  %9765 = vmatprep.subr.mxu1 %v4357_v3 }
 0x680   : > { %9801 = vmatmul.mubr.msk.f32.vlgmr.msra.gmra.mxu0 %vm3200_vm1, %v4441_v55  ;;  %9766 = vmatpush3.msra.mxu1 %v4357_v3  ;;  %v11257_v55 = vmov 0.0  }
 0x681   : > { %9767 = vmatprep.subr.mxu1 %v4356_v56  ;;  %9803 = vmatprep.subr.mxu0 %v4539_v5 }
 0x682   : > { %9768 = vmatpush3.msra.mxu1 %v4356_v56  ;;  %9804 = vmatpush3.msra.mxu0 %v4539_v5  ;;  %v4902_v56 = vld [vmem:[#allocation18 + $0x78] sm:$0xff]  ;;  %v4901_v5 = vld [vmem:[#allocation18 + $0x70] sm:$0xff] }
 0x683   : > { %9769 = vmatprep.subr.mxu1 %v4355_v57  ;;  %9805 = vmatprep.subr.mxu0 %v4538_v4 }
 0x684   : > { %9770 = vmatpush3.msra.mxu1 %v4355_v57  ;;  %9806 = vmatpush3.msra.mxu0 %v4538_v4  ;;  %v4900_v57 = vld [vmem:[#allocation18 + $0x68] sm:$0xff]  ;;  %v4899_v4 = vld [vmem:[#allocation18 + $0x60] sm:$0xff] }
 0x685   : > { %9771 = vmatprep.subr.mxu1 %v4354_v58  ;;  %9807 = vmatprep.subr.mxu0 %v4537_v59 }
 0x686   : > { %9772 = vmatpush3.msra.mxu1 %v4354_v58  ;;  %9808 = vmatpush3.msra.mxu0 %v4537_v59  ;;  %v4898_v58 = vld [vmem:[#allocation18 + $0x58] sm:$0xff]  ;;  %v4897_v59 = vld [vmem:[#allocation18 + $0x50] sm:$0xff] }
 0x687   : > { %9773 = vmatprep.subr.mxu1 %v4353_v60  ;;  %9809 = vmatprep.subr.mxu0 %v4536_v6 }
 0x688   : > { %9774 = vmatpush3.msra.mxu1 %v4353_v60  ;;  %9810 = vmatpush3.msra.mxu0 %v4536_v6  ;;  %v4896_v60 = vld [vmem:[#allocation18 + $0x48] sm:$0xff]  ;;  %v4895_v6 = vld [vmem:[#allocation18 + $0x40] sm:$0xff] }
 0x689   : > { %9775 = vmatprep.subr.mxu1 %v4352_v61  ;;  %9811 = vmatprep.subr.mxu0 %v4535_v62 }
 0x68a   : > { %9776 = vmatpush3.msra.mxu1 %v4352_v61  ;;  %9812 = vmatpush3.msra.mxu0 %v4535_v62  ;;  %v4894_v61 = vld [vmem:[#allocation18 + $0x38] sm:$0xff]  ;;  %v4893_v62 = vld [vmem:[#allocation18 + $0x30] sm:$0xff] }
 0x68b   : > { %9777 = vmatprep.subr.mxu1 %v4351_v63  ;;  %9813 = vmatprep.subr.mxu0 %v4534_v8 }
 0x68c   : > { %9778 = vmatpush3.msra.mxu1 %v4351_v63  ;;  %9814 = vmatpush3.msra.mxu0 %v4534_v8  ;;  %v4892_v63 = vld [vmem:[#allocation18 + $0x28] sm:$0xff]  ;;  %v4891_v8 = vld [vmem:[#allocation18 + $0x20] sm:$0xff] }
 0x68d   : > { %9779 = vmatprep.subr.mxu1 %v4350_v9  ;;  %9815 = vmatprep.subr.mxu0 %v4533_v10 }
 0x68e   : > { %9780 = vmatpush3.msra.mxu1 %v4350_v9  ;;  %9816 = vmatpush3.msra.mxu0 %v4533_v10  ;;  %v4890_v9 = vld [vmem:[#allocation18 + $0x18] sm:$0xff]  ;;  %v4889_v10 = vld [vmem:[#allocation18 + $0x10] sm:$0xff] }
 0x68f   : > { %9781 = vmatprep.subr.mxu1 %v4349_v11  ;;  %9817 = vmatprep.subr.mxu0 %v4532_v15 }
 0x690   : > { %9782 = vmatpush3.msra.mxu1 %v4349_v11  ;;  %9818 = vmatpush3.msra.mxu0 %v4532_v15  ;;  %v4888_v11 = vld [vmem:[#allocation18 + $0x8] sm:$0xff] }
 0x691   : > { %9783 = vmatprep.subr.mxu1 %v4348_v12  ;;  %9819 = vmatprep.subr.mxu0 %v4531_v16 }
 0x692   : > { %9784 = vmatpush3.msra.mxu1 %v4348_v12  ;;  %9820 = vmatpush3.msra.mxu0 %v4531_v16  ;;  %v8133_v16 = vld [vmem:[#allocation15] ss:$0 sm:$0xff] }
 0x693   : > { %9785 = vmatprep.subr.mxu1 %v4347_v13  ;;  %9821 = vmatprep.subr.mxu0 %v4530_v17 }
 0x694   : > { %9786 = vmatpush3.msra.mxu1 %v4347_v13  ;;  %9822 = vmatpush3.msra.mxu0 %v4530_v17 }
 0x695   : > { %9787 = vmatprep.subr.mxu1 %v4346_v14  ;;  %9823 = vmatprep.subr.mxu0 %v4529_v18 }
 0x696   : > { %9788 = vmatpush3.msra.mxu1 %v4346_v14  ;;  %9824 = vmatpush3.msra.mxu0 %v4529_v18 }
 0x697   : > { %9838 = vmatprep.subr.mxu1 %v11967_v29  ;;  %9825 = vmatprep.subr.mxu0 %v4528_v19 }
 0x698   : > { %9826 = vmatpush3.msra.mxu0 %v4528_v19  ;;  %v4807_v19 = vstv %s8134_s7  ;;  %s12682_s7 = sld [smem:[#allocation53_spill]] }
 0x699   : > { %9827 = vmatprep.subr.mxu0 %v4527_v20 }
 0x69a   : > { %9828 = vmatpush3.msra.mxu0 %v4527_v20 }
 0x69b   : > { %9829 = vmatprep.subr.mxu0 %v4526_v21 }
 0x69c   : > { %9830 = vmatpush3.msra.mxu0 %v4526_v21 }
 0x69d   : > { %9831 = vmatprep.subr.mxu0 %v4525_v22 }
 0x69e   : > { %9832 = vmatpush3.msra.mxu0 %v4525_v22  ;;  %s12552_s27 = scalar_lea.hbm %s12682_s7, %s8177_s20 }
 0x69f   : > { %9833 = vmatprep.subr.mxu0 %v4524_v23 }
 0x6a0   : > { %9834 = vmatpush3.msra.mxu0 %v4524_v23 }
 0x6a1   : > { %9884 = vmatprep.subr.mxu0 %v11257_v55 }
 0x72e   : > { %v9699_v24 = vpop.f32.mrf.mxu1 }
 0x72f   : > { %v4082_v25 = vadd.f32 %v9699_v24, %v12041_v44  ;;  %v4707_v44 = vld [vmem:[#allocation13 + $0x428] sm:$0xff] }
 0x730   : > { %v4072_v0 = vpop.f32.mrf.mxu1 }
 0x731   : > { %v4081_v1 = vadd.f32 %v4072_v0, %v12043_v46  ;;  %v4705_v46 = vld [vmem:[#allocation13 + $0x418] sm:$0xff] }
 0x736   : > { %v9756_v2 = vpop.f32.mrf.mxu1 }
 0x738   : > { %v9745_v26 = vpop.f32.mrf.mxu0  ;;  %v4336_v27 = vpop.f32.mrf.mxu1 }
 0x739   : > { %v12066_v28 = vadd.f32 %v9745_v26, %v4082_v25  ;;  %9789 = vmatprep.mubr.f32.mxu1 %v4336_v27  ;;  %v4904_v26 = vld [vmem:[#allocation16 + $0x8] sm:$0xff]  ;;  %v4994_v27 = vld [vmem:[#allocation18 + $0xf8] sm:$0xff] }
 0x73a   : > { %v4250_v30 = vpop.f32.mrf.mxu0  ;;  %9790 = vmatmul.mubr.f32.vlgmr.msra.gmra.mxu1 %v9756_v2 }
 0x73b   : > { %v12068_v31 = vadd.f32 %v4250_v30, %v4081_v1  ;;  %9839 = vmatpush3.msra.mxu1 %v11967_v29  ;;  %9846 = vmatprep.mubr.msk.f32.mxu1 %vm3200_vm1, %v4618_v7  ;;  %v4715_v29 = vld [vmem:[#allocation13 + $0x468] sm:$0xff]  ;;  %v4991_v30 = vld [vmem:[#allocation18 + $0xe0] sm:$0xff] }
 0x73c   : > { %9840 = vmatprep.subr.mxu1 %v11973_v33  ;;  %v4812_v1 = vld [vmem:[#allocation16] sm:$0xff]  ;;  %v4993_v7 = vld [vmem:[#allocation18 + $0xf0] sm:$0xff] }
 0x73d   : > { %9841 = vmatpush3.msra.mxu1 %v11973_v33  ;;  %v4714_v33 = vld [vmem:[#allocation13 + $0x460] sm:$0xff] }
 0x73e   : > { %9842 = vmatprep.subr.mxu1 %v11977_v34 }
 0x73f   : > { %9843 = vmatpush3.msra.mxu1 %v11977_v34  ;;  %v4713_v34 = vld [vmem:[#allocation13 + $0x458] sm:$0xff] }
 0x740   : > { %v9802_v37 = vpop.f32.mrf.mxu0  ;;  %9844 = vmatprep.subr.mxu1 %v11983_v35 }
 0x741   : > { %9845 = vmatpush3.msra.mxu1 %v11983_v35  ;;  %v4711_v35 = vld [vmem:[#allocation13 + $0x448] sm:$0xff] }
 0x742   : > { %v4514_v39 = vpop.f32.mrf.mxu0  ;;  %9847 = vmatmul.mubr.msk.f32.vlgmr.msra.gmra.mxu1 %vm3200_vm1, %v4619_v32  ;;  %9849 = vmatprep.subr.mxu1 %v4717_v36  ;;  %v4989_v32 = vld [vmem:[#allocation18 + $0xd0] sm:$0xff]  ;;  %vm7296_vm1 = vcmask 1041408  }
 0x743   : > { %9835 = vmatprep.mubr.f32.mxu0 %v4514_v39  ;;  %9850 = vmatpush3.msra.mxu1 %v4717_v36  ;;  %v4988_v36 = vld [vmem:[#allocation18 + $0xc8] sm:$0xff]  ;;  %v4985_v39 = vld [vmem:[#allocation18 + $0xb0] sm:$0xff] }
 0x744   : > { %9836 = vmatmul.mubr.f32.vlgmr.msra.gmra.mxu0 %v9802_v37  ;;  %9851 = vmatprep.subr.mxu1 %v4716_v38  ;;  %v4987_v37 = vld [vmem:[#allocation18 + $0xc0] sm:$0xff] }
 0x745   : > { %9852 = vmatpush3.msra.mxu1 %v4716_v38  ;;  %9888 = vmatprep.mubr.msk.f32.mxu0 %vm11258_vm6, %v11257_v55  ;;  %v4986_v38 = vld [vmem:[#allocation18 + $0xb8] sm:$0xff] }
 0x746   : > { %9853 = vmatprep.subr.mxu1 %v4715_v29 }
 0x747   : > { %9854 = vmatpush3.msra.mxu1 %v4715_v29  ;;  %v4984_v29 = vld [vmem:[#allocation18 + $0xa8] sm:$0xff] }
 0x748   : > { %9855 = vmatprep.subr.mxu1 %v4714_v33 }
 0x749   : > { %9856 = vmatpush3.msra.mxu1 %v4714_v33  ;;  %v4983_v33 = vld [vmem:[#allocation18 + $0xa0] sm:$0xff] }
 0x74a   : > { %9857 = vmatprep.subr.mxu1 %v4713_v34 }
 0x74b   : > { %9858 = vmatpush3.msra.mxu1 %v4713_v34  ;;  %v4982_v34 = vld [vmem:[#allocation18 + $0x98] sm:$0xff] }
 0x74c   : > { %9859 = vmatprep.subr.mxu1 %v4712_v40 }
 0x74d   : > { %9860 = vmatpush3.msra.mxu1 %v4712_v40  ;;  %v4981_v40 = vld [vmem:[#allocation18 + $0x90] sm:$0xff] }
 0x74e   : > { %9861 = vmatprep.subr.mxu1 %v4711_v35 }
 0x74f   : > { %9862 = vmatpush3.msra.mxu1 %v4711_v35  ;;  %v4887_v35 = vld [vmem:[#allocation18] sm:$0xff] }
 0x750   : > { %9863 = vmatprep.subr.mxu1 %v4710_v41 }
 0x751   : > { %9864 = vmatpush3.msra.mxu1 %v4710_v41  ;;  %v4980_v41 = vld [vmem:[#allocation18 + $0x88] sm:$0xff] }
 0x752   : > { %9865 = vmatprep.subr.mxu1 %v4709_v42 }
 0x753   : > { %9866 = vmatpush3.msra.mxu1 %v4709_v42  ;;  %v4979_v42 = vld [vmem:[#allocation18 + $0x80] sm:$0xff] }
 0x754   : > { %9867 = vmatprep.subr.mxu1 %v4708_v43 }
 0x755   : > { %9868 = vmatpush3.msra.mxu1 %v4708_v43 }
 0x756   : > { %9869 = vmatprep.subr.mxu1 %v4707_v44 }
 0x757   : > { %9870 = vmatpush3.msra.mxu1 %v4707_v44 }
 0x758   : > { %9871 = vmatprep.subr.mxu1 %v4706_v45 }
 0x759   : > { %9872 = vmatpush3.msra.mxu1 %v4706_v45 }
 0x75a   : > { %9873 = vmatprep.subr.mxu1 %v4705_v46 }
 0x75b   : > { %9874 = vmatpush3.msra.mxu1 %v4705_v46 }
 0x75c   : > { %9875 = vmatprep.subr.mxu1 %v4704_v47 }
 0x75d   : > { %9876 = vmatpush3.msra.mxu1 %v4704_v47  ;;  %v5136_v47 = vld [vmem:[#allocation16 + $0x10] sm:$0xff] }
 0x75e   : > { %9877 = vmatprep.subr.mxu1 %v4703_v48 }
 0x75f   : > { %9878 = vmatpush3.msra.mxu1 %v4703_v48  ;;  %v5226_v48 = vld [vmem:[#allocation18 + $0x178] sm:$0xff] }
 0x760   : > { %9879 = vmatprep.subr.mxu1 %v4702_v49 }
 0x761   : > { %9880 = vmatpush3.msra.mxu1 %v4702_v49  ;;  %v5225_v49 = vld [vmem:[#allocation18 + $0x170] sm:$0xff] }
 0x762   : > { %9933 = vmatprep.subr.mxu1 %v11257_v55 }
 0x7fa   : > { %v9791_v50 = vpop.f32.mrf.mxu1 }
 0x7fb   : > { %v4438_v51 = vadd.f32 %v9791_v50, %v12066_v28  ;;  %v4992_v28 = vld [vmem:[#allocation18 + $0xe8] sm:$0xff] }
 0x7fc   : > { %v4428_v52 = vpop.f32.mrf.mxu1  ;;  %v5224_v50 = vld [vmem:[#allocation18 + $0x168] sm:$0xff] }
 0x7fd   : > { %v4437_v53 = vadd.f32 %v4428_v52, %v12068_v31  ;;  %v4990_v31 = vld [vmem:[#allocation18 + $0xd8] sm:$0xff] }
 0x7fe   : > { %v5222_v52 = vld [vmem:[#allocation18 + $0x158] sm:$0xff] }
 0x802   : > { %v9848_v54 = vpop.f32.mrf.mxu1 }
 0x804   : > { %v4692_v3 = vpop.f32.mrf.mxu1  ;;  %v9837_v12 = vpop.f32.mrf.mxu0 }
 0x805   : > { %9881 = vmatprep.mubr.f32.mxu1 %v4692_v3  ;;  %v4616_v14 = vadd.f32 %v9837_v12, %v4438_v51  ;;  %v5223_v51 = vld [vmem:[#allocation18 + $0x160] sm:$0xff] }
 0x806   : > { %9882 = vmatmul.mubr.f32.vlgmr.msra.gmra.mxu1 %v9848_v54  ;;  %v4606_v13 = vpop.f32.mrf.mxu0  ;;  %v5220_v54 = vld [vmem:[#allocation18 + $0x148] sm:$0xff]  ;;  %v5219_v3 = vld [vmem:[#allocation18 + $0x140] sm:$0xff] }
 0x807   : > { %9965 = vmatprep.mubr.msk.f32.mxu1 %vm11258_vm6, %v11257_v55  ;;  %9934 = vmatpush3.msra.mxu1 %v4902_v56  ;;  %v4615_v17 = vadd.f32 %v4606_v13, %v4437_v53  ;;  %v5221_v53 = vld [vmem:[#allocation18 + $0x150] sm:$0xff]  ;;  %v5218_v56 = vld [vmem:[#allocation18 + $0x138] sm:$0xff]  ;;  %v5382_v12 = vld [vmem:[#allocation18 + $0x1c0] sm:$0xff] }
 0x808   : > { %9935 = vmatprep.subr.mxu1 %v11257_v55  ;;  %v5381_v13 = vld [vmem:[#allocation18 + $0x1b8] sm:$0xff] }
 0x809   : > { %9936 = vmatpush3.msra.mxu1 %v4901_v5  ;;  %v5217_v5 = vld [vmem:[#allocation18 + $0x130] sm:$0xff] }
 0x80a   : > { %9937 = vmatprep.subr.mxu1 %v11257_v55 }
 0x80b   : > { %9938 = vmatpush3.msra.mxu1 %v4900_v57  ;;  %v5216_v57 = vld [vmem:[#allocation18 + $0x128] sm:$0xff] }
 0x80c   : > { %9939 = vmatprep.subr.mxu1 %v11257_v55 }
 0x80d   : > { %9940 = vmatpush3.msra.mxu1 %v4899_v4  ;;  %v5215_v4 = vld [vmem:[#allocation18 + $0x120] sm:$0xff] }
 0x80e   : > { %9941 = vmatprep.subr.mxu1 %v11257_v55 }
 0x80f   : > { %9942 = vmatpush3.msra.mxu1 %v4898_v58  ;;  %v5214_v58 = vld [vmem:[#allocation18 + $0x118] sm:$0xff] }
 0x810   : > { %9943 = vmatprep.subr.mxu1 %v11257_v55 }
 0x811   : > { %9944 = vmatpush3.msra.mxu1 %v4897_v59  ;;  %v5213_v59 = vld [vmem:[#allocation18 + $0x110] sm:$0xff] }
 0x812   : > { %9945 = vmatprep.subr.mxu1 %v11257_v55 }
 0x813   : > { %9946 = vmatpush3.msra.mxu1 %v4896_v60  ;;  %v5212_v60 = vld [vmem:[#allocation18 + $0x108] sm:$0xff] }
 0x814   : > { %9947 = vmatprep.subr.mxu1 %v11257_v55 }
 0x815   : > { %9948 = vmatpush3.msra.mxu1 %v4895_v6  ;;  %v5211_v6 = vld [vmem:[#allocation18 + $0x100] sm:$0xff] }
 0x816   : > { %9949 = vmatprep.subr.mxu1 %v11257_v55 }
 0x817   : > { %9950 = vmatpush3.msra.mxu1 %v4894_v61  ;;  %v5389_v61 = vld [vmem:[#allocation18 + $0x1f8] sm:$0xff] }
 0x818   : > { %9951 = vmatprep.subr.mxu1 %v11257_v55 }
 0x819   : > { %9952 = vmatpush3.msra.mxu1 %v4893_v62  ;;  %v5388_v62 = vld [vmem:[#allocation18 + $0x1f0] sm:$0xff] }
 0x81a   : > { %9953 = vmatprep.subr.mxu1 %v11257_v55 }
 0x81b   : > { %9954 = vmatpush3.msra.mxu1 %v4892_v63  ;;  %v5387_v63 = vld [vmem:[#allocation18 + $0x1e8] sm:$0xff] }
 0x81c   : > { %9955 = vmatprep.subr.mxu1 %v11257_v55 }
 0x81d   : > { %9956 = vmatpush3.msra.mxu1 %v4891_v8  ;;  %v5386_v8 = vld [vmem:[#allocation18 + $0x1e0] sm:$0xff] }
 0x81e   : > { %9957 = vmatprep.subr.mxu1 %v11257_v55 }
 0x81f   : > { %9958 = vmatpush3.msra.mxu1 %v4890_v9  ;;  %v5385_v9 = vld [vmem:[#allocation18 + $0x1d8] sm:$0xff] }
 0x820   : > { %9959 = vmatprep.subr.mxu1 %v11257_v55 }
 0x821   : > { %9960 = vmatpush3.msra.mxu1 %v4889_v10  ;;  %v5384_v10 = vld [vmem:[#allocation18 + $0x1d0] sm:$0xff] }
 0x822   : > { %9961 = vmatprep.subr.mxu1 %v11257_v55 }
 0x823   : > { %9962 = vmatpush3.msra.mxu1 %v4888_v11  ;;  %v5383_v11 = vld [vmem:[#allocation18 + $0x1c8] sm:$0xff] }
 0x824   : > { %9963 = vmatprep.subr.mxu1 %v11257_v55 }
 0x825   : > { %9964 = vmatpush3.msra.mxu1 %v4887_v35  ;;  %v5374_v35 = vld [vmem:[#allocation18 + $0x180] sm:$0xff] }
 0x826   : > { %10017 = vmatprep.subr.mxu1 %v11257_v55 }
 0x8c6   : > { %v9883_v15 = vpop.f32.mrf.mxu1 }
 0x8c7   : > { %v4794_v18 = vadd.f32 %v9883_v15, %v4616_v14  ;;  %v5380_v14 = vld [vmem:[#allocation18 + $0x1b0] sm:$0xff]  ;;  %v5379_v15 = vld [vmem:[#allocation18 + $0x1a8] sm:$0xff] }
 0x8c8   : > { %v4784_v20 = vpop.f32.mrf.mxu1 }
 0x8c9   : > { %v4803_v21 = vadd.f32 %v8133_v16, %v4794_v18  ;;  %v4793_v22 = vadd.f32 %v4784_v20, %v4615_v17  ;;  %v5377_v17 = vld [vmem:[#allocation18 + $0x198] sm:$0xff]  ;;  %v5376_v18 = vld [vmem:[#allocation18 + $0x190] sm:$0xff] }
 0x8cb   : > { %vm4805_vm7 = vcmp.gt.f32.partialorder %v4803_v21, 0.0  ;;  %v4809_v23 = vmul.f32 %v4807_v19, %v4803_v21  ;;  %v4802_v24 = vadd.f32 %v8133_v16, %v4793_v22  ;;  %v5378_v16 = vld [vmem:[#allocation18 + $0x1a0] sm:$0xff] }
 0x8cd   : > { %v12102_v25 = vsel %vm4805_vm7, %v4803_v21, %v4809_v23  ;;  %vm4804_vm8 = vcmp.gt.f32.partialorder %v4802_v24, 0.0  ;;  %v4808_v0 = vmul.f32 %v4807_v19, %v4802_v24 }
 0x8ce   : > { %9885 = vmatpush3.msra.mxu0 %v12102_v25 }
 0x8cf   : > { %v12105_v2 = vsel %vm4804_vm8, %v4802_v24, %v4808_v0  ;;  %9886 = vmatprep.subr.mxu0 %v11257_v55 }
 0x8d0   : > { %9887 = vmatpush3.msra.mxu0 %v12105_v2 }
 0x8d1   : > { %9889 = vmatmul.mubr.msk.f32.vlgmr.msra.gmra.mxu0 %vm4813_vm9, %v4812_v1  ;;  %9891 = vmatprep.subr.mxu0 %v11257_v55  ;;  %v5299_v1 = vld [vmem:[#allocation16 + $0x18] sm:$0xff] }
 0x8d2   : > { %9892 = vmatpush3.msra.mxu0 %v12102_v25  ;;  %9895 = vmatprep.mubr.msk.f32.mxu0 %vm11258_vm6, %v11257_v55 }
 0x8d3   : > { %9893 = vmatprep.subr.mxu0 %v11257_v55 }
 0x8d4   : > { %9894 = vmatpush3.msra.mxu0 %v12105_v2 }
 0x8d5   : > { %9896 = vmatmul.mubr.msk.f32.vlgmr.msra.gmra.mxu0 %vm4813_vm9, %v4904_v26  ;;  %9898 = vmatprep.subr.mxu0 %v11257_v55  ;;  %v5462_v26 = vld [vmem:[#allocation16 + $0x20] sm:$0xff] }
 0x8d6   : > { %9899 = vmatpush3.msra.mxu0 %v4994_v27  ;;  %9930 = vmatprep.mubr.msk.f32.mxu0 %vm11258_vm6, %v11257_v55  ;;  %v5552_v27 = vld [vmem:[#allocation18 + $0x278] sm:$0xff] }
 0x8d7   : > { %9900 = vmatprep.subr.mxu0 %v11257_v55 }
 0x8d8   : > { %9901 = vmatpush3.msra.mxu0 %v4993_v7  ;;  %v5551_v7 = vld [vmem:[#allocation18 + $0x270] sm:$0xff] }
 0x8d9   : > { %9902 = vmatprep.subr.mxu0 %v11257_v55 }
 0x8da   : > { %9903 = vmatpush3.msra.mxu0 %v4992_v28  ;;  %v5550_v28 = vld [vmem:[#allocation18 + $0x268] sm:$0xff] }
 0x8db   : > { %9904 = vmatprep.subr.mxu0 %v11257_v55 }
 0x8dc   : > { %9905 = vmatpush3.msra.mxu0 %v4991_v30  ;;  %v5549_v30 = vld [vmem:[#allocation18 + $0x260] sm:$0xff] }
 0x8dd   : > { %9906 = vmatprep.subr.mxu0 %v11257_v55 }
 0x8de   : > { %9907 = vmatpush3.msra.mxu0 %v4990_v31  ;;  %v5548_v31 = vld [vmem:[#allocation18 + $0x258] sm:$0xff] }
 0x8df   : > { %9908 = vmatprep.subr.mxu0 %v11257_v55 }
 0x8e0   : > { %9909 = vmatpush3.msra.mxu0 %v4989_v32  ;;  %v5547_v32 = vld [vmem:[#allocation18 + $0x250] sm:$0xff] }
 0x8e1   : > { %9910 = vmatprep.subr.mxu0 %v11257_v55 }
 0x8e2   : > { %9911 = vmatpush3.msra.mxu0 %v4988_v36  ;;  %v5546_v36 = vld [vmem:[#allocation18 + $0x248] sm:$0xff] }
 0x8e3   : > { %9912 = vmatprep.subr.mxu0 %v11257_v55 }
 0x8e4   : > { %9913 = vmatpush3.msra.mxu0 %v4987_v37  ;;  %v5545_v37 = vld [vmem:[#allocation18 + $0x240] sm:$0xff] }
 0x8e5   : > { %9914 = vmatprep.subr.mxu0 %v11257_v55 }
 0x8e6   : > { %9915 = vmatpush3.msra.mxu0 %v4986_v38  ;;  %v5544_v38 = vld [vmem:[#allocation18 + $0x238] sm:$0xff] }
 0x8e7   : > { %9916 = vmatprep.subr.mxu0 %v11257_v55 }
 0x8e8   : > { %9917 = vmatpush3.msra.mxu0 %v4985_v39  ;;  %v5543_v39 = vld [vmem:[#allocation18 + $0x230] sm:$0xff] }
 0x8e9   : > { %9918 = vmatprep.subr.mxu0 %v11257_v55 }
 0x8ea   : > { %9919 = vmatpush3.msra.mxu0 %v4984_v29  ;;  %v5542_v29 = vld [vmem:[#allocation18 + $0x228] sm:$0xff] }
 0x8eb   : > { %9920 = vmatprep.subr.mxu0 %v11257_v55 }
 0x8ec   : > { %9921 = vmatpush3.msra.mxu0 %v4983_v33  ;;  %v5541_v33 = vld [vmem:[#allocation18 + $0x220] sm:$0xff] }
 0x8ed   : > { %9922 = vmatprep.subr.mxu0 %v11257_v55 }
 0x8ee   : > { %9923 = vmatpush3.msra.mxu0 %v4982_v34  ;;  %v5375_v34 = vld [vmem:[#allocation18 + $0x188] sm:$0xff] }
 0x8ef   : > { %9924 = vmatprep.subr.mxu0 %v11257_v55 }
 0x8f0   : > { %9925 = vmatpush3.msra.mxu0 %v4981_v40  ;;  %v5540_v40 = vld [vmem:[#allocation18 + $0x218] sm:$0xff] }
 0x8f1   : > { %9926 = vmatprep.subr.mxu0 %v11257_v55 }
 0x8f2   : > { %9927 = vmatpush3.msra.mxu0 %v4980_v41  ;;  %v5539_v41 = vld [vmem:[#allocation18 + $0x210] sm:$0xff] }
 0x8f3   : > { %9928 = vmatprep.subr.mxu0 %v11257_v55 }
 0x8f4   : > { %9929 = vmatpush3.msra.mxu0 %v4979_v42  ;;  %v5538_v42 = vld [vmem:[#allocation18 + $0x208] sm:$0xff] }
 0x8f5   : > { %9968 = vmatprep.subr.mxu0 %v11257_v55 }
 0x991   : > { %v4883_v43 = vpop.f32.mrf.mxu0 }
 0x992   : > { %9966 = vmatmul.mubr.f32.vlgmr.msra.gmra.mxu1 %v4883_v43  ;;  %v5537_v43 = vld [vmem:[#allocation18 + $0x200] sm:$0xff] }
 0x993   : > { %v9890_v44 = vpop.f32.mrf.mxu0  ;;  %10049 = vmatprep.mubr.msk.f32.mxu1 %vm11258_vm6, %v11257_v55  ;;  %10018 = vmatpush3.msra.mxu1 %v5389_v61  ;;  %v5708_v61 = vld [vmem:[#allocation18 + $0x2c0] sm:$0xff] }
 0x994   : > { %10019 = vmatprep.subr.mxu1 %v11257_v55 }
 0x995   : > { %v4974_v45 = vpop.f32.mrf.mxu0  ;;  %10020 = vmatpush3.msra.mxu1 %v5388_v62  ;;  %v5872_v62 = vld [vmem:[#allocation18 + $0x348] sm:$0xff] }
 0x996   : > { %9931 = vmatmul.mubr.f32.vlgmr.msra.gmra.mxu0 %v4974_v45  ;;  %10021 = vmatprep.subr.mxu1 %v11257_v55 }
 0x997   : > { %9969 = vmatpush3.msra.mxu0 %v12102_v25  ;;  %v9897_v46 = vpop.f32.mrf.mxu0  ;;  %9972 = vmatprep.mubr.msk.f32.mxu0 %vm11258_vm6, %v11257_v55 }
 0x998   : > { %9970 = vmatprep.subr.mxu0 %v11257_v55  ;;  %10022 = vmatpush3.msra.mxu1 %v5387_v63  ;;  %v5707_v63 = vld [vmem:[#allocation18 + $0x2b8] sm:$0xff] }
 0x999   : > { %9971 = vmatpush3.msra.mxu0 %v12105_v2  ;;  %10023 = vmatprep.subr.mxu1 %v11257_v55 }
 0x99a   : > { %9973 = vmatmul.mubr.msk.f32.vlgmr.msra.gmra.mxu0 %vm4813_vm9, %v5136_v47  ;;  %9975 = vmatprep.subr.mxu0 %v11257_v55 }
 0x99b   : > { %9976 = vmatpush3.msra.mxu0 %v5226_v48  ;;  %10007 = vmatprep.mubr.msk.f32.mxu0 %vm11258_vm6, %v11257_v55 }
 0x99c   : > { %9977 = vmatprep.subr.mxu0 %v11257_v55  ;;  %10024 = vmatpush3.msra.mxu1 %v5386_v8  ;;  %v5871_v8 = vld [vmem:[#allocation18 + $0x340] sm:$0xff] }
 0x99d   : > { %9978 = vmatpush3.msra.mxu0 %v5225_v49  ;;  %10025 = vmatprep.subr.mxu1 %v11257_v55  ;;  %v5625_v49 = vld [vmem:[#allocation16 + $0x28] sm:$0xff] }
 0x99e   : > { %9979 = vmatprep.subr.mxu0 %v11257_v55  ;;  %10026 = vmatpush3.msra.mxu1 %v5385_v9  ;;  %v5706_v9 = vld [vmem:[#allocation18 + $0x2b0] sm:$0xff] }
 0x99f   : > { %9980 = vmatpush3.msra.mxu0 %v5224_v50  ;;  %10027 = vmatprep.subr.mxu1 %v11257_v55 }
 0x9a0   : > { %9981 = vmatprep.subr.mxu0 %v11257_v55  ;;  %10028 = vmatpush3.msra.mxu1 %v5384_v10  ;;  %v5870_v10 = vld [vmem:[#allocation18 + $0x338] sm:$0xff] }
 0x9a1   : > { %9982 = vmatpush3.msra.mxu0 %v5223_v51  ;;  %10029 = vmatprep.subr.mxu1 %v11257_v55  ;;  %v5715_v51 = vld [vmem:[#allocation18 + $0x2f8] sm:$0xff] }
 0x9a2   : > { %9983 = vmatprep.subr.mxu0 %v11257_v55  ;;  %10030 = vmatpush3.msra.mxu1 %v5383_v11  ;;  %v5705_v11 = vld [vmem:[#allocation18 + $0x2a8] sm:$0xff] }
 0x9a3   : > { %9984 = vmatpush3.msra.mxu0 %v5222_v52  ;;  %10031 = vmatprep.subr.mxu1 %v11257_v55 }
 0x9a4   : > { %9985 = vmatprep.subr.mxu0 %v11257_v55  ;;  %10032 = vmatpush3.msra.mxu1 %v5382_v12  ;;  %v5869_v12 = vld [vmem:[#allocation18 + $0x330] sm:$0xff] }
 0x9a5   : > { %9986 = vmatpush3.msra.mxu0 %v5221_v53  ;;  %10033 = vmatprep.subr.mxu1 %v11257_v55  ;;  %v5788_v53 = vld [vmem:[#allocation16 + $0x30] sm:$0xff] }
 0x9a6   : > { %9987 = vmatprep.subr.mxu0 %v11257_v55  ;;  %10034 = vmatpush3.msra.mxu1 %v5381_v13  ;;  %v5704_v13 = vld [vmem:[#allocation18 + $0x2a0] sm:$0xff] }
 0x9a7   : > { %9988 = vmatpush3.msra.mxu0 %v5220_v54  ;;  %10035 = vmatprep.subr.mxu1 %v11257_v55  ;;  %v5714_v54 = vld [vmem:[#allocation18 + $0x2f0] sm:$0xff] }
 0x9a8   : > { %9989 = vmatprep.subr.mxu0 %v11257_v55  ;;  %10036 = vmatpush3.msra.mxu1 %v5380_v14  ;;  %v5868_v14 = vld [vmem:[#allocation18 + $0x328] sm:$0xff] }
 0x9a9   : > { %9990 = vmatpush3.msra.mxu0 %v5219_v3  ;;  %10037 = vmatprep.subr.mxu1 %v11257_v55  ;;  %v5878_v3 = vld [vmem:[#allocation18 + $0x378] sm:$0xff] }
 0x9aa   : > { %9991 = vmatprep.subr.mxu0 %v11257_v55  ;;  %10038 = vmatpush3.msra.mxu1 %v5379_v15  ;;  %v5703_v15 = vld [vmem:[#allocation18 + $0x298] sm:$0xff] }
 0x9ab   : > { %9992 = vmatpush3.msra.mxu0 %v5218_v56  ;;  %10039 = vmatprep.subr.mxu1 %v11257_v55  ;;  %v5713_v56 = vld [vmem:[#allocation18 + $0x2e8] sm:$0xff] }
 0x9ac   : > { %9993 = vmatprep.subr.mxu0 %v11257_v55  ;;  %10040 = vmatpush3.msra.mxu1 %v5378_v16  ;;  %v5702_v16 = vld [vmem:[#allocation18 + $0x290] sm:$0xff] }
 0x9ad   : > { %9994 = vmatpush3.msra.mxu0 %v5217_v5  ;;  %10041 = vmatprep.subr.mxu1 %v11257_v55  ;;  %v5712_v5 = vld [vmem:[#allocation18 + $0x2e0] sm:$0xff] }
 0x9ae   : > { %9995 = vmatprep.subr.mxu0 %v11257_v55  ;;  %10042 = vmatpush3.msra.mxu1 %v5377_v17  ;;  %v5867_v17 = vld [vmem:[#allocation18 + $0x320] sm:$0xff] }
 0x9af   : > { %9996 = vmatpush3.msra.mxu0 %v5216_v57  ;;  %10043 = vmatprep.subr.mxu1 %v11257_v55  ;;  %v5876_v57 = vld [vmem:[#allocation18 + $0x368] sm:$0xff] }
 0x9b0   : > { %9997 = vmatprep.subr.mxu0 %v11257_v55  ;;  %10044 = vmatpush3.msra.mxu1 %v5376_v18  ;;  %v5701_v18 = vld [vmem:[#allocation18 + $0x288] sm:$0xff] }
 0x9b1   : > { %9998 = vmatpush3.msra.mxu0 %v5215_v4  ;;  %10045 = vmatprep.subr.mxu1 %v11257_v55  ;;  %v5875_v4 = vld [vmem:[#allocation18 + $0x360] sm:$0xff] }
 0x9b2   : > { %9999 = vmatprep.subr.mxu0 %v11257_v55  ;;  %10046 = vmatpush3.msra.mxu1 %v5375_v34  ;;  %v6047_v34 = vld [vmem:[#allocation21 + $0x48] sm:$0xff] }
 0x9b3   : > { %10000 = vmatpush3.msra.mxu0 %v5214_v58  ;;  %10047 = vmatprep.subr.mxu1 %v11257_v55  ;;  %v5710_v58 = vld [vmem:[#allocation18 + $0x2d0] sm:$0xff] }
 0x9b4   : > { %10001 = vmatprep.subr.mxu0 %v11257_v55  ;;  %10048 = vmatpush3.msra.mxu1 %v5374_v35  ;;  %v6045_v35 = vld [vmem:[#allocation21 + $0x38] sm:$0xff] }
 0x9b5   : > { %10002 = vmatpush3.msra.mxu0 %v5213_v59  ;;  %10094 = vmatprep.subr.mxu1 %v11257_v55  ;;  %v5874_v59 = vld [vmem:[#allocation18 + $0x358] sm:$0xff] }
 0x9b6   : > { %10003 = vmatprep.subr.mxu0 %v11257_v55 }
 0x9b7   : > { %10004 = vmatpush3.msra.mxu0 %v5212_v60  ;;  %v5709_v60 = vld [vmem:[#allocation18 + $0x2c8] sm:$0xff] }
 0x9b8   : > { %10005 = vmatprep.subr.mxu0 %v11257_v55 }
 0x9b9   : > { %10006 = vmatpush3.msra.mxu0 %v5211_v6  ;;  %v5873_v6 = vld [vmem:[#allocation18 + $0x350] sm:$0xff] }
 0x9ba   : > { %10010 = vmatprep.subr.mxu0 %v11257_v55 }
 0xa52   : > { %v5131_v19 = vpop.f32.mrf.mxu1 }
 0xa54   : > { %v9967_v20 = vpop.f32.mrf.mxu1 }
 0xa55   : > { %v5700_v20 = vld [vmem:[#allocation18 + $0x280] sm:$0xff] }
 0xa56   : > { %v5061_v21 = vpop.f32.mrf.mxu0 }
 0xa57   : > { %v12178_v22 = vadd.f32 %v5131_v19, %v5061_v21  ;;  %v5866_v19 = vld [vmem:[#allocation18 + $0x318] sm:$0xff]  ;;  %v5865_v21 = vld [vmem:[#allocation18 + $0x310] sm:$0xff] }
 0xa58   : > { %v9932_v23 = vpop.f32.mrf.mxu0 }
 0xa59   : > { %v5863_v23 = vld [vmem:[#allocation18 + $0x300] sm:$0xff] }
 0xa5a   : > { %v5206_v24 = vpop.f32.mrf.mxu0 }
 0xa5b   : > { %10008 = vmatmul.mubr.f32.vlgmr.msra.gmra.mxu0 %v5206_v24 }
 0xa5c   : > { %10011 = vmatpush3.msra.mxu0 %v12102_v25  ;;  %v9974_v0 = vpop.f32.mrf.mxu0  ;;  %10014 = vmatprep.mubr.msk.f32.mxu0 %vm11258_vm6, %v11257_v55 }
 0xa5d   : > { %10012 = vmatprep.subr.mxu0 %v11257_v55 }
 0xa5e   : > { %10013 = vmatpush3.msra.mxu0 %v12105_v2 }
 0xa5f   : > { %10052 = vmatprep.subr.mxu0 %v11257_v55  ;;  %10015 = vmatmul.mubr.msk.f32.vlgmr.msra.gmra.mxu0 %vm4813_vm9, %v5299_v1 }
 0xa60   : > { %10053 = vmatpush3.msra.mxu0 %v12102_v25  ;;  %10056 = vmatprep.mubr.msk.f32.mxu0 %vm11258_vm6, %v11257_v55 }
 0xa61   : > { %10054 = vmatprep.subr.mxu0 %v11257_v55 }
 0xa62   : > { %10055 = vmatpush3.msra.mxu0 %v12105_v2 }
 0xa63   : > { %10057 = vmatmul.mubr.msk.f32.vlgmr.msra.gmra.mxu0 %vm4813_vm9, %v5462_v26  ;;  %10059 = vmatprep.subr.mxu0 %v11257_v55 }
 0xa64   : > { %10060 = vmatpush3.msra.mxu0 %v5552_v27  ;;  %10091 = vmatprep.mubr.msk.f32.mxu0 %vm11258_vm6, %v11257_v55 }
 0xa65   : > { %10061 = vmatprep.subr.mxu0 %v11257_v55 }
 0xa66   : > { %10062 = vmatpush3.msra.mxu0 %v5551_v7 }
 0xa67   : > { %10063 = vmatprep.subr.mxu0 %v11257_v55 }
 0xa68   : > { %10064 = vmatpush3.msra.mxu0 %v5550_v28 }
 0xa69   : > { %10065 = vmatprep.subr.mxu0 %v11257_v55 }
 0xa6a   : > { %10066 = vmatpush3.msra.mxu0 %v5549_v30 }
 0xa6b   : > { %10067 = vmatprep.subr.mxu0 %v11257_v55 }
 0xa6c   : > { %10068 = vmatpush3.msra.mxu0 %v5548_v31 }
 0xa6d   : > { %10069 = vmatprep.subr.mxu0 %v11257_v55 }
 0xa6e   : > { %10070 = vmatpush3.msra.mxu0 %v5547_v32 }
 0xa6f   : > { %10071 = vmatprep.subr.mxu0 %v11257_v55 }
 0xa70   : > { %10072 = vmatpush3.msra.mxu0 %v5546_v36  ;;  %v6053_v36 = vld [vmem:[#allocation21 + $0x78] sm:$0xff] }
 0xa71   : > { %10073 = vmatprep.subr.mxu0 %v11257_v55 }
 0xa72   : > { %10074 = vmatpush3.msra.mxu0 %v5545_v37  ;;  %v6052_v37 = vld [vmem:[#allocation21 + $0x70] sm:$0xff] }
 0xa73   : > { %10075 = vmatprep.subr.mxu0 %v11257_v55 }
 0xa74   : > { %10076 = vmatpush3.msra.mxu0 %v5544_v38  ;;  %v6051_v38 = vld [vmem:[#allocation21 + $0x68] sm:$0xff] }
 0xa75   : > { %10077 = vmatprep.subr.mxu0 %v11257_v55 }
 0xa76   : > { %10078 = vmatpush3.msra.mxu0 %v5543_v39  ;;  %v6050_v39 = vld [vmem:[#allocation21 + $0x60] sm:$0xff] }
 0xa77   : > { %10079 = vmatprep.subr.mxu0 %v11257_v55 }
 0xa78   : > { %10080 = vmatpush3.msra.mxu0 %v5542_v29  ;;  %v6049_v29 = vld [vmem:[#allocation21 + $0x58] sm:$0xff] }
 0xa79   : > { %10081 = vmatprep.subr.mxu0 %v11257_v55 }
 0xa7a   : > { %10082 = vmatpush3.msra.mxu0 %v5541_v33  ;;  %v6048_v33 = vld [vmem:[#allocation21 + $0x50] sm:$0xff] }
 0xa7b   : > { %10083 = vmatprep.subr.mxu0 %v11257_v55 }
 0xa7c   : > { %10084 = vmatpush3.msra.mxu0 %v5540_v40  ;;  %v6046_v40 = vld [vmem:[#allocation21 + $0x40] sm:$0xff] }
 0xa7d   : > { %10085 = vmatprep.subr.mxu0 %v11257_v55 }
 0xa7e   : > { %10086 = vmatpush3.msra.mxu0 %v5539_v41  ;;  %v6044_v41 = vld [vmem:[#allocation21 + $0x30] sm:$0xff] }
 0xa7f   : > { %10087 = vmatprep.subr.mxu0 %v11257_v55 }
 0xa80   : > { %10088 = vmatpush3.msra.mxu0 %v5538_v42  ;;  %v6043_v42 = vld [vmem:[#allocation21 + $0x28] sm:$0xff] }
 0xa81   : > { %10089 = vmatprep.subr.mxu0 %v11257_v55 }
 0xa82   : > { %10090 = vmatpush3.msra.mxu0 %v5537_v43  ;;  %v6042_v43 = vld [vmem:[#allocation21 + $0x20] sm:$0xff] }
 0xa83   : > { %10136 = vmatprep.subr.mxu0 %v11257_v55 }
 0xb1b   : > { %v5293_v44 = vpop.f32.mrf.mxu0 }
 0xb1c   : > { %v12215_v45 = vadd.f32 %v5293_v44, %v12178_v22  ;;  %v5864_v22 = vld [vmem:[#allocation18 + $0x308] sm:$0xff]  ;;  %v6041_v44 = vld [vmem:[#allocation21 + $0x18] sm:$0xff] }
 0xb1d   : > { %v10009_v46 = vpop.f32.mrf.mxu0 }
 0xb1e   : > { %v6039_v46 = vld [vmem:[#allocation21 + $0x8] sm:$0xff] }
 0xb1f   : > { %v5369_v47 = vpop.f32.mrf.mxu0 }
 0xb20   : > { %10050 = vmatmul.mubr.f32.vlgmr.msra.gmra.mxu1 %v5369_v47  ;;  %v6038_v47 = vld [vmem:[#allocation21] sm:$0xff] }
 0xb21   : > { %10095 = vmatpush3.msra.mxu1 %v12102_v25  ;;  %v10016_v48 = vpop.f32.mrf.mxu0  ;;  %10098 = vmatprep.mubr.msk.f32.mxu1 %vm11258_vm6, %v11257_v55 }
 0xb22   : > { %10096 = vmatprep.subr.mxu1 %v11257_v55 }
 0xb23   : > { %10097 = vmatpush3.msra.mxu1 %v12105_v2  ;;  %v5532_v50 = vpop.f32.mrf.mxu0 }
 0xb24   : > { %10092 = vmatmul.mubr.f32.vlgmr.msra.gmra.mxu0 %v5532_v50  ;;  %10099 = vmatmul.mubr.msk.f32.vlgmr.msra.gmra.mxu1 %vm4813_vm9, %v5625_v49 }
 0xb25   : > { %10137 = vmatpush3.msra.mxu0 %v12102_v25  ;;  %v10058_v52 = vpop.f32.mrf.mxu0  ;;  %10140 = vmatprep.mubr.msk.f32.mxu0 %vm11258_vm6, %v11257_v55  ;;  %v5877_v25 = vld [vmem:[#allocation18 + $0x370] sm:$0xff] }
 0xb26   : > { %10138 = vmatprep.subr.mxu0 %v11257_v55  ;;  %10101 = vmatprep.subr.mxu1 %v11257_v55  ;;  %v8142_v52 = vld [vmem:[#allocation19] ss:$0 sm:$0xff] }
 0xb27   : > { %10139 = vmatpush3.msra.mxu0 %v12105_v2  ;;  %10102 = vmatpush3.msra.mxu1 %v5715_v51  ;;  %v5711_v2 = vld [vmem:[#allocation18 + $0x2d8] sm:$0xff] }
 0xb28   : > { %10141 = vmatmul.mubr.msk.f32.vlgmr.msra.gmra.mxu0 %vm4813_vm9, %v5788_v53  ;;  %10103 = vmatprep.subr.mxu1 %v11257_v55 }
 0xb29   : > { %10104 = vmatpush3.msra.mxu1 %v5714_v54  ;;  %10143 = vmatprep.subr.mxu0 %v11257_v55  ;;  %v5960_v54 = vstv %s8143_s26  ;;  %s12678_s26 = sld [smem:[#allocation49_spill]] }
 0xb2a   : > { %10105 = vmatprep.subr.mxu1 %v11257_v55  ;;  %10144 = vmatpush3.msra.mxu0 %v5878_v3 }
 0xb2b   : > { %10106 = vmatpush3.msra.mxu1 %v5713_v56  ;;  %10145 = vmatprep.subr.mxu0 %v11257_v55 }
 0xb2c   : > { %10107 = vmatprep.subr.mxu1 %v11257_v55  ;;  %10146 = vmatpush3.msra.mxu0 %v5877_v25 }
 0xb2d   : > { %10108 = vmatpush3.msra.mxu1 %v5712_v5  ;;  %10147 = vmatprep.subr.mxu0 %v11257_v55  ;;  %v5963_v5 = vld [vmem:[%s12677_s19] sm:$0xf] }
 0xb2e   : > { %10109 = vmatprep.subr.mxu1 %v11257_v55  ;;  %10148 = vmatpush3.msra.mxu0 %v5876_v57 }
 0xb2f   : > { %10110 = vmatpush3.msra.mxu1 %v5711_v2  ;;  %10149 = vmatprep.subr.mxu0 %v11257_v55  ;;  %v8145_v2 = vld [vmem:[%s12677_s19 + $0x4] sm:$0xf] }
 0xb30   : > { %10111 = vmatprep.subr.mxu1 %v11257_v55  ;;  %10150 = vmatpush3.msra.mxu0 %v5875_v4  ;;  %v6145_v4 = vld [vmem:[#allocation21 + $0xf8] sm:$0xff] }
 0xb31   : > { %10112 = vmatpush3.msra.mxu1 %v5710_v58  ;;  %10151 = vmatprep.subr.mxu0 %v11257_v55  ;;  %v6144_v58 = vld [vmem:[#allocation21 + $0xf0] sm:$0xff] }
 0xb32   : > { %10113 = vmatprep.subr.mxu1 %v11257_v55  ;;  %10152 = vmatpush3.msra.mxu0 %v5874_v59  ;;  %v6143_v59 = vld [vmem:[#allocation21 + $0xe8] sm:$0xff] }
 0xb33   : > { %10114 = vmatpush3.msra.mxu1 %v5709_v60  ;;  %10153 = vmatprep.subr.mxu0 %v11257_v55  ;;  %v6142_v60 = vld [vmem:[#allocation21 + $0xe0] sm:$0xff] }
 0xb34   : > { %10115 = vmatprep.subr.mxu1 %v11257_v55  ;;  %10154 = vmatpush3.msra.mxu0 %v5873_v6  ;;  %v6141_v6 = vld [vmem:[#allocation21 + $0xd8] sm:$0xff] }
 0xb35   : > { %10116 = vmatpush3.msra.mxu1 %v5708_v61  ;;  %10155 = vmatprep.subr.mxu0 %v11257_v55  ;;  %v6140_v61 = vld [vmem:[#allocation21 + $0xd0] sm:$0xff] }
 0xb36   : > { %10117 = vmatprep.subr.mxu1 %v11257_v55  ;;  %10156 = vmatpush3.msra.mxu0 %v5872_v62  ;;  %v6139_v62 = vld [vmem:[#allocation21 + $0xc8] sm:$0xff] }
 0xb37   : > { %10118 = vmatpush3.msra.mxu1 %v5707_v63  ;;  %10157 = vmatprep.subr.mxu0 %v11257_v55  ;;  %v6138_v63 = vld [vmem:[#allocation21 + $0xc0] sm:$0xff] }
 0xb38   : > { %10119 = vmatprep.subr.mxu1 %v11257_v55  ;;  %10158 = vmatpush3.msra.mxu0 %v5871_v8  ;;  %v6137_v8 = vld [vmem:[#allocation21 + $0xb8] sm:$0xff] }
 0xb39   : > { %10120 = vmatpush3.msra.mxu1 %v5706_v9  ;;  %10159 = vmatprep.subr.mxu0 %v11257_v55  ;;  %v6136_v9 = vld [vmem:[#allocation21 + $0xb0] sm:$0xff] }
 0xb3a   : > { %10121 = vmatprep.subr.mxu1 %v11257_v55  ;;  %10160 = vmatpush3.msra.mxu0 %v5870_v10  ;;  %v6135_v10 = vld [vmem:[#allocation21 + $0xa8] sm:$0xff] }
 0xb3b   : > { %10122 = vmatpush3.msra.mxu1 %v5705_v11  ;;  %10161 = vmatprep.subr.mxu0 %v11257_v55  ;;  %v6134_v11 = vld [vmem:[#allocation21 + $0xa0] sm:$0xff] }
 0xb3c   : > { %10123 = vmatprep.subr.mxu1 %v11257_v55  ;;  %10162 = vmatpush3.msra.mxu0 %v5869_v12  ;;  %v6133_v12 = vld [vmem:[#allocation21 + $0x98] sm:$0xff] }
 0xb3d   : > { %10124 = vmatpush3.msra.mxu1 %v5704_v13  ;;  %10163 = vmatprep.subr.mxu0 %v11257_v55  ;;  %v6132_v13 = vld [vmem:[#allocation21 + $0x90] sm:$0xff] }
 0xb3e   : > { %10125 = vmatprep.subr.mxu1 %v11257_v55  ;;  %10164 = vmatpush3.msra.mxu0 %v5868_v14  ;;  %v6131_v14 = vld [vmem:[#allocation21 + $0x88] sm:$0xff] }
 0xb3f   : > { %10126 = vmatpush3.msra.mxu1 %v5703_v15  ;;  %10165 = vmatprep.subr.mxu0 %v11257_v55  ;;  %v6130_v15 = vld [vmem:[#allocation21 + $0x80] sm:$0xff] }
 0xb40   : > { %10127 = vmatprep.subr.mxu1 %v11257_v55  ;;  %10133 = vmatprep.mubr.msk.f32.mxu1 %vm11258_vm6, %v11257_v55 }
 0xb41   : > { %10175 = vmatprep.mubr.msk.f32.mxu0 %vm11258_vm6, %v11257_v55  ;;  %10128 = vmatpush3.msra.mxu1 %v5702_v16 }
 0xb42   : > { %10166 = vmatpush3.msra.mxu0 %v5867_v17  ;;  %10129 = vmatprep.subr.mxu1 %v11257_v55 }
 0xb43   : > { %10167 = vmatprep.subr.mxu0 %v11257_v55  ;;  %10130 = vmatpush3.msra.mxu1 %v5701_v18  ;;  %v8149_v18 = vld [vmem:[%s12677_s19 + $0xc] sm:$0xf] }
 0xb44   : > { %10168 = vmatpush3.msra.mxu0 %v5866_v19  ;;  %10131 = vmatprep.subr.mxu1 %v11257_v55 }
 0xb45   : > { %10169 = vmatprep.subr.mxu0 %v11257_v55  ;;  %10132 = vmatpush3.msra.mxu1 %v5700_v20  ;;  %v6540_v20 = vld [vmem:[#allocation21 + $0x1f8] sm:$0xff] }
 0xb46   : > { %10170 = vmatpush3.msra.mxu0 %v5865_v21  ;;  %10178 = vmatprep.subr.mxu1 %v11257_v55 }
 0xb47   : > { %10171 = vmatprep.subr.mxu0 %v11257_v55 }
 0xb48   : > { %10172 = vmatpush3.msra.mxu0 %v5864_v22  ;;  %v8147_v22 = vld [vmem:[%s12677_s19 + $0x8] sm:$0xf] }
 0xb49   : > { %10173 = vmatprep.subr.mxu0 %v11257_v55 }
 0xb4a   : > { %10174 = vmatpush3.msra.mxu0 %v5863_v23  ;;  %v6539_v23 = vld [vmem:[#allocation21 + $0x1f0] sm:$0xff] }
 0xb4b   : > { %10223 = vmatprep.subr.mxu0 %v11257_v55 }
 0xbe0   : > { %v5456_v24 = vpop.f32.mrf.mxu1 }
 0xbe1   : > { %v5460_v0 = vadd.f32 %v5456_v24, %v12215_v45  ;;  %v6040_v45 = vld [vmem:[#allocation21 + $0x10] sm:$0xff]  ;;  %v6377_v24 = vld [vmem:[#allocation21 + $0x178] sm:$0xff] }
 0xbe2   : > { %v10051_v1 = vpop.f32.mrf.mxu1 }
 0xbe3   : > { %v6376_v1 = vld [vmem:[#allocation21 + $0x170] sm:$0xff] }
 0xbe4   : > { %v5619_v26 = vpop.f32.mrf.mxu0  ;;  %v5695_v27 = vpop.f32.mrf.mxu1 }
 0xbe5   : > { %v5623_v7 = vadd.f32 %v5619_v26, %v5460_v0  ;;  %10134 = vmatmul.mubr.f32.vlgmr.msra.gmra.mxu1 %v5695_v27  ;;  %v6538_v0 = vld [vmem:[#allocation21 + $0x1e8] sm:$0xff]  ;;  %v6537_v26 = vld [vmem:[#allocation21 + $0x1e0] sm:$0xff] }
 0xbe6   : > { %v10093_v28 = vpop.f32.mrf.mxu0  ;;  %v10100_v30 = vpop.f32.mrf.mxu1  ;;  %10180 = vmatprep.mubr.msk.f32.mxu1 %vm11258_vm6, %v11257_v55  ;;  %v6375_v27 = vld [vmem:[#allocation21 + $0x168] sm:$0xff] }
 0xbe7   : > { %v6374_v28 = vld [vmem:[#allocation21 + $0x160] sm:$0xff]  ;;  %v6535_v30 = vld [vmem:[#allocation21 + $0x1d0] sm:$0xff] }
 0xbe8   : > { %v5858_v31 = vpop.f32.mrf.mxu0 }
 0xbe9   : > { %10176 = vmatmul.mubr.f32.vlgmr.msra.gmra.mxu0 %v5858_v31  ;;  %v6373_v31 = vld [vmem:[#allocation21 + $0x158] sm:$0xff] }
 0xbea   : > { %v10142_v32 = vpop.f32.mrf.mxu0  ;;  %10255 = vmatprep.mubr.msk.f32.mxu0 %vm11258_vm6, %v11257_v55  ;;  %10224 = vmatpush3.msra.mxu0 %v6053_v36  ;;  %v6372_v36 = vld [vmem:[#allocation21 + $0x150] sm:$0xff] }
 0xbeb   : > { %10225 = vmatprep.subr.mxu0 %v11257_v55  ;;  %v6534_v32 = vld [vmem:[#allocation21 + $0x1c8] sm:$0xff] }
 0xbec   : > { %10226 = vmatpush3.msra.mxu0 %v6052_v37  ;;  %v6533_v37 = vld [vmem:[#allocation21 + $0x1c0] sm:$0xff] }
 0xbed   : > { %10227 = vmatprep.subr.mxu0 %v11257_v55 }
 0xbee   : > { %10228 = vmatpush3.msra.mxu0 %v6051_v38  ;;  %v6371_v38 = vld [vmem:[#allocation21 + $0x148] sm:$0xff] }
 0xbef   : > { %10229 = vmatprep.subr.mxu0 %v11257_v55 }
 0xbf0   : > { %10230 = vmatpush3.msra.mxu0 %v6050_v39  ;;  %v6532_v39 = vld [vmem:[#allocation21 + $0x1b8] sm:$0xff] }
 0xbf1   : > { %10231 = vmatprep.subr.mxu0 %v11257_v55 }
 0xbf2   : > { %10232 = vmatpush3.msra.mxu0 %v6049_v29  ;;  %v6370_v29 = vld [vmem:[#allocation21 + $0x140] sm:$0xff] }
 0xbf3   : > { %10233 = vmatprep.subr.mxu0 %v11257_v55 }
 0xbf4   : > { %10234 = vmatpush3.msra.mxu0 %v6048_v33  ;;  %v6531_v33 = vld [vmem:[#allocation21 + $0x1b0] sm:$0xff] }
 0xbf5   : > { %10235 = vmatprep.subr.mxu0 %v11257_v55 }
 0xbf6   : > { %10236 = vmatpush3.msra.mxu0 %v6047_v34  ;;  %v6369_v34 = vld [vmem:[#allocation21 + $0x138] sm:$0xff] }
 0xbf7   : > { %10237 = vmatprep.subr.mxu0 %v11257_v55 }
 0xbf8   : > { %10238 = vmatpush3.msra.mxu0 %v6046_v40  ;;  %v6368_v40 = vld [vmem:[#allocation21 + $0x130] sm:$0xff] }
 0xbf9   : > { %10239 = vmatprep.subr.mxu0 %v11257_v55 }
 0xbfa   : > { %10240 = vmatpush3.msra.mxu0 %v6045_v35  ;;  %v6367_v35 = vld [vmem:[#allocation21 + $0x128] sm:$0xff] }
 0xbfb   : > { %10241 = vmatprep.subr.mxu0 %v11257_v55 }
 0xbfc   : > { %10242 = vmatpush3.msra.mxu0 %v6044_v41  ;;  %v6366_v41 = vld [vmem:[#allocation21 + $0x120] sm:$0xff] }
 0xbfd   : > { %10243 = vmatprep.subr.mxu0 %v11257_v55 }
 0xbfe   : > { %10244 = vmatpush3.msra.mxu0 %v6043_v42  ;;  %v6530_v42 = vld [vmem:[#allocation21 + $0x1a8] sm:$0xff] }
 0xbff   : > { %10245 = vmatprep.subr.mxu0 %v11257_v55 }
 0xc00   : > { %10246 = vmatpush3.msra.mxu0 %v6042_v43  ;;  %v6365_v43 = vld [vmem:[#allocation21 + $0x118] sm:$0xff] }
 0xc01   : > { %10247 = vmatprep.subr.mxu0 %v11257_v55 }
 0xc02   : > { %10248 = vmatpush3.msra.mxu0 %v6041_v44  ;;  %v6529_v44 = vld [vmem:[#allocation21 + $0x1a0] sm:$0xff] }
 0xc03   : > { %10249 = vmatprep.subr.mxu0 %v11257_v55 }
 0xc04   : > { %10250 = vmatpush3.msra.mxu0 %v6040_v45  ;;  %v6364_v45 = vld [vmem:[#allocation21 + $0x110] sm:$0xff] }
 0xc05   : > { %10251 = vmatprep.subr.mxu0 %v11257_v55 }
 0xc06   : > { %10252 = vmatpush3.msra.mxu0 %v6039_v46  ;;  %v6528_v46 = vld [vmem:[#allocation21 + $0x198] sm:$0xff] }
 0xc07   : > { %10253 = vmatprep.subr.mxu0 %v11257_v55 }
 0xc08   : > { %10254 = vmatpush3.msra.mxu0 %v6038_v47  ;;  %v6363_v47 = vld [vmem:[#allocation21 + $0x108] sm:$0xff] }
 0xc09   : > { %10298 = vmatprep.subr.mxu0 %v11257_v55 }
 0xca5   : > { %v5782_v48 = vpop.f32.mrf.mxu1 }
 0xca6   : > { %v5786_v50 = vadd.f32 %v5782_v48, %v5623_v7  ;;  %v6536_v7 = vld [vmem:[#allocation21 + $0x1d8] sm:$0xff]  ;;  %v6527_v48 = vld [vmem:[#allocation21 + $0x190] sm:$0xff] }
 0xca7   : > { %v10135_v49 = vpop.f32.mrf.mxu1 }
 0xca8   : > { %v6362_v49 = vld [vmem:[#allocation21 + $0x100] sm:$0xff] }
 0xca9   : > { %v5945_v51 = vpop.f32.mrf.mxu0 }
 0xcaa   : > { %v5949_v53 = vadd.f32 %v5945_v51, %v5786_v50  ;;  %v6526_v50 = vld [vmem:[#allocation21 + $0x188] sm:$0xff]  ;;  %v6525_v51 = vld [vmem:[#allocation21 + $0x180] sm:$0xff] }
 0xcab   : > { %v10177_v3 = vpop.f32.mrf.mxu0 }
 0xcac   : > { %v5957_v56 = vadd.f32 %v8142_v52, %v5949_v53 }
 0xcae   : > { %vm5958_vm10 = vcmp.gt.f32.partialorder %v5957_v56, 0.0  ;;  %v5961_v25 = vmul.f32 %v5960_v54, %v5957_v56 }
 0xcb0   : > { %v12291_v57 = vsel %vm5958_vm10, %v5957_v56, %v5961_v25 }
 0xcb1   : > { %10179 = vmatpush3.msra.mxu1 %v12291_v57 }
 0xcb2   : > { %10181 = vmatmul.mubr.msk.f32.vlgmr.msra.gmra.mxu1 %vm5964_vm11, %v5963_v5  ;;  %10183 = vmatprep.subr.mxu1 %v11257_v55 }
 0xcb3   : > { %10184 = vmatpush3.msra.mxu1 %v12291_v57  ;;  %10185 = vmatprep.mubr.msk.f32.mxu1 %vm11258_vm6, %v11257_v55 }
 0xcb4   : > { %10188 = vmatprep.subr.mxu1 %v11257_v55 }
 0xcb6   : > { %10186 = vmatmul.mubr.msk.f32.vlgmr.msra.gmra.mxu1 %vm5964_vm11, %v8145_v2 }
 0xcb7   : > { %10189 = vmatpush3.msra.mxu1 %v6145_v4  ;;  %10220 = vmatprep.mubr.msk.f32.mxu1 %vm11258_vm6, %v11257_v55 }
 0xcb8   : > { %10190 = vmatprep.subr.mxu1 %v11257_v55 }
 0xcb9   : > { %10191 = vmatpush3.msra.mxu1 %v6144_v58  ;;  %v8151_v58 = vld [vmem:[%s12677_s19 + $0x10] sm:$0xf] }
 0xcba   : > { %10192 = vmatprep.subr.mxu1 %v11257_v55 }
 0xcbb   : > { %10193 = vmatpush3.msra.mxu1 %v6143_v59  ;;  %v6703_v59 = vld [vmem:[#allocation21 + $0x278] sm:$0xff] }
 0xcbc   : > { %10194 = vmatprep.subr.mxu1 %v11257_v55 }
 0xcbd   : > { %10195 = vmatpush3.msra.mxu1 %v6142_v60  ;;  %v6702_v60 = vld [vmem:[#allocation21 + $0x270] sm:$0xff] }
 0xcbe   : > { %10196 = vmatprep.subr.mxu1 %v11257_v55 }
 0xcbf   : > { %10197 = vmatpush3.msra.mxu1 %v6141_v6  ;;  %v6700_v6 = vld [vmem:[#allocation21 + $0x260] sm:$0xff] }
 0xcc0   : > { %10198 = vmatprep.subr.mxu1 %v11257_v55 }
 0xcc1   : > { %10199 = vmatpush3.msra.mxu1 %v6140_v61  ;;  %v6699_v61 = vld [vmem:[#allocation21 + $0x258] sm:$0xff] }
 0xcc2   : > { %10200 = vmatprep.subr.mxu1 %v11257_v55 }
 0xcc3   : > { %10201 = vmatpush3.msra.mxu1 %v6139_v62  ;;  %v6698_v62 = vld [vmem:[#allocation21 + $0x250] sm:$0xff] }
 0xcc4   : > { %10202 = vmatprep.subr.mxu1 %v11257_v55 }
 0xcc5   : > { %10203 = vmatpush3.msra.mxu1 %v6138_v63  ;;  %v6697_v63 = vld [vmem:[#allocation21 + $0x248] sm:$0xff] }
 0xcc6   : > { %10204 = vmatprep.subr.mxu1 %v11257_v55 }
 0xcc7   : > { %10205 = vmatpush3.msra.mxu1 %v6137_v8  ;;  %v6696_v8 = vld [vmem:[#allocation21 + $0x240] sm:$0xff] }
 0xcc8   : > { %10206 = vmatprep.subr.mxu1 %v11257_v55 }
 0xcc9   : > { %10207 = vmatpush3.msra.mxu1 %v6136_v9  ;;  %v6695_v9 = vld [vmem:[#allocation21 + $0x238] sm:$0xff] }
 0xcca   : > { %10208 = vmatprep.subr.mxu1 %v11257_v55 }
 0xccb   : > { %10209 = vmatpush3.msra.mxu1 %v6135_v10  ;;  %v6694_v10 = vld [vmem:[#allocation21 + $0x230] sm:$0xff] }
 0xccc   : > { %10210 = vmatprep.subr.mxu1 %v11257_v55 }
 0xccd   : > { %10211 = vmatpush3.msra.mxu1 %v6134_v11  ;;  %v6693_v11 = vld [vmem:[#allocation21 + $0x228] sm:$0xff] }
 0xcce   : > { %10212 = vmatprep.subr.mxu1 %v11257_v55 }
 0xccf   : > { %10213 = vmatpush3.msra.mxu1 %v6133_v12  ;;  %v6692_v12 = vld [vmem:[#allocation21 + $0x220] sm:$0xff] }
 0xcd0   : > { %10214 = vmatprep.subr.mxu1 %v11257_v55 }
 0xcd1   : > { %10215 = vmatpush3.msra.mxu1 %v6132_v13  ;;  %v6691_v13 = vld [vmem:[#allocation21 + $0x218] sm:$0xff] }
 0xcd2   : > { %10216 = vmatprep.subr.mxu1 %v11257_v55 }
 0xcd3   : > { %10217 = vmatpush3.msra.mxu1 %v6131_v14  ;;  %v6690_v14 = vld [vmem:[#allocation21 + $0x210] sm:$0xff] }
 0xcd4   : > { %10218 = vmatprep.subr.mxu1 %v11257_v55 }
 0xcd5   : > { %10219 = vmatpush3.msra.mxu1 %v6130_v15  ;;  %v6689_v15 = vld [vmem:[#allocation21 + $0x208] sm:$0xff] }
 0xcd6   : > { %10258 = vmatprep.subr.mxu1 %v11257_v55 }
 0xd72   : > { %v6034_v16 = vpop.f32.mrf.mxu1 }
 0xd73   : > { %10256 = vmatmul.mubr.f32.vlgmr.msra.gmra.mxu0 %v6034_v16  ;;  %v6688_v16 = vld [vmem:[#allocation21 + $0x200] sm:$0xff] }
 0xd74   : > { %10299 = vmatpush3.msra.mxu0 %v12291_v57  ;;  %v10182_v17 = vpop.f32.mrf.mxu1  ;;  %10300 = vmatprep.mubr.msk.f32.mxu0 %vm11258_vm6, %v11257_v55 }
 0xd75   : > { %10303 = vmatprep.subr.mxu0 %v11257_v55 }
 0xd76   : > { %v6125_v19 = vpop.f32.mrf.mxu1 }
 0xd77   : > { %10221 = vmatmul.mubr.f32.vlgmr.msra.gmra.mxu1 %v6125_v19  ;;  %10301 = vmatmul.mubr.msk.f32.vlgmr.msra.gmra.mxu0 %vm5964_vm11, %v8149_v18 }
 0xd78   : > { %10259 = vmatpush3.msra.mxu1 %v12291_v57  ;;  %v10187_v21 = vpop.f32.mrf.mxu1  ;;  %10260 = vmatprep.mubr.msk.f32.mxu1 %vm11258_vm6, %v11257_v55 }
 0xd79   : > { %10263 = vmatprep.subr.mxu1 %v11257_v55  ;;  %10304 = vmatpush3.msra.mxu0 %v6540_v20 }
 0xd7a   : > { %10305 = vmatprep.subr.mxu0 %v11257_v55  ;;  %10335 = vmatprep.mubr.msk.f32.mxu0 %vm11258_vm6, %v11257_v55 }
 0xd7b   : > { %10261 = vmatmul.mubr.msk.f32.vlgmr.msra.gmra.mxu1 %vm5964_vm11, %v8147_v22  ;;  %10306 = vmatpush3.msra.mxu0 %v6539_v23 }
 0xd7c   : > { %10264 = vmatpush3.msra.mxu1 %v6377_v24  ;;  %10307 = vmatprep.subr.mxu0 %v11257_v55 }
 0xd7d   : > { %10265 = vmatprep.subr.mxu1 %v11257_v55  ;;  %10308 = vmatpush3.msra.mxu0 %v6538_v0  ;;  %v6882_v0 = vld [vmem:[#allocation24 + $0x78] sm:$0xff] }
 0xd7e   : > { %10266 = vmatpush3.msra.mxu1 %v6376_v1  ;;  %10309 = vmatprep.subr.mxu0 %v11257_v55  ;;  %v6881_v1 = vld [vmem:[#allocation24 + $0x70] sm:$0xff] }
 0xd7f   : > { %10267 = vmatprep.subr.mxu1 %v11257_v55  ;;  %10310 = vmatpush3.msra.mxu0 %v6537_v26  ;;  %v6880_v26 = vld [vmem:[#allocation24 + $0x68] sm:$0xff] }
 0xd80   : > { %10268 = vmatpush3.msra.mxu1 %v6375_v27  ;;  %10311 = vmatprep.subr.mxu0 %v11257_v55  ;;  %v6879_v27 = vld [vmem:[#allocation24 + $0x60] sm:$0xff] }
 0xd81   : > { %10269 = vmatprep.subr.mxu1 %v11257_v55  ;;  %10312 = vmatpush3.msra.mxu0 %v6536_v7  ;;  %v6878_v7 = vld [vmem:[#allocation24 + $0x58] sm:$0xff] }
 0xd82   : > { %10270 = vmatpush3.msra.mxu1 %v6374_v28  ;;  %10313 = vmatprep.subr.mxu0 %v11257_v55  ;;  %v6877_v28 = vld [vmem:[#allocation24 + $0x50] sm:$0xff] }
 0xd83   : > { %10271 = vmatprep.subr.mxu1 %v11257_v55  ;;  %10314 = vmatpush3.msra.mxu0 %v6535_v30  ;;  %v6876_v30 = vld [vmem:[#allocation24 + $0x48] sm:$0xff] }
 0xd84   : > { %10272 = vmatpush3.msra.mxu1 %v6373_v31  ;;  %10315 = vmatprep.subr.mxu0 %v11257_v55  ;;  %v6875_v31 = vld [vmem:[#allocation24 + $0x40] sm:$0xff] }
 0xd85   : > { %10273 = vmatprep.subr.mxu1 %v11257_v55  ;;  %10316 = vmatpush3.msra.mxu0 %v6534_v32  ;;  %v6874_v32 = vld [vmem:[#allocation24 + $0x38] sm:$0xff] }
 0xd86   : > { %10274 = vmatpush3.msra.mxu1 %v6372_v36  ;;  %10317 = vmatprep.subr.mxu0 %v11257_v55  ;;  %v6873_v36 = vld [vmem:[#allocation24 + $0x30] sm:$0xff] }
 0xd87   : > { %10275 = vmatprep.subr.mxu1 %v11257_v55  ;;  %10318 = vmatpush3.msra.mxu0 %v6533_v37  ;;  %v6872_v37 = vld [vmem:[#allocation24 + $0x28] sm:$0xff] }
 0xd88   : > { %10276 = vmatpush3.msra.mxu1 %v6371_v38  ;;  %10319 = vmatprep.subr.mxu0 %v11257_v55  ;;  %v6871_v38 = vld [vmem:[#allocation24 + $0x20] sm:$0xff] }
 0xd89   : > { %10277 = vmatprep.subr.mxu1 %v11257_v55  ;;  %10320 = vmatpush3.msra.mxu0 %v6532_v39  ;;  %v6870_v39 = vld [vmem:[#allocation24 + $0x18] sm:$0xff] }
 0xd8a   : > { %10278 = vmatpush3.msra.mxu1 %v6370_v29  ;;  %10321 = vmatprep.subr.mxu0 %v11257_v55  ;;  %v6869_v29 = vld [vmem:[#allocation24 + $0x10] sm:$0xff] }
 0xd8b   : > { %10279 = vmatprep.subr.mxu1 %v11257_v55  ;;  %10322 = vmatpush3.msra.mxu0 %v6531_v33  ;;  %v6868_v33 = vld [vmem:[#allocation24 + $0x8] sm:$0xff] }
 0xd8c   : > { %10280 = vmatpush3.msra.mxu1 %v6369_v34  ;;  %10323 = vmatprep.subr.mxu0 %v11257_v55 }
 0xd8d   : > { %10281 = vmatprep.subr.mxu1 %v11257_v55  ;;  %10295 = vmatprep.mubr.msk.f32.mxu1 %vm11258_vm6, %v11257_v55 }
 0xd8e   : > { %10282 = vmatpush3.msra.mxu1 %v6368_v40  ;;  %10324 = vmatpush3.msra.mxu0 %v6530_v42  ;;  %v8153_v40 = vld [vmem:[#allocation22] ss:$0 sm:$0xff] }
 0xd8f   : > { %10283 = vmatprep.subr.mxu1 %v11257_v55  ;;  %10325 = vmatprep.subr.mxu0 %v11257_v55 }
 0xd90   : > { %10284 = vmatpush3.msra.mxu1 %v6367_v35  ;;  %10326 = vmatpush3.msra.mxu0 %v6529_v44 }
 0xd91   : > { %10285 = vmatprep.subr.mxu1 %v11257_v55  ;;  %10327 = vmatprep.subr.mxu0 %v11257_v55 }
 0xd92   : > { %10286 = vmatpush3.msra.mxu1 %v6366_v41  ;;  %10328 = vmatpush3.msra.mxu0 %v6528_v46  ;;  %v6785_v41 = vstv %s8154_s11  ;;  %s12680_s11 = sld [smem:[#allocation51_spill]] }
 0xd93   : > { %10287 = vmatprep.subr.mxu1 %v11257_v55  ;;  %10329 = vmatprep.subr.mxu0 %v11257_v55 }
 0xd94   : > { %10288 = vmatpush3.msra.mxu1 %v6365_v43  ;;  %10330 = vmatpush3.msra.mxu0 %v6527_v48  ;;  %v6974_v48 = vld [vmem:[#allocation24 + $0xf8] sm:$0xff] }
 0xd95   : > { %10289 = vmatprep.subr.mxu1 %v11257_v55  ;;  %10331 = vmatprep.subr.mxu0 %v11257_v55 }
 0xd96   : > { %10290 = vmatpush3.msra.mxu1 %v6364_v45  ;;  %10332 = vmatpush3.msra.mxu0 %v6526_v50  ;;  %v6788_v45 = vld [vmem:[%s12678_s26] sm:$0x3]  ;;  %v6972_v50 = vld [vmem:[#allocation24 + $0xe8] sm:$0xff] }
 0xd97   : > { %10291 = vmatprep.subr.mxu1 %v11257_v55  ;;  %10333 = vmatprep.subr.mxu0 %v11257_v55 }
 0xd98   : > { %10292 = vmatpush3.msra.mxu1 %v6363_v47  ;;  %10334 = vmatpush3.msra.mxu0 %v6525_v51  ;;  %v8157_v47 = vld [vmem:[%s12678_s26 + $0x2] sm:$0x3]  ;;  %v6971_v51 = vld [vmem:[#allocation24 + $0xe0] sm:$0xff] }
 0xd99   : > { %10293 = vmatprep.subr.mxu1 %v11257_v55  ;;  %10378 = vmatprep.subr.mxu0 %v11257_v55 }
 0xd9a   : > { %10294 = vmatpush3.msra.mxu1 %v6362_v49  ;;  %v6973_v49 = vld [vmem:[#allocation24 + $0xf0] sm:$0xff] }
 0xd9b   : > { %10338 = vmatprep.subr.mxu1 %v11257_v55 }
 0xe33   : > { %v6282_v52 = vpop.f32.mrf.mxu0 }
 0xe35   : > { %v10257_v53 = vpop.f32.mrf.mxu0 }
 0xe36   : > { %v6969_v53 = vld [vmem:[#allocation24 + $0xd0] sm:$0xff] }
 0xe37   : > { %v6212_v54 = vpop.f32.mrf.mxu1  ;;  %v6520_v3 = vpop.f32.mrf.mxu0 }
 0xe38   : > { %v12374_v56 = vadd.f32 %v6282_v52, %v6212_v54  ;;  %10336 = vmatmul.mubr.f32.vlgmr.msra.gmra.mxu0 %v6520_v3  ;;  %v6970_v52 = vld [vmem:[#allocation24 + $0xd8] sm:$0xff]  ;;  %v6968_v54 = vld [vmem:[#allocation24 + $0xc8] sm:$0xff]  ;;  %v6967_v3 = vld [vmem:[#allocation24 + $0xc0] sm:$0xff] }
 0xe39   : > { %v10222_v25 = vpop.f32.mrf.mxu1  ;;  %v10302_v5 = vpop.f32.mrf.mxu0  ;;  %10380 = vmatprep.mubr.msk.f32.mxu0 %vm11258_vm6, %v11257_v55 }
 0xe3a   : > { %v6965_v25 = vld [vmem:[#allocation24 + $0xb0] sm:$0xff]  ;;  %v6964_v5 = vld [vmem:[#allocation24 + $0xa8] sm:$0xff] }
 0xe3b   : > { %v6357_v2 = vpop.f32.mrf.mxu1 }
 0xe3c   : > { %10296 = vmatmul.mubr.f32.vlgmr.msra.gmra.mxu1 %v6357_v2  ;;  %v6963_v2 = vld [vmem:[#allocation24 + $0xa0] sm:$0xff] }
 0xe3d   : > { %10339 = vmatpush3.msra.mxu1 %v12291_v57  ;;  %v10262_v4 = vpop.f32.mrf.mxu1  ;;  %10340 = vmatprep.mubr.msk.f32.mxu1 %vm11258_vm6, %v11257_v55  ;;  %v6701_v57 = vld [vmem:[#allocation21 + $0x268] sm:$0xff] }
 0xe3e   : > { %10343 = vmatprep.subr.mxu1 %v11257_v55  ;;  %v6962_v4 = vld [vmem:[#allocation24 + $0x98] sm:$0xff] }
 0xe40   : > { %10341 = vmatmul.mubr.msk.f32.vlgmr.msra.gmra.mxu1 %vm5964_vm11, %v8151_v58  ;;  %v6961_v58 = vld [vmem:[#allocation24 + $0x90] sm:$0xff] }
 0xe41   : > { %10344 = vmatpush3.msra.mxu1 %v6703_v59  ;;  %10375 = vmatprep.mubr.msk.f32.mxu1 %vm11258_vm6, %v11257_v55  ;;  %v6867_v59 = vld [vmem:[#allocation24] sm:$0xff] }
 0xe42   : > { %10345 = vmatprep.subr.mxu1 %v11257_v55 }
 0xe43   : > { %10346 = vmatpush3.msra.mxu1 %v6702_v60  ;;  %v6960_v60 = vld [vmem:[#allocation24 + $0x88] sm:$0xff] }
 0xe44   : > { %10347 = vmatprep.subr.mxu1 %v11257_v55 }
 0xe45   : > { %10348 = vmatpush3.msra.mxu1 %v6701_v57  ;;  %v6959_v57 = vld [vmem:[#allocation24 + $0x80] sm:$0xff] }
 0xe46   : > { %10349 = vmatprep.subr.mxu1 %v11257_v55 }
 0xe47   : > { %10350 = vmatpush3.msra.mxu1 %v6700_v6 }
 0xe48   : > { %10351 = vmatprep.subr.mxu1 %v11257_v55 }
 0xe49   : > { %10352 = vmatpush3.msra.mxu1 %v6699_v61 }
 0xe4a   : > { %10353 = vmatprep.subr.mxu1 %v11257_v55 }
 0xe4b   : > { %10354 = vmatpush3.msra.mxu1 %v6698_v62 }
 0xe4c   : > { %10355 = vmatprep.subr.mxu1 %v11257_v55 }
 0xe4d   : > { %10356 = vmatpush3.msra.mxu1 %v6697_v63 }
 0xe4e   : > { %10357 = vmatprep.subr.mxu1 %v11257_v55 }
 0xe4f   : > { %10358 = vmatpush3.msra.mxu1 %v6696_v8  ;;  %v8160_v8 = vld [vmem:[%s12678_s26 + $0x4] sm:$0x3] }
 0xe50   : > { %10359 = vmatprep.subr.mxu1 %v11257_v55 }
 0xe51   : > { %10360 = vmatpush3.msra.mxu1 %v6695_v9  ;;  %v7206_v9 = vld [vmem:[#allocation24 + $0x178] sm:$0xff] }
 0xe52   : > { %10361 = vmatprep.subr.mxu1 %v11257_v55 }
 0xe53   : > { %10362 = vmatpush3.msra.mxu1 %v6694_v10  ;;  %v7205_v10 = vld [vmem:[#allocation24 + $0x170] sm:$0xff] }
 0xe54   : > { %10363 = vmatprep.subr.mxu1 %v11257_v55 }
 0xe55   : > { %10364 = vmatpush3.msra.mxu1 %v6693_v11  ;;  %v7204_v11 = vld [vmem:[#allocation24 + $0x168] sm:$0xff] }
 0xe56   : > { %10365 = vmatprep.subr.mxu1 %v11257_v55 }
 0xe57   : > { %10366 = vmatpush3.msra.mxu1 %v6692_v12  ;;  %v7203_v12 = vld [vmem:[#allocation24 + $0x160] sm:$0xff] }
 0xe58   : > { %10367 = vmatprep.subr.mxu1 %v11257_v55 }
 0xe59   : > { %10368 = vmatpush3.msra.mxu1 %v6691_v13  ;;  %v7202_v13 = vld [vmem:[#allocation24 + $0x158] sm:$0xff] }
 0xe5a   : > { %10369 = vmatprep.subr.mxu1 %v11257_v55 }
 0xe5b   : > { %10370 = vmatpush3.msra.mxu1 %v6690_v14  ;;  %v7201_v14 = vld [vmem:[#allocation24 + $0x150] sm:$0xff] }
 0xe5c   : > { %10371 = vmatprep.subr.mxu1 %v11257_v55 }
 0xe5d   : > { %10372 = vmatpush3.msra.mxu1 %v6689_v15  ;;  %v7200_v15 = vld [vmem:[#allocation24 + $0x148] sm:$0xff] }
 0xe5e   : > { %10373 = vmatprep.subr.mxu1 %v11257_v55 }
 0xe5f   : > { %10374 = vmatpush3.msra.mxu1 %v6688_v16  ;;  %v7199_v16 = vld [vmem:[#allocation24 + $0x140] sm:$0xff] }
 0xe60   : > { %10423 = vmatprep.subr.mxu1 %v11257_v55 }
 0xef8   : > { %v6607_v17 = vpop.f32.mrf.mxu0 }
 0xefa   : > { %v10337_v18 = vpop.f32.mrf.mxu0 }
 0xefb   : > { %v7197_v18 = vld [vmem:[#allocation24 + $0x130] sm:$0xff] }
 0xefc   : > { %v6444_v19 = vpop.f32.mrf.mxu1 }
 0xefd   : > { %v6448_v20 = vadd.f32 %v6444_v19, %v12374_v56  ;;  %v6966_v56 = vld [vmem:[#allocation24 + $0xb8] sm:$0xff]  ;;  %v7196_v19 = vld [vmem:[#allocation24 + $0x128] sm:$0xff] }
 0xefe   : > { %v10297_v21 = vpop.f32.mrf.mxu1 }
 0xeff   : > { %v6611_v22 = vadd.f32 %v6607_v17, %v6448_v20  ;;  %v7198_v17 = vld [vmem:[#allocation24 + $0x138] sm:$0xff]  ;;  %v7195_v20 = vld [vmem:[#allocation24 + $0x120] sm:$0xff] }
 0xf00   : > { %v6683_v23 = vpop.f32.mrf.mxu1  ;;  %v7194_v21 = vld [vmem:[#allocation24 + $0x118] sm:$0xff] }
 0xf01   : > { %10376 = vmatmul.mubr.f32.vlgmr.msra.gmra.mxu1 %v6683_v23  ;;  %v7192_v23 = vld [vmem:[#allocation24 + $0x108] sm:$0xff] }
 0xf02   : > { %v10342_v24 = vpop.f32.mrf.mxu1  ;;  %10455 = vmatprep.mubr.msk.f32.mxu1 %vm11258_vm6, %v11257_v55  ;;  %10424 = vmatpush3.msra.mxu1 %v6882_v0 }
 0xf03   : > { %10425 = vmatprep.subr.mxu1 %v11257_v55  ;;  %v7191_v24 = vld [vmem:[#allocation24 + $0x100] sm:$0xff] }
 0xf04   : > { %10426 = vmatpush3.msra.mxu1 %v6881_v1 }
 0xf05   : > { %10427 = vmatprep.subr.mxu1 %v11257_v55 }
 0xf06   : > { %10428 = vmatpush3.msra.mxu1 %v6880_v26 }
 0xf07   : > { %10429 = vmatprep.subr.mxu1 %v11257_v55 }
 0xf08   : > { %10430 = vmatpush3.msra.mxu1 %v6879_v27 }
 0xf09   : > { %10431 = vmatprep.subr.mxu1 %v11257_v55 }
 0xf0a   : > { %10432 = vmatpush3.msra.mxu1 %v6878_v7 }
 0xf0b   : > { %10433 = vmatprep.subr.mxu1 %v11257_v55 }
 0xf0c   : > { %10434 = vmatpush3.msra.mxu1 %v6877_v28 }
 0xf0d   : > { %10435 = vmatprep.subr.mxu1 %v11257_v55 }
 0xf0e   : > { %10436 = vmatpush3.msra.mxu1 %v6876_v30 }
 0xf0f   : > { %10437 = vmatprep.subr.mxu1 %v11257_v55 }
 0xf10   : > { %10438 = vmatpush3.msra.mxu1 %v6875_v31  ;;  %v7377_v31 = vld [vmem:[#allocation25 + $0x38] sm:$0xff] }
 0xf11   : > { %10439 = vmatprep.subr.mxu1 %v11257_v55 }
 0xf12   : > { %10440 = vmatpush3.msra.mxu1 %v6874_v32  ;;  %v7376_v32 = vld [vmem:[#allocation25 + $0x30] sm:$0xff] }
 0xf13   : > { %10441 = vmatprep.subr.mxu1 %v11257_v55 }
 0xf14   : > { %10442 = vmatpush3.msra.mxu1 %v6873_v36  ;;  %v7375_v36 = vld [vmem:[#allocation25 + $0x28] sm:$0xff] }
 0xf15   : > { %10443 = vmatprep.subr.mxu1 %v11257_v55 }
 0xf16   : > { %10444 = vmatpush3.msra.mxu1 %v6872_v37  ;;  %v7374_v37 = vld [vmem:[#allocation25 + $0x20] sm:$0xff] }
 0xf17   : > { %10445 = vmatprep.subr.mxu1 %v11257_v55 }
 0xf18   : > { %10446 = vmatpush3.msra.mxu1 %v6871_v38  ;;  %v7373_v38 = vld [vmem:[#allocation25 + $0x18] sm:$0xff] }
 0xf19   : > { %10447 = vmatprep.subr.mxu1 %v11257_v55 }
 0xf1a   : > { %10448 = vmatpush3.msra.mxu1 %v6870_v39  ;;  %v7372_v39 = vld [vmem:[#allocation25 + $0x10] sm:$0xff] }
 0xf1b   : > { %10449 = vmatprep.subr.mxu1 %v11257_v55 }
 0xf1c   : > { %10450 = vmatpush3.msra.mxu1 %v6869_v29  ;;  %v7371_v29 = vld [vmem:[#allocation25 + $0x8] sm:$0xff] }
 0xf1d   : > { %10451 = vmatprep.subr.mxu1 %v11257_v55 }
 0xf1e   : > { %10452 = vmatpush3.msra.mxu1 %v6868_v33 }
 0xf1f   : > { %10453 = vmatprep.subr.mxu1 %v11257_v55 }
 0xf20   : > { %10454 = vmatpush3.msra.mxu1 %v6867_v59  ;;  %v7690_v59 = vld [vmem:[#allocation25 + $0xb0] sm:$0xff] }
 0xf21   : > { %10498 = vmatprep.subr.mxu1 %v11257_v55 }
 0xfc1   : > { %v6770_v34 = vpop.f32.mrf.mxu1 }
 0xfc2   : > { %v6774_v35 = vadd.f32 %v6770_v34, %v6611_v22  ;;  %v7193_v22 = vld [vmem:[#allocation24 + $0x110] sm:$0xff] }
 0xfc3   : > { %v10377_v42 = vpop.f32.mrf.mxu1  ;;  %v8163_v34 = vld [vmem:[%s12679_s8] ss:$0 sm:$0xff]  ;;  %s841_s8 = scalar_lea.vmem [#allocation27], %s11623_s9 }
 0xfc4   : > { %v6782_v43 = vadd.f32 %v8153_v40, %v6774_v35  ;;  %v7288_v35 = vstv %s8164_s17  ;;  %s7788_s6 = sshll.u32 %s841_s8, 4  ;;  %s7789_s6 = int_to_ptr.vmem [resolvable:$true] %s7788_s6 }
 0xfc5   : > { %s11142_s4 = scalar_lea.vmem %s7789_s6, 16 }
 0xfc6   : > { %vm6783_vm12 = vcmp.gt.f32.partialorder %v6782_v43, 0.0  ;;  %v6786_v44 = vmul.f32 %v6785_v41, %v6782_v43  ;;  %p11143_p2 = scmp.ne.s32.totalorder %s7789_s6, %s11142_s4 }
 0xfc8   : > { %v12425_v46 = vsel %vm6783_vm12, %v6782_v43, %v6786_v44  ;;  %v7291_v44 = vld [vmem:[%s12680_s11] sm:$0x1]  ;;  %p11144_p9 = pnand %p11143_p2, %p12683_p5 }
 0xfc9   : > { %10379 = vmatpush3.msk.msra.mxu0 %vm6793_vm13, %v12425_v46 }
 0xfca   : > { %10381 = vmatmul.mubr.msk.f32.vlgmr.msra.gmra.mxu0 %vm6789_vm14, %v6788_v45  ;;  %10383 = vmatprep.subr.mxu0 %v11257_v55  ;;  %p11145_p13 = pneg %p11144_p9 }
 0xfcb   : > { %10384 = vmatpush3.msk.msra.mxu0 %vm6793_vm13, %v12425_v46  ;;  %10385 = vmatprep.mubr.msk.f32.mxu0 %vm11258_vm6, %v11257_v55 }
 0xfcc   : > { %10388 = vmatprep.subr.mxu0 %v11257_v55 }
 0xfce   : > { %10386 = vmatmul.mubr.msk.f32.vlgmr.msra.gmra.mxu0 %vm6789_vm14, %v8157_v47  ;;  %v7461_v47 = vld [vmem:[#allocation25 + $0x78] sm:$0xff] }
 0xfcf   : > { %10389 = vmatpush3.msra.mxu0 %v6974_v48  ;;  %10420 = vmatprep.mubr.msk.f32.mxu0 %vm11258_vm6, %v11257_v55  ;;  %v7460_v48 = vld [vmem:[#allocation25 + $0x70] sm:$0xff] }
 0xfd0   : > { %10390 = vmatprep.subr.mxu0 %v11257_v55 }
 0xfd1   : > { %10391 = vmatpush3.msra.mxu0 %v6973_v49  ;;  %v7459_v49 = vld [vmem:[#allocation25 + $0x68] sm:$0xff] }
 0xfd2   : > { %10392 = vmatprep.subr.mxu0 %v11257_v55 }
 0xfd3   : > { %10393 = vmatpush3.msra.mxu0 %v6972_v50  ;;  %v7458_v50 = vld [vmem:[#allocation25 + $0x60] sm:$0xff] }
 0xfd4   : > { %10394 = vmatprep.subr.mxu0 %v11257_v55 }
 0xfd5   : > { %10395 = vmatpush3.msra.mxu0 %v6971_v51  ;;  %v7457_v51 = vld [vmem:[#allocation25 + $0x58] sm:$0xff] }
 0xfd6   : > { %10396 = vmatprep.subr.mxu0 %v11257_v55 }
 0xfd7   : > { %10397 = vmatpush3.msra.mxu0 %v6970_v52  ;;  %v7456_v52 = vld [vmem:[#allocation25 + $0x50] sm:$0xff] }
 0xfd8   : > { %10398 = vmatprep.subr.mxu0 %v11257_v55 }
 0xfd9   : > { %10399 = vmatpush3.msra.mxu0 %v6969_v53  ;;  %v7455_v53 = vld [vmem:[#allocation25 + $0x48] sm:$0xff] }
 0xfda   : > { %10400 = vmatprep.subr.mxu0 %v11257_v55 }
 0xfdb   : > { %10401 = vmatpush3.msra.mxu0 %v6968_v54  ;;  %v7370_v54 = vld [vmem:[#allocation25] sm:$0xff] }
 0xfdc   : > { %10402 = vmatprep.subr.mxu0 %v11257_v55 }
 0xfdd   : > { %10403 = vmatpush3.msra.mxu0 %v6967_v3  ;;  %v7454_v3 = vld [vmem:[#allocation25 + $0x40] sm:$0xff] }
 0xfde   : > { %10404 = vmatprep.subr.mxu0 %v11257_v55 }
 0xfdf   : > { %10405 = vmatpush3.msra.mxu0 %v6966_v56 }
 0xfe0   : > { %10406 = vmatprep.subr.mxu0 %v11257_v55 }
 0xfe1   : > { %10407 = vmatpush3.msra.mxu0 %v6965_v25 }
 0xfe2   : > { %10408 = vmatprep.subr.mxu0 %v11257_v55 }
 0xfe3   : > { %10409 = vmatpush3.msra.mxu0 %v6964_v5 }
 0xfe4   : > { %10410 = vmatprep.subr.mxu0 %v11257_v55 }
 0xfe5   : > { %10411 = vmatpush3.msra.mxu0 %v6963_v2 }
 0xfe6   : > { %10412 = vmatprep.subr.mxu0 %v11257_v55 }
 0xfe7   : > { %10413 = vmatpush3.msra.mxu0 %v6962_v4  ;;  %v8172_v4 = vld [vmem:[%s12680_s11 + $0x2] sm:$0x1] }
 0xfe8   : > { %10414 = vmatprep.subr.mxu0 %v11257_v55 }
 0xfe9   : > { %10415 = vmatpush3.msra.mxu0 %v6961_v58  ;;  %v7691_v58 = vld [vmem:[#allocation25 + $0xb8] sm:$0xff] }
 0xfea   : > { %10416 = vmatprep.subr.mxu0 %v11257_v55 }
 0xfeb   : > { %10417 = vmatpush3.msra.mxu0 %v6960_v60  ;;  %v7689_v60 = vld [vmem:[#allocation25 + $0xa8] sm:$0xff] }
 0xfec   : > { %10418 = vmatprep.subr.mxu0 %v11257_v55 }
 0xfed   : > { %10419 = vmatpush3.msra.mxu0 %v6959_v57  ;;  %v7688_v57 = vld [vmem:[#allocation25 + $0xa0] sm:$0xff] }
 0xfee   : > { %10458 = vmatprep.subr.mxu0 %v11257_v55 }
0x108a   : > { %v6863_v6 = vpop.f32.mrf.mxu0 }
0x108b   : > { %10456 = vmatmul.mubr.f32.vlgmr.msra.gmra.mxu1 %v6863_v6  ;;  %v7687_v6 = vld [vmem:[#allocation25 + $0x98] sm:$0xff] }
0x108c   : > { %v10382_v61 = vpop.f32.mrf.mxu0  ;;  %10500 = vmatprep.mubr.msk.f32.mxu1 %vm11258_vm6, %v11257_v55 }
0x108d   : > { %v7686_v61 = vld [vmem:[#allocation25 + $0x90] sm:$0xff] }
0x108e   : > { %v6954_v62 = vpop.f32.mrf.mxu0 }
0x108f   : > { %10421 = vmatmul.mubr.f32.vlgmr.msra.gmra.mxu0 %v6954_v62  ;;  %v7685_v62 = vld [vmem:[#allocation25 + $0x88] sm:$0xff] }
0x1090   : > { %10459 = vmatpush3.msk.msra.mxu0 %vm6793_vm13, %v12425_v46  ;;  %v10387_v63 = vpop.f32.mrf.mxu0  ;;  %10460 = vmatprep.mubr.msk.f32.mxu0 %vm11258_vm6, %v11257_v55  ;;  %v8167_v46 = vld [vmem:[%s12680_s11 + $0x1] sm:$0x1] }
0x1091   : > { %10463 = vmatprep.subr.mxu0 %v11257_v55  ;;  %v7684_v63 = vld [vmem:[#allocation25 + $0x80] sm:$0xff] }
0x1093   : > { %10461 = vmatmul.mubr.msk.f32.vlgmr.msra.gmra.mxu0 %vm6789_vm14, %v8160_v8 }
0x1094   : > { %10464 = vmatpush3.msra.mxu0 %v7206_v9  ;;  %10495 = vmatprep.mubr.msk.f32.mxu0 %vm11258_vm6, %v11257_v55 }
0x1095   : > { %10465 = vmatprep.subr.mxu0 %v11257_v55 }
0x1096   : > { %10466 = vmatpush3.msra.mxu0 %v7205_v10 }
0x1097   : > { %10467 = vmatprep.subr.mxu0 %v11257_v55 }
0x1098   : > { %10468 = vmatpush3.msra.mxu0 %v7204_v11 }
0x1099   : > { %10469 = vmatprep.subr.mxu0 %v11257_v55 }
0x109a   : > { %10470 = vmatpush3.msra.mxu0 %v7203_v12 }
0x109b   : > { %10471 = vmatprep.subr.mxu0 %v11257_v55 }
0x109c   : > { %10472 = vmatpush3.msra.mxu0 %v7202_v13 }
0x109d   : > { %10473 = vmatprep.subr.mxu0 %v11257_v55 }
0x109e   : > { %10474 = vmatpush3.msra.mxu0 %v7201_v14 }
0x109f   : > { %10475 = vmatprep.subr.mxu0 %v11257_v55 }
0x10a0   : > { %10476 = vmatpush3.msra.mxu0 %v7200_v15 }
0x10a1   : > { %10477 = vmatprep.subr.mxu0 %v11257_v55 }
0x10a2   : > { %10478 = vmatpush3.msra.mxu0 %v7199_v16 }
0x10a3   : > { %10479 = vmatprep.subr.mxu0 %v11257_v55 }
0x10a4   : > { %10480 = vmatpush3.msra.mxu0 %v7198_v17  ;;  %v7770_v17 = vstv %s8176_s21  ;;  %s11146_s21 = sshll.u32 %s11259_s3, 4  ;;  %s11147_s21 = int_to_ptr.vmem [resolvable:$false] %s11146_s21 }
0x10a5   : > { %10481 = vmatprep.subr.mxu0 %v11257_v55  ;;  %s11148_s17 = scalar_lea.vmem %s11147_s21, 32  ;;  %p11149_p0 = scmp.lt.s32.totalorder %s7789_s6, %s11147_s21 }
0x10a6   : > { %10482 = vmatpush3.msra.mxu0 %v7197_v18  ;;  %p11150_p1 = scmp.lt.s32.totalorder %s11148_s17, %s11142_s4 }
0x10a7   : > { %10483 = vmatprep.subr.mxu0 %v11257_v55 }
0x10a8   : > { %10484 = vmatpush3.msra.mxu0 %v7196_v19  ;;  %p11151_p3 = por %p11150_p1, %p11149_p0 }
0x10a9   : > { %10485 = vmatprep.subr.mxu0 %v11257_v55 }
0x10aa   : > { %10486 = vmatpush3.msra.mxu0 %v7195_v20  ;;  %p11152_p4 = pnand %p11151_p3, %p11145_p13 }
0x10ab   : > { %10487 = vmatprep.subr.mxu0 %v11257_v55 }
0x10ac   : > { %10488 = vmatpush3.msra.mxu0 %v7194_v21 }
0x10ad   : > { %10489 = vmatprep.subr.mxu0 %v11257_v55 }
0x10ae   : > { %10490 = vmatpush3.msra.mxu0 %v7193_v22 }
0x10af   : > { %10491 = vmatprep.subr.mxu0 %v11257_v55 }
0x10b0   : > { %10492 = vmatpush3.msra.mxu0 %v7192_v23 }
0x10b1   : > { %10493 = vmatprep.subr.mxu0 %v11257_v55 }
0x10b2   : > { %10494 = vmatpush3.msra.mxu0 %v7191_v24 }
0x10b3   : > { %10527 = vmatprep.subr.mxu0 %v11257_v55 }
0x114b   : > { %v7111_v0 = vpop.f32.mrf.mxu1 }
0x114d   : > { %v10457_v1 = vpop.f32.mrf.mxu1 }
0x114f   : > { %v7041_v26 = vpop.f32.mrf.mxu0 }
0x1150   : > { %v7112_v27 = vadd.f32 %v7111_v0, %v7041_v26 }
0x1151   : > { %v10422_v7 = vpop.f32.mrf.mxu0 }
0x1153   : > { %v7186_v28 = vpop.f32.mrf.mxu0 }
0x1154   : > { %10496 = vmatmul.mubr.f32.vlgmr.msra.gmra.mxu0 %v7186_v28 }
0x1155   : > { %v10462_v30 = vpop.f32.mrf.mxu0  ;;  %10543 = vmatprep.mubr.msk.f32.mxu0 %vm11258_vm6, %v11257_v55  ;;  %10528 = vmatpush3.msra.mxu0 %v7377_v31 }
0x1156   : > { %10529 = vmatprep.subr.mxu0 %v11257_v55 }
0x1157   : > { %10530 = vmatpush3.msra.mxu0 %v7376_v32 }
0x1158   : > { %10531 = vmatprep.subr.mxu0 %v11257_v55 }
0x1159   : > { %10532 = vmatpush3.msra.mxu0 %v7375_v36 }
0x115a   : > { %10533 = vmatprep.subr.mxu0 %v11257_v55 }
0x115b   : > { %10534 = vmatpush3.msra.mxu0 %v7374_v37 }
0x115c   : > { %10535 = vmatprep.subr.mxu0 %v11257_v55 }
0x115d   : > { %10536 = vmatpush3.msra.mxu0 %v7373_v38 }
0x115e   : > { %10537 = vmatprep.subr.mxu0 %v11257_v55 }
0x115f   : > { %10538 = vmatpush3.msra.mxu0 %v7372_v39 }
0x1160   : > { %10539 = vmatprep.subr.mxu0 %v11257_v55 }
0x1161   : > { %10540 = vmatpush3.msra.mxu0 %v7371_v29 }
0x1162   : > { %10541 = vmatprep.subr.mxu0 %v11257_v55 }
0x1163   : > { %10542 = vmatpush3.msra.mxu0 %v7370_v54 }
0x1214   : > { %v7273_v33 = vpop.f32.mrf.mxu0 }
0x1215   : > { %v7277_v40 = vadd.f32 %v7273_v33, %v7112_v27 }
0x1216   : > { %v10497_v41 = vpop.f32.mrf.mxu0 }
0x1217   : > { %v7285_v42 = vadd.f32 %v8163_v34, %v7277_v40 }
0x1219   : > { %vm7286_vm15 = vcmp.gt.f32.partialorder %v7285_v42, 0.0  ;;  %v7289_v43 = vmul.f32 %v7288_v35, %v7285_v42 }
0x121b   : > { %v7290_v45 = vsel %vm7286_vm15, %v7285_v42, %v7289_v43 }
0x121c   : > { %10499 = vmatpush3.msk.msra.mxu1 %vm7296_vm1, %v7290_v45 }
0x121d   : > { %10501 = vmatmul.mubr.msk.f32.vlgmr.msra.gmra.mxu1 %vm7292_vm2, %v7291_v44  ;;  %10503 = vmatprep.subr.mxu1 %v11257_v55 }
0x121e   : > { %10504 = vmatpush3.msk.msra.mxu1 %vm7296_vm1, %v7290_v45  ;;  %10505 = vmatprep.mubr.msk.f32.mxu1 %vm11258_vm6, %v11257_v55 }
0x121f   : > { %10508 = vmatprep.subr.mxu1 %v11257_v55 }
0x1221   : > { %10506 = vmatmul.mubr.msk.f32.vlgmr.msra.gmra.mxu1 %vm7292_vm2, %v8167_v46 }
0x1222   : > { %10509 = vmatpush3.msra.mxu1 %v7461_v47  ;;  %10524 = vmatprep.mubr.msk.f32.mxu1 %vm11258_vm6, %v11257_v55 }
0x1223   : > { %10510 = vmatprep.subr.mxu1 %v11257_v55 }
0x1224   : > { %10511 = vmatpush3.msra.mxu1 %v7460_v48 }
0x1225   : > { %10512 = vmatprep.subr.mxu1 %v11257_v55 }
0x1226   : > { %10513 = vmatpush3.msra.mxu1 %v7459_v49 }
0x1227   : > { %10514 = vmatprep.subr.mxu1 %v11257_v55 }
0x1228   : > { %10515 = vmatpush3.msra.mxu1 %v7458_v50 }
0x1229   : > { %10516 = vmatprep.subr.mxu1 %v11257_v55 }
0x122a   : > { %10517 = vmatpush3.msra.mxu1 %v7457_v51 }
0x122b   : > { %10518 = vmatprep.subr.mxu1 %v11257_v55 }
0x122c   : > { %10519 = vmatpush3.msra.mxu1 %v7456_v52 }
0x122d   : > { %10520 = vmatprep.subr.mxu1 %v11257_v55 }
0x122e   : > { %10521 = vmatpush3.msra.mxu1 %v7455_v53 }
0x122f   : > { %10522 = vmatprep.subr.mxu1 %v11257_v55 }
0x1230   : > { %10523 = vmatpush3.msra.mxu1 %v7454_v3 }
0x1231   : > { %10546 = vmatprep.subr.mxu1 %v11257_v55 }
0x12dd   : > { %v7366_v56 = vpop.f32.mrf.mxu1 }
0x12de   : > { %10544 = vmatmul.mubr.msk.f32.vlgmr.msra.gmra.mxu0 %vm854_vm0, %v7366_v56 }
0x12df   : > { %v10502_v25 = vpop.f32.mrf.mxu1 }
0x12e1   : > { %v7449_v5 = vpop.f32.mrf.mxu1 }
0x12e2   : > { %10525 = vmatmul.mubr.msk.f32.vlgmr.msra.gmra.mxu1 %vm854_vm0, %v7449_v5 }
0x12e3   : > { %10547 = vmatpush3.msk.msra.mxu1 %vm7296_vm1, %v7290_v45  ;;  %v10507_v2 = vpop.f32.mrf.mxu1  ;;  %10548 = vmatprep.mubr.msk.f32.mxu1 %vm11258_vm6, %v11257_v55 }
0x12e4   : > { %10551 = vmatprep.subr.mxu1 %v11257_v55 }
0x12e6   : > { %10549 = vmatmul.mubr.msk.f32.vlgmr.msra.gmra.mxu1 %vm7292_vm2, %v8172_v4 }
0x12e7   : > { %10552 = vmatpush3.msra.mxu1 %v7691_v58  ;;  %10567 = vmatprep.mubr.msk.f32.mxu1 %vm11258_vm6, %v11257_v55 }
0x12e8   : > { %10553 = vmatprep.subr.mxu1 %v11257_v55 }
0x12e9   : > { %10554 = vmatpush3.msra.mxu1 %v7690_v59 }
0x12ea   : > { %10555 = vmatprep.subr.mxu1 %v11257_v55 }
0x12eb   : > { %10556 = vmatpush3.msra.mxu1 %v7689_v60 }
0x12ec   : > { %10557 = vmatprep.subr.mxu1 %v11257_v55 }
0x12ed   : > { %10558 = vmatpush3.msra.mxu1 %v7688_v57 }
0x12ee   : > { %10559 = vmatprep.subr.mxu1 %v11257_v55 }
0x12ef   : > { %10560 = vmatpush3.msra.mxu1 %v7687_v6 }
0x12f0   : > { %10561 = vmatprep.subr.mxu1 %v11257_v55 }
0x12f1   : > { %10562 = vmatpush3.msra.mxu1 %v7686_v61 }
0x12f2   : > { %10563 = vmatprep.subr.mxu1 %v11257_v55 }
0x12f3   : > { %10564 = vmatpush3.msra.mxu1 %v7685_v62 }
0x12f4   : > { %10565 = vmatprep.subr.mxu1 %v11257_v55  ;;  %v7766_v55 = vld [vmem:[%s12681_s14] sm:$0x1] }
0x12f5   : > { %10566 = vmatpush3.msra.mxu1 %v7684_v63 }
0x139e   : > { %v7604_v8 = vpop.f32.mrf.mxu0 }
0x13a0   : > { %v10545_v9 = vpop.f32.mrf.mxu0 }
0x13a2   : > { %v7531_v10 = vpop.f32.mrf.mxu1 }
0x13a3   : > { %v7605_v11 = vadd.f32 %v7604_v8, %v7531_v10 }
0x13a4   : > { %v10526_v12 = vpop.f32.mrf.mxu1 }
0x13a6   : > { %v7679_v13 = vpop.f32.mrf.mxu1 }
0x13a7   : > { %10568 = vmatmul.mubr.msk.f32.vlgmr.msra.gmra.mxu1 %vm854_vm0, %v7679_v13 }
0x13a8   : > { %v10550_v14 = vpop.f32.mrf.mxu1 }
0x1467   : > { %v7761_v15 = vpop.f32.mrf.mxu1 }
0x1468   : > { %v7765_v16 = vadd.f32 %v7761_v15, %v7605_v11 }
0x1469   : > { %v10569_v18 = vpop.f32.mrf.mxu1 }
0x146a   : > { %v7767_v19 = vadd.f32 %v7766_v55, %v7765_v16 }
0x146c   : > { %vm7768_vm3 = vcmp.gt.f32.partialorder %v7767_v19, 0.0  ;;  %v7771_v20 = vmul.f32 %v7770_v17, %v7767_v19 }
0x146e   : > { %v7772_v21 = vsel %vm7768_vm3, %v7767_v19, %v7771_v20 }
0x146f   : > { %7774 = vst.msk [vmem:[%s841_s8] sm:$0x1] %vm7773_vm4, %v7772_v21 }
0x1470   : > { %11155 = shalt.err (!%p11152_p4)
}
0x1471   : > { %s11156_s14 = scalar_lea.hbm %s12552_s27, 16  ;;  %s11160_s8 = scalar_lea.hbm %s12682_s7, 32 }
0x1472   : > { %p11157_p8 = scmp.ne.s32.totalorder %s12552_s27, %s11156_s14  ;;  %p11161_p11 = scmp.lt.s32.totalorder %s12552_s27, %s12682_s7 }
0x1473   : > { %p11162_p12 = scmp.lt.s32.totalorder %s11160_s8, %s11156_s14 }
0x1474   : > { %p11158_p10 = pnand %p11157_p8, %p12683_p5 }
0x1475   : > { %p11163_p6 = por %p11162_p12, %p11161_p11 }
0x1476   : > { %p11159_p7 = pneg %p11158_p10 }
0x1478   : > { %p11164_p2 = pnand %p11163_p6, %p11159_p7 }
0x147a   : > { %11167 = shalt.err (!%p11164_p2)
}
0x147b   : > { %10628 = dma.vmem_to_hbm [thread:$0]  (%p12683_p5), %s7789_s6, 16, %s12552_s27, %s7776_s30  }
0x147c PF: > { %s7800_s4 = sand.u32 1, %s11226_s1   ;;  %p12684_p9 = scmp.ne.s32.totalorder %s12655_s16, 0 }
0x147d   : > { %p12685_p13 = scmp.ge.s32.totalorder %s11238_s24, 2  ;;  %s7801_s3 = scalar_lea.sflag [#allocation4], %s7800_s4 }
0x147f   : > { %p10678_p0 = pnand %p12685_p13, %p12684_p9 }
0x1481   : > { %p10679_p1 = pneg %p10678_p0 }
0x1483   : > { %11221 = dma.done.wait (%p10679_p1), %s7801_s3, 16  }
0x1484   : > { %11223 = vsyncadd (%p10679_p1), %s7801_s3, 4294967280  ;;  %p41_p3 = scmp.ge.s32.totalorder %s11544_s0, 4   ;;  %s12686_s1 = smov %s11230_s22 }
0x1485   : > { %s12687_s22 = smov %s11234_s23  ;;  %s12688_s23 = smov %s11555_s25 }
0x1486   : > { %s12689_s24 = smov %s11544_s0  ;;  %43 = sbr.rel (!%p41_p3) target bundleno = 30 (0x1e), region = 266 }
0x148b   :  { %7805 = vsyncpa [#allocation3], 1 }
0x148c   :  { %7807 = vsyncpa [#allocation3 + $0x1], 1 }
0x148d   :  { %7808 = vsyncpa [#allocation8], 1 }
0x148e   :  { %7809 = vsyncpa [#allocation11], 1 }
0x148f   :  { %7810 = vsyncpa [#allocation14], 1 }
0x1490   :  { %7811 = vsyncpa [#allocation17], 1 }
0x1491   :  { %7812 = vsyncpa [#allocation20], 1 }
0x1492   :  { %7813 = vsyncpa [#allocation23], 1 }
0x1493   :  { %7814 = vsyncpa [#allocation26], 1 }
0x1494   :  { %7815 = vsyncpa [#allocation4], 1 }
0x1495   :  { %7817 = vsyncpa [#allocation4 + $0x1], 1 }
0x1496   :  { %7818 = vsyncpa [#allocation5], 1 }
0x1497   :  { %7820 = vsyncpa [#allocation5 + $0x1], 1 }

</bundles_post_ra>
